<compile_context>
chip_gen: v7x
topology: tpu7x:2x2x1
jax: 0.10.0
libtpu: 0.0.40
codegen_flags: <defaults>
</compile_context>

<pallas_src>
import functools

import jax
import jax.numpy as jnp
from jax import lax
from jax.experimental import pallas as pl
from jax.experimental.pallas import tpu as pltpu


# ---------------------------------------------------------------------------
# Pallas kernel
# ---------------------------------------------------------------------------
def _resblock_kernel(x_ref,                    # (1, H, W*C)      lane-dense input
                     t1_ref,                   # (3, (W+2)C, 2WC) conv1 + edge banks (bf16)
                     t2_ref,                   # (3, (W+2)C, WC)  conv2 banks (bf16)
                     b1_ref, bd_ref, b2_ref,   # (1, WC) biases (channel pattern tiled)
                     g1_ref, be1_ref,          # (1, WC) gn1 affine (tiled)
                     g2_ref, be2_ref,          # (1, WC) gn2 affine (tiled)
                     gmat_ref,                 # (WC, WC) lane->group membership matrix
                     o_ref,                    # (1, H, W*C)      lane-dense output
                     pad_ref,                  # VMEM scratch (H+2, (W+2)*C) f32
                     *, eps, n_per_group, H, W, C):
    WC = W * C
    PWC = (W + 2) * C

    x = x_ref[0]                                               # (H, WC) f32

    # ---- zero only the 1-pixel halo of the padded scratch ------------------
    # (interior rows [1:H+1, C:C+WC] are fully overwritten before every use,
    #  so border-only zeroing each step is both cheap and always correct)
    pad_ref[0:1, :] = jnp.zeros((1, PWC), jnp.float32)
    pad_ref[H + 1:H + 2, :] = jnp.zeros((1, PWC), jnp.float32)
    pad_ref[1:H + 1, 0:C] = jnp.zeros((H, C), jnp.float32)
    pad_ref[1:H + 1, PWC - C:PWC] = jnp.zeros((H, C), jnp.float32)

    def conv_rows(t_ref):
        # out[h, :] = sum_ky pad[h+ky, :] @ T_ky   -- 3 MXU matmuls, K=(W+2)*C
        n_out = t_ref.shape[2]
        acc = jnp.zeros((H, n_out), jnp.float32)
        for ky in range(3):
            win = pad_ref[ky:ky + H, :].astype(jnp.bfloat16)   # (H, (W+2)C)
            acc = acc + jnp.dot(win, t_ref[ky],
                                preferred_element_type=jnp.float32)
        return acc

    def group_norm(y, gamma, beta):
        # y: (H, WC) lane-dense, f32.  Per-lane column sums, then a single
        # stacked (2, WC) @ (WC, WC) matmul sums lanes within each GN group
        # and broadcasts the result back onto every lane of that group.
        s1 = jnp.sum(y, axis=0, keepdims=True)                 # (1, WC)
        s2 = jnp.sum(y * y, axis=0, keepdims=True)             # (1, WC)
        stats = jnp.concatenate([s1, s2], axis=0)              # (2, WC)
        g = jnp.dot(stats, gmat_ref[...],
                    preferred_element_type=jnp.float32)        # (2, WC)
        mean = g[0:1] / n_per_group
        var = g[1:2] / n_per_group - mean * mean
        inv = lax.rsqrt(var + eps)
        return (y - mean) * inv * gamma + beta

    def silu(v):
        return v * jax.nn.sigmoid(v)

    # ---- stage 1: conv1 + depthwise edge conv (one fused matmul group) -----
    pad_ref[1:H + 1, C:C + WC] = x
    s = conv_rows(t1_ref)                                      # (H, 2*WC)
    conv1 = s[:, :WC] + b1_ref[...]
    edges = s[:, WC:] + bd_ref[...]
    h = silu(group_norm(conv1, g1_ref[...], be1_ref[...])) + edges

    # ---- stage 2: conv2 -> gn2 -> residual add -> silu ----------------------
    pad_ref[1:H + 1, C:C + WC] = h
    y = group_norm(conv_rows(t2_ref) + b2_ref[...],
                   g2_ref[...], be2_ref[...])
    o_ref[0] = silu(y + x).astype(o_ref.dtype)


# ---------------------------------------------------------------------------
# Wrapper (parameter re-layout + pallas_call)
# ---------------------------------------------------------------------------
def anatomical_res_block(x_nchw, params, num_groups=8, eps=1e-5):
    B, C, H, W = x_nchw.shape
    assert C % num_groups == 0
    WC = W * C
    PWC = (W + 2) * C

    # NCHW -> NHWC -> lane-dense (B, H, W*C); contiguous, so the reshape is free.
    x_ld = jnp.transpose(x_nchw, (0, 2, 3, 1)).astype(jnp.float32).reshape(B, H, WC)

    def toeplitz_bank(w_oihw):
        # (Cout, Cin, 3, 3) -> (3, (W+2)*Cin, W*Cout) banded conv-as-matmul weights:
        # T_ky[(x+kx)*Cin + ci, x*Cout + co] = w[co, ci, ky, kx]
        cout, cin = w_oihw.shape[0], w_oihw.shape[1]
        banks = []
        for ky in range(3):
            t = jnp.zeros(((W + 2) * cin, W * cout), jnp.float32)
            for kx in range(3):
                s = jnp.zeros((W + 2, W), jnp.float32).at[
                    jnp.arange(W) + kx, jnp.arange(W)].set(1.0)
                t = t + jnp.kron(s, w_oihw[:, :, ky, kx].T)
            banks.append(t)
        return jnp.stack(banks, axis=0)

    def lane_tile(v):  # (C,) -> (1, W*C), channel pattern repeated per pixel column
        return jnp.tile(v.astype(jnp.float32), W).reshape(1, WC)

    # depthwise edge conv expressed as a (diagonal) full conv so it fuses with conv1
    wd_full = jnp.eye(C, dtype=jnp.float32)[:, :, None, None] * params["wd"]

    t1 = jnp.concatenate([toeplitz_bank(params["w1"]),
                          toeplitz_bank(wd_full)], axis=2).astype(jnp.bfloat16)
    t2 = toeplitz_bank(params["w2"]).astype(jnp.bfloat16)

    # lane -> group membership matrix in the lane-dense layout
    gidx = jnp.arange(C) // (C // num_groups)
    g_lane = jnp.tile(gidx, W)
    gmat = (g_lane[:, None] == g_lane[None, :]).astype(jnp.float32)     # (WC, WC)

    param_list = [
        t1, t2,
        lane_tile(params["b1"]), lane_tile(params["bd"]), lane_tile(params["b2"]),
        lane_tile(params["gamma1"]), lane_tile(params["beta1"]),
        lane_tile(params["gamma2"]), lane_tile(params["beta2"]),
        gmat,
    ]

    def full_spec(arr):
        nd = arr.ndim
        return pl.BlockSpec(arr.shape, lambda b, _nd=nd: (0,) * _nd)

    n_per_group = H * W * (C // num_groups)
    kernel = functools.partial(_resblock_kernel, eps=eps,
                               n_per_group=float(n_per_group), H=H, W=W, C=C)

    flops = B * (2 * 3 * H * PWC * (3 * WC)      # conv matmuls (stage1 N=2WC, stage2 N=WC)
                 + 2 * 2 * 2 * WC * WC           # GN stacked stat matmuls
                 + 30 * H * WC)                  # elementwise
    transcendentals = B * (2 * H * WC + 4 * WC)
    bytes_accessed = int(x_ld.size * 4 + B * H * WC * 4
                         + sum(int(p.size) * p.dtype.itemsize for p in param_list))

    out_ld = pl.pallas_call(
        kernel,
        out_shape=jax.ShapeDtypeStruct((B, H, WC), jnp.float32),
        grid=(B,),
        in_specs=[pl.BlockSpec((1, H, WC), lambda b: (b, 0, 0))]
                 + [full_spec(a) for a in param_list],
        out_specs=pl.BlockSpec((1, H, WC), lambda b: (b, 0, 0)),
        scratch_shapes=[pltpu.VMEM((H + 2, PWC), jnp.float32)],
        compiler_params=pltpu.CompilerParams(
            dimension_semantics=("parallel",)),
        cost_estimate=pl.CostEstimate(flops=flops,
                                      transcendentals=transcendentals,
                                      bytes_accessed=bytes_accessed),
    )(x_ld, *param_list)

    out = out_ld.reshape(B, H, W, C)
    return jnp.transpose(out, (0, 3, 1, 2))                    # back to NCHW


# ---------------------------------------------------------------------------
# Pure-JAX reference (correctness check)
# ---------------------------------------------------------------------------
def reference_forward(x_nchw, params, num_groups=8, eps=1e-5):
    B, C, H, W = x_nchw.shape
    x = jnp.transpose(x_nchw, (0, 2, 3, 1))                    # NHWC

    def conv(inp, w_oihw, b, groups=1):
        w = jnp.transpose(w_oihw, (2, 3, 1, 0))                # HWIO
        y = lax.conv_general_dilated(
            inp, w, (1, 1), "SAME",
            dimension_numbers=("NHWC", "HWIO", "NHWC"),
            feature_group_count=groups)
        return y + b

    def gn(inp, gamma, beta):
        xg = inp.reshape(B, H, W, num_groups, C // num_groups)
        mean = xg.mean(axis=(1, 2, 4), keepdims=True)
        var = ((xg - mean) ** 2).mean(axis=(1, 2, 4), keepdims=True)
        xn = ((xg - mean) / jnp.sqrt(var + eps)).reshape(B, H, W, C)
        return xn * gamma + beta

    def silu(v):
        return v * jax.nn.sigmoid(v)

    out = silu(gn(conv(x, params["w1"], params["b1"]),
                  params["gamma1"], params["beta1"]))
    edges = conv(x, params["wd"], params["bd"], groups=C)
    out = out + edges
    out = gn(conv(out, params["w2"], params["b2"]),
             params["gamma2"], params["beta2"])
    out = silu(out + x)
    return jnp.transpose(out, (0, 3, 1, 2))                    # NCHW


# ---------------------------------------------------------------------------
def make_params(key, C):
    ks = jax.random.split(key, 12)
    return {
        "w1": 0.1 * jax.random.normal(ks[0], (C, C, 3, 3), jnp.float32),
        "b1": 0.1 * jax.random.normal(ks[1], (C,), jnp.float32),
        "w2": 0.1 * jax.random.normal(ks[2], (C, C, 3, 3), jnp.float32),
        "b2": 0.1 * jax.random.normal(ks[3], (C,), jnp.float32),
        "wd": 0.2 * jax.random.normal(ks[4], (C, 1, 3, 3), jnp.float32),
        "bd": 0.1 * jax.random.normal(ks[5], (C,), jnp.float32),
        "gamma1": 1.0 + 0.1 * jax.random.normal(ks[6], (C,), jnp.float32),
        "beta1": 0.1 * jax.random.normal(ks[7], (C,), jnp.float32),
        "gamma2": 1.0 + 0.1 * jax.random.normal(ks[8], (C,), jnp.float32),
        "beta2": 0.1 * jax.random.normal(ks[9], (C,), jnp.float32),
    }


if __name__ == "__main__":
    B, C, H, W = 2, 16, 16, 16        # channels must be divisible by 8 (GroupNorm(8, C))
    key = jax.random.PRNGKey(0)
    kx, kp = jax.random.split(key)
    x = jax.random.normal(kx, (B, C, H, W), jnp.float32)       # NCHW like PyTorch
    params = make_params(kp, C)

    out = jax.block_until_ready(anatomical_res_block(x, params))
    ref = jax.block_until_ready(reference_forward(x, params))

    max_diff = float(jnp.max(jnp.abs(out - ref)))
    assert out.shape == (B, C, H, W)
    assert max_diff < 5e-2, f"mismatch vs reference: max|diff|={max_diff}"

    print("KERNEL_OK")
</pallas_src>

<mosaic_0001>
module attributes {stable_mosaic.version = 11 : i64} {
  func.func @_resblock_kernel(%arg0: i32, %arg1: memref<1x16x256xf32, #tpu.memory_space<vmem>>, %arg2: memref<3x288x512xbf16, #tpu.memory_space<vmem>>, %arg3: memref<3x288x256xbf16, #tpu.memory_space<vmem>>, %arg4: memref<1x256xf32, #tpu.memory_space<vmem>>, %arg5: memref<1x256xf32, #tpu.memory_space<vmem>>, %arg6: memref<1x256xf32, #tpu.memory_space<vmem>>, %arg7: memref<1x256xf32, #tpu.memory_space<vmem>>, %arg8: memref<1x256xf32, #tpu.memory_space<vmem>>, %arg9: memref<1x256xf32, #tpu.memory_space<vmem>>, %arg10: memref<1x256xf32, #tpu.memory_space<vmem>>, %arg11: memref<256x256xf32, #tpu.memory_space<vmem>>, %arg12: memref<1x16x256xf32, #tpu.memory_space<vmem>>, %arg13: memref<18x288xf32, #tpu.memory_space<vmem>>) attributes {dimension_semantics = [#tpu.dimension_semantics<parallel>], iteration_bounds = array<i64: 2>, scalar_prefetch = 0 : i64, scratch_operands = 1 : i64, tpu.core_type = #tpu.core_type<tc>, window_params = [{transform_indices = @transform_0, window_bounds = array<i64: 1, 16, 256>}, {pipeline_mode = #tpu.pipeline_mode<synchronous>, transform_indices = @transform_1, window_bounds = array<i64: 3, 288, 512>}, {pipeline_mode = #tpu.pipeline_mode<synchronous>, transform_indices = @transform_2, window_bounds = array<i64: 3, 288, 256>}, {pipeline_mode = #tpu.pipeline_mode<synchronous>, transform_indices = @transform_3, window_bounds = array<i64: 1, 256>}, {pipeline_mode = #tpu.pipeline_mode<synchronous>, transform_indices = @transform_4, window_bounds = array<i64: 1, 256>}, {pipeline_mode = #tpu.pipeline_mode<synchronous>, transform_indices = @transform_5, window_bounds = array<i64: 1, 256>}, {pipeline_mode = #tpu.pipeline_mode<synchronous>, transform_indices = @transform_6, window_bounds = array<i64: 1, 256>}, {pipeline_mode = #tpu.pipeline_mode<synchronous>, transform_indices = @transform_7, window_bounds = array<i64: 1, 256>}, {pipeline_mode = #tpu.pipeline_mode<synchronous>, transform_indices = @transform_8, window_bounds = array<i64: 1, 256>}, {pipeline_mode = #tpu.pipeline_mode<synchronous>, transform_indices = @transform_9, window_bounds = array<i64: 1, 256>}, {pipeline_mode = #tpu.pipeline_mode<synchronous>, transform_indices = @transform_10, window_bounds = array<i64: 256, 256>}, {transform_indices = @transform_11, window_bounds = array<i64: 1, 16, 256>}]} {
    %c0 = arith.constant 0 : index
    %c0_0 = arith.constant 0 : index
    %c0_1 = arith.constant 0 : index
    %0 = vector.load %arg1[%c0, %c0_0, %c0_1] : memref<1x16x256xf32, #tpu.memory_space<vmem>>, vector<1x16x256xf32>
    %1 = vector.shape_cast %0 : vector<1x16x256xf32> to vector<16x256xf32>
    %cst = arith.constant 0.000000e+00 : f32
    %2 = vector.broadcast %cst : f32 to vector<1x288xf32>
    %c0_2 = arith.constant 0 : index
    %c0_3 = arith.constant 0 : index
    %3 = vector.load %arg13[%c0_2, %c0_3] : memref<18x288xf32, #tpu.memory_space<vmem>>, vector<1x288xf32>
    tpu.vector_store %arg13[%c0_2, %c0_3], %2 {strides = array<i32>} : memref<18x288xf32, #tpu.memory_space<vmem>>, vector<1x288xf32>,
    %cst_4 = arith.constant 0.000000e+00 : f32
    %4 = vector.broadcast %cst_4 : f32 to vector<1x288xf32>
    %c17 = arith.constant 17 : index
    %c0_5 = arith.constant 0 : index
    %5 = vector.load %arg13[%c17, %c0_5] : memref<18x288xf32, #tpu.memory_space<vmem>>, vector<1x288xf32>
    tpu.vector_store %arg13[%c17, %c0_5], %4 {strides = array<i32>} : memref<18x288xf32, #tpu.memory_space<vmem>>, vector<1x288xf32>,
    %cst_6 = arith.constant 0.000000e+00 : f32
    %6 = vector.broadcast %cst_6 : f32 to vector<16x16xf32>
    %c1 = arith.constant 1 : index
    %c0_7 = arith.constant 0 : index
    %7 = vector.load %arg13[%c1, %c0_7] : memref<18x288xf32, #tpu.memory_space<vmem>>, vector<16x16xf32>
    tpu.vector_store %arg13[%c1, %c0_7], %6 {strides = array<i32>} : memref<18x288xf32, #tpu.memory_space<vmem>>, vector<16x16xf32>,
    %cst_8 = arith.constant 0.000000e+00 : f32
    %8 = vector.broadcast %cst_8 : f32 to vector<16x16xf32>
    %c1_9 = arith.constant 1 : index
    %c272 = arith.constant 272 : index
    %9 = vector.load %arg13[%c1_9, %c272] : memref<18x288xf32, #tpu.memory_space<vmem>>, vector<16x16xf32>
    tpu.vector_store %arg13[%c1_9, %c272], %8 {strides = array<i32>} : memref<18x288xf32, #tpu.memory_space<vmem>>, vector<16x16xf32>,
    %c1_10 = arith.constant 1 : index
    %c16 = arith.constant 16 : index
    %10 = vector.load %arg13[%c1_10, %c16] : memref<18x288xf32, #tpu.memory_space<vmem>>, vector<16x256xf32>
    tpu.vector_store %arg13[%c1_10, %c16], %1 {strides = array<i32>} : memref<18x288xf32, #tpu.memory_space<vmem>>, vector<16x256xf32>,
    %cst_11 = arith.constant 0.000000e+00 : f32
    %11 = vector.broadcast %cst_11 : f32 to vector<16x512xf32>
    %c0_12 = arith.constant 0 : index
    %c0_13 = arith.constant 0 : index
    %12 = vector.load %arg13[%c0_12, %c0_13] : memref<18x288xf32, #tpu.memory_space<vmem>>, vector<16x288xf32>
    %13 = arith.truncf %12 : vector<16x288xf32> to vector<16x288xbf16>
    %c0_14 = arith.constant 0 : index
    %c0_15 = arith.constant 0 : index
    %c0_16 = arith.constant 0 : index
    %14 = vector.load %arg2[%c0_14, %c0_15, %c0_16] : memref<3x288x512xbf16, #tpu.memory_space<vmem>>, vector<1x288x512xbf16>
    %15 = vector.shape_cast %14 : vector<1x288x512xbf16> to vector<288x512xbf16>
    %cst_17 = arith.constant dense<0.000000e+00> : vector<16x512xf32>
    %16 = tpu.matmul %13, %15, %cst_17 {dimension_numbers = #tpu.dot_dimension_numbers<[1], [0], [0], [1], [0, 0, 1, 1], [], []>} : vector<16x288xbf16>, vector<288x512xbf16>, vector<16x512xf32> -> vector<16x512xf32>
    %17 = arith.addf %11, %16 : vector<16x512xf32>
    %c1_18 = arith.constant 1 : index
    %c0_19 = arith.constant 0 : index
    %18 = vector.load %arg13[%c1_18, %c0_19] : memref<18x288xf32, #tpu.memory_space<vmem>>, vector<16x288xf32>
    %19 = arith.truncf %18 : vector<16x288xf32> to vector<16x288xbf16>
    %c1_20 = arith.constant 1 : index
    %c0_21 = arith.constant 0 : index
    %c0_22 = arith.constant 0 : index
    %20 = vector.load %arg2[%c1_20, %c0_21, %c0_22] : memref<3x288x512xbf16, #tpu.memory_space<vmem>>, vector<1x288x512xbf16>
    %21 = vector.shape_cast %20 : vector<1x288x512xbf16> to vector<288x512xbf16>
    %cst_23 = arith.constant dense<0.000000e+00> : vector<16x512xf32>
    %22 = tpu.matmul %19, %21, %cst_23 {dimension_numbers = #tpu.dot_dimension_numbers<[1], [0], [0], [1], [0, 0, 1, 1], [], []>} : vector<16x288xbf16>, vector<288x512xbf16>, vector<16x512xf32> -> vector<16x512xf32>
    %23 = arith.addf %17, %22 : vector<16x512xf32>
    %c2 = arith.constant 2 : index
    %c0_24 = arith.constant 0 : index
    %24 = vector.load %arg13[%c2, %c0_24] : memref<18x288xf32, #tpu.memory_space<vmem>>, vector<16x288xf32>
    %25 = arith.truncf %24 : vector<16x288xf32> to vector<16x288xbf16>
    %c2_25 = arith.constant 2 : index
    %c0_26 = arith.constant 0 : index
    %c0_27 = arith.constant 0 : index
    %26 = vector.load %arg2[%c2_25, %c0_26, %c0_27] : memref<3x288x512xbf16, #tpu.memory_space<vmem>>, vector<1x288x512xbf16>
    %27 = vector.shape_cast %26 : vector<1x288x512xbf16> to vector<288x512xbf16>
    %cst_28 = arith.constant dense<0.000000e+00> : vector<16x512xf32>
    %28 = tpu.matmul %25, %27, %cst_28 {dimension_numbers = #tpu.dot_dimension_numbers<[1], [0], [0], [1], [0, 0, 1, 1], [], []>} : vector<16x288xbf16>, vector<288x512xbf16>, vector<16x512xf32> -> vector<16x512xf32>
    %29 = arith.addf %23, %28 : vector<16x512xf32>
    %30 = vector.extract_strided_slice %29 {offsets = [0, 0], sizes = [16, 256], strides = [1, 1]} : vector<16x512xf32> to vector<16x256xf32>
    %c0_29 = arith.constant 0 : index
    %c0_30 = arith.constant 0 : index
    %31 = vector.load %arg4[%c0_29, %c0_30] : memref<1x256xf32, #tpu.memory_space<vmem>>, vector<1x256xf32>
    %32 = vector.broadcast %31 : vector<1x256xf32> to vector<16x256xf32>
    %33 = arith.addf %30, %32 : vector<16x256xf32>
    %34 = vector.extract_strided_slice %29 {offsets = [0, 256], sizes = [16, 256], strides = [1, 1]} : vector<16x512xf32> to vector<16x256xf32>
    %c0_31 = arith.constant 0 : index
    %c0_32 = arith.constant 0 : index
    %35 = vector.load %arg5[%c0_31, %c0_32] : memref<1x256xf32, #tpu.memory_space<vmem>>, vector<1x256xf32>
    %36 = vector.broadcast %35 : vector<1x256xf32> to vector<16x256xf32>
    %37 = arith.addf %34, %36 : vector<16x256xf32>
    %c0_33 = arith.constant 0 : index
    %c0_34 = arith.constant 0 : index
    %38 = vector.load %arg7[%c0_33, %c0_34] : memref<1x256xf32, #tpu.memory_space<vmem>>, vector<1x256xf32>
    %c0_35 = arith.constant 0 : index
    %c0_36 = arith.constant 0 : index
    %39 = vector.load %arg8[%c0_35, %c0_36] : memref<1x256xf32, #tpu.memory_space<vmem>>, vector<1x256xf32>
    %cst_37 = arith.constant dense<0.000000e+00> : vector<256xf32>
    %40 = vector.multi_reduction <add>, %33, %cst_37 [0] : vector<16x256xf32> to vector<256xf32>
    %41 = vector.shape_cast %40 : vector<256xf32> to vector<1x256xf32>
    %42 = arith.mulf %33, %33 : vector<16x256xf32>
    %cst_38 = arith.constant dense<0.000000e+00> : vector<256xf32>
    %43 = vector.multi_reduction <add>, %42, %cst_38 [0] : vector<16x256xf32> to vector<256xf32>
    %44 = vector.shape_cast %43 : vector<256xf32> to vector<1x256xf32>
    %45 = tpu.concatenate %41, %44 in 0 : vector<1x256xf32>, vector<1x256xf32> -> vector<2x256xf32>
    %c0_39 = arith.constant 0 : index
    %c0_40 = arith.constant 0 : index
    %46 = vector.load %arg11[%c0_39, %c0_40] : memref<256x256xf32, #tpu.memory_space<vmem>>, vector<256x256xf32>
    %cst_41 = arith.constant dense<0.000000e+00> : vector<2x256xf32>
    %47 = tpu.matmul %45, %46, %cst_41 {dimension_numbers = #tpu.dot_dimension_numbers<[1], [0], [0], [1], [0, 0, 1, 1], [], []>} : vector<2x256xf32>, vector<256x256xf32>, vector<2x256xf32> -> vector<2x256xf32>
    %48 = vector.extract_strided_slice %47 {offsets = [0, 0], sizes = [1, 256], strides = [1, 1]} : vector<2x256xf32> to vector<1x256xf32>
    %cst_42 = arith.constant 5.120000e+02 : f32
    %49 = vector.broadcast %cst_42 : f32 to vector<1x256xf32>
    %50 = arith.divf %48, %49 : vector<1x256xf32>
    %51 = vector.extract_strided_slice %47 {offsets = [1, 0], sizes = [1, 256], strides = [1, 1]} : vector<2x256xf32> to vector<1x256xf32>
    %cst_43 = arith.constant 5.120000e+02 : f32
    %52 = vector.broadcast %cst_43 : f32 to vector<1x256xf32>
    %53 = arith.divf %51, %52 : vector<1x256xf32>
    %54 = arith.mulf %50, %50 : vector<1x256xf32>
    %55 = arith.subf %53, %54 : vector<1x256xf32>
    %cst_44 = arith.constant 9.99999974E-6 : f32
    %56 = vector.broadcast %cst_44 : f32 to vector<1x256xf32>
    %57 = arith.addf %55, %56 : vector<1x256xf32>
    %58 = math.rsqrt %57 : vector<1x256xf32>
    %59 = vector.broadcast %50 : vector<1x256xf32> to vector<16x256xf32>
    %60 = arith.subf %33, %59 : vector<16x256xf32>
    %61 = vector.broadcast %58 : vector<1x256xf32> to vector<16x256xf32>
    %62 = arith.mulf %60, %61 : vector<16x256xf32>
    %63 = vector.broadcast %38 : vector<1x256xf32> to vector<16x256xf32>
    %64 = arith.mulf %62, %63 : vector<16x256xf32>
    %65 = vector.broadcast %39 : vector<1x256xf32> to vector<16x256xf32>
    %66 = arith.addf %64, %65 : vector<16x256xf32>
    %67 = arith.negf %66 : vector<16x256xf32>
    %68 = math.exp %67 : vector<16x256xf32>
    %cst_45 = arith.constant 1.000000e+00 : f32
    %69 = vector.broadcast %cst_45 : f32 to vector<16x256xf32>
    %70 = arith.addf %69, %68 : vector<16x256xf32>
    %71 = arith.divf %69, %70 : vector<16x256xf32>
    %72 = arith.mulf %66, %71 : vector<16x256xf32>
    %73 = arith.addf %72, %37 : vector<16x256xf32>
    %c1_46 = arith.constant 1 : index
    %c16_47 = arith.constant 16 : index
    %74 = vector.load %arg13[%c1_46, %c16_47] : memref<18x288xf32, #tpu.memory_space<vmem>>, vector<16x256xf32>
    tpu.vector_store %arg13[%c1_46, %c16_47], %73 {strides = array<i32>} : memref<18x288xf32, #tpu.memory_space<vmem>>, vector<16x256xf32>,
    %cst_48 = arith.constant 0.000000e+00 : f32
    %75 = vector.broadcast %cst_48 : f32 to vector<16x256xf32>
    %c0_49 = arith.constant 0 : index
    %c0_50 = arith.constant 0 : index
    %76 = vector.load %arg13[%c0_49, %c0_50] : memref<18x288xf32, #tpu.memory_space<vmem>>, vector<16x288xf32>
    %77 = arith.truncf %76 : vector<16x288xf32> to vector<16x288xbf16>
    %c0_51 = arith.constant 0 : index
    %c0_52 = arith.constant 0 : index
    %c0_53 = arith.constant 0 : index
    %78 = vector.load %arg3[%c0_51, %c0_52, %c0_53] : memref<3x288x256xbf16, #tpu.memory_space<vmem>>, vector<1x288x256xbf16>
    %79 = vector.shape_cast %78 : vector<1x288x256xbf16> to vector<288x256xbf16>
    %cst_54 = arith.constant dense<0.000000e+00> : vector<16x256xf32>
    %80 = tpu.matmul %77, %79, %cst_54 {dimension_numbers = #tpu.dot_dimension_numbers<[1], [0], [0], [1], [0, 0, 1, 1], [], []>} : vector<16x288xbf16>, vector<288x256xbf16>, vector<16x256xf32> -> vector<16x256xf32>
    %81 = arith.addf %75, %80 : vector<16x256xf32>
    %c1_55 = arith.constant 1 : index
    %c0_56 = arith.constant 0 : index
    %82 = vector.load %arg13[%c1_55, %c0_56] : memref<18x288xf32, #tpu.memory_space<vmem>>, vector<16x288xf32>
    %83 = arith.truncf %82 : vector<16x288xf32> to vector<16x288xbf16>
    %c1_57 = arith.constant 1 : index
    %c0_58 = arith.constant 0 : index
    %c0_59 = arith.constant 0 : index
    %84 = vector.load %arg3[%c1_57, %c0_58, %c0_59] : memref<3x288x256xbf16, #tpu.memory_space<vmem>>, vector<1x288x256xbf16>
    %85 = vector.shape_cast %84 : vector<1x288x256xbf16> to vector<288x256xbf16>
    %cst_60 = arith.constant dense<0.000000e+00> : vector<16x256xf32>
    %86 = tpu.matmul %83, %85, %cst_60 {dimension_numbers = #tpu.dot_dimension_numbers<[1], [0], [0], [1], [0, 0, 1, 1], [], []>} : vector<16x288xbf16>, vector<288x256xbf16>, vector<16x256xf32> -> vector<16x256xf32>
    %87 = arith.addf %81, %86 : vector<16x256xf32>
    %c2_61 = arith.constant 2 : index
    %c0_62 = arith.constant 0 : index
    %88 = vector.load %arg13[%c2_61, %c0_62] : memref<18x288xf32, #tpu.memory_space<vmem>>, vector<16x288xf32>
    %89 = arith.truncf %88 : vector<16x288xf32> to vector<16x288xbf16>
    %c2_63 = arith.constant 2 : index
    %c0_64 = arith.constant 0 : index
    %c0_65 = arith.constant 0 : index
    %90 = vector.load %arg3[%c2_63, %c0_64, %c0_65] : memref<3x288x256xbf16, #tpu.memory_space<vmem>>, vector<1x288x256xbf16>
    %91 = vector.shape_cast %90 : vector<1x288x256xbf16> to vector<288x256xbf16>
    %cst_66 = arith.constant dense<0.000000e+00> : vector<16x256xf32>
    %92 = tpu.matmul %89, %91, %cst_66 {dimension_numbers = #tpu.dot_dimension_numbers<[1], [0], [0], [1], [0, 0, 1, 1], [], []>} : vector<16x288xbf16>, vector<288x256xbf16>, vector<16x256xf32> -> vector<16x256xf32>
    %93 = arith.addf %87, %92 : vector<16x256xf32>
    %c0_67 = arith.constant 0 : index
    %c0_68 = arith.constant 0 : index
    %94 = vector.load %arg6[%c0_67, %c0_68] : memref<1x256xf32, #tpu.memory_space<vmem>>, vector<1x256xf32>
    %95 = vector.broadcast %94 : vector<1x256xf32> to vector<16x256xf32>
    %96 = arith.addf %93, %95 : vector<16x256xf32>
    %c0_69 = arith.constant 0 : index
    %c0_70 = arith.constant 0 : index
    %97 = vector.load %arg9[%c0_69, %c0_70] : memref<1x256xf32, #tpu.memory_space<vmem>>, vector<1x256xf32>
    %c0_71 = arith.constant 0 : index
    %c0_72 = arith.constant 0 : index
    %98 = vector.load %arg10[%c0_71, %c0_72] : memref<1x256xf32, #tpu.memory_space<vmem>>, vector<1x256xf32>
    %cst_73 = arith.constant dense<0.000000e+00> : vector<256xf32>
    %99 = vector.multi_reduction <add>, %96, %cst_73 [0] : vector<16x256xf32> to vector<256xf32>
    %100 = vector.shape_cast %99 : vector<256xf32> to vector<1x256xf32>
    %101 = arith.mulf %96, %96 : vector<16x256xf32>
    %cst_74 = arith.constant dense<0.000000e+00> : vector<256xf32>
    %102 = vector.multi_reduction <add>, %101, %cst_74 [0] : vector<16x256xf32> to vector<256xf32>
    %103 = vector.shape_cast %102 : vector<256xf32> to vector<1x256xf32>
    %104 = tpu.concatenate %100, %103 in 0 : vector<1x256xf32>, vector<1x256xf32> -> vector<2x256xf32>
    %c0_75 = arith.constant 0 : index
    %c0_76 = arith.constant 0 : index
    %105 = vector.load %arg11[%c0_75, %c0_76] : memref<256x256xf32, #tpu.memory_space<vmem>>, vector<256x256xf32>
    %cst_77 = arith.constant dense<0.000000e+00> : vector<2x256xf32>
    %106 = tpu.matmul %104, %105, %cst_77 {dimension_numbers = #tpu.dot_dimension_numbers<[1], [0], [0], [1], [0, 0, 1, 1], [], []>} : vector<2x256xf32>, vector<256x256xf32>, vector<2x256xf32> -> vector<2x256xf32>
    %107 = vector.extract_strided_slice %106 {offsets = [0, 0], sizes = [1, 256], strides = [1, 1]} : vector<2x256xf32> to vector<1x256xf32>
    %cst_78 = arith.constant 5.120000e+02 : f32
    %108 = vector.broadcast %cst_78 : f32 to vector<1x256xf32>
    %109 = arith.divf %107, %108 : vector<1x256xf32>
    %110 = vector.extract_strided_slice %106 {offsets = [1, 0], sizes = [1, 256], strides = [1, 1]} : vector<2x256xf32> to vector<1x256xf32>
    %cst_79 = arith.constant 5.120000e+02 : f32
    %111 = vector.broadcast %cst_79 : f32 to vector<1x256xf32>
    %112 = arith.divf %110, %111 : vector<1x256xf32>
    %113 = arith.mulf %109, %109 : vector<1x256xf32>
    %114 = arith.subf %112, %113 : vector<1x256xf32>
    %cst_80 = arith.constant 9.99999974E-6 : f32
    %115 = vector.broadcast %cst_80 : f32 to vector<1x256xf32>
    %116 = arith.addf %114, %115 : vector<1x256xf32>
    %117 = math.rsqrt %116 : vector<1x256xf32>
    %118 = vector.broadcast %109 : vector<1x256xf32> to vector<16x256xf32>
    %119 = arith.subf %96, %118 : vector<16x256xf32>
    %120 = vector.broadcast %117 : vector<1x256xf32> to vector<16x256xf32>
    %121 = arith.mulf %119, %120 : vector<16x256xf32>
    %122 = vector.broadcast %97 : vector<1x256xf32> to vector<16x256xf32>
    %123 = arith.mulf %121, %122 : vector<16x256xf32>
    %124 = vector.broadcast %98 : vector<1x256xf32> to vector<16x256xf32>
    %125 = arith.addf %123, %124 : vector<16x256xf32>
    %126 = arith.addf %125, %1 : vector<16x256xf32>
    %127 = arith.negf %126 : vector<16x256xf32>
    %128 = math.exp %127 : vector<16x256xf32>
    %cst_81 = arith.constant 1.000000e+00 : f32
    %129 = vector.broadcast %cst_81 : f32 to vector<16x256xf32>
    %130 = arith.addf %129, %128 : vector<16x256xf32>
    %131 = arith.divf %129, %130 : vector<16x256xf32>
    %132 = arith.mulf %126, %131 : vector<16x256xf32>
    %c0_82 = arith.constant 0 : index
    %c0_83 = arith.constant 0 : index
    %c0_84 = arith.constant 0 : index
    %133 = vector.load %arg12[%c0_82, %c0_83, %c0_84] : memref<1x16x256xf32, #tpu.memory_space<vmem>>, vector<1x16x256xf32>
    %134 = vector.shape_cast %133 : vector<1x16x256xf32> to vector<16x256xf32>
    %135 = vector.shape_cast %132 : vector<16x256xf32> to vector<1x16x256xf32>
    tpu.vector_store %arg12[%c0_82, %c0_83, %c0_84], %135 {strides = array<i32>} : memref<1x16x256xf32, #tpu.memory_space<vmem>>, vector<1x16x256xf32>,
    return
  }
  func.func @transform_0(%arg0: i32) -> (i32, i32, i32) {
    %c0_i32 = arith.constant 0 : i32
    %c0_i32_0 = arith.constant 0 : i32
    %c0_i32_1 = arith.constant 0 : i32
    return %arg0, %c0_i32, %c0_i32_0 : i32, i32, i32
  }
  func.func @transform_1(%arg0: i32) -> (i32, i32, i32) {
    %c0_i32 = arith.constant 0 : i32
    %c0_i32_0 = arith.constant 0 : i32
    %c0_i32_1 = arith.constant 0 : i32
    %c0_i32_2 = arith.constant 0 : i32
    return %c0_i32, %c0_i32_0, %c0_i32_1 : i32, i32, i32
  }
  func.func @transform_2(%arg0: i32) -> (i32, i32, i32) {
    %c0_i32 = arith.constant 0 : i32
    %c0_i32_0 = arith.constant 0 : i32
    %c0_i32_1 = arith.constant 0 : i32
    %c0_i32_2 = arith.constant 0 : i32
    return %c0_i32, %c0_i32_0, %c0_i32_1 : i32, i32, i32
  }
  func.func @transform_3(%arg0: i32) -> (i32, i32) {
    %c0_i32 = arith.constant 0 : i32
    %c0_i32_0 = arith.constant 0 : i32
    %c0_i32_1 = arith.constant 0 : i32
    return %c0_i32, %c0_i32_0 : i32, i32
  }
  func.func @transform_4(%arg0: i32) -> (i32, i32) {
    %c0_i32 = arith.constant 0 : i32
    %c0_i32_0 = arith.constant 0 : i32
    %c0_i32_1 = arith.constant 0 : i32
    return %c0_i32, %c0_i32_0 : i32, i32
  }
  func.func @transform_5(%arg0: i32) -> (i32, i32) {
    %c0_i32 = arith.constant 0 : i32
    %c0_i32_0 = arith.constant 0 : i32
    %c0_i32_1 = arith.constant 0 : i32
    return %c0_i32, %c0_i32_0 : i32, i32
  }
  func.func @transform_6(%arg0: i32) -> (i32, i32) {
    %c0_i32 = arith.constant 0 : i32
    %c0_i32_0 = arith.constant 0 : i32
    %c0_i32_1 = arith.constant 0 : i32
    return %c0_i32, %c0_i32_0 : i32, i32
  }
  func.func @transform_7(%arg0: i32) -> (i32, i32) {
    %c0_i32 = arith.constant 0 : i32
    %c0_i32_0 = arith.constant 0 : i32
    %c0_i32_1 = arith.constant 0 : i32
    return %c0_i32, %c0_i32_0 : i32, i32
  }
  func.func @transform_8(%arg0: i32) -> (i32, i32) {
    %c0_i32 = arith.constant 0 : i32
    %c0_i32_0 = arith.constant 0 : i32
    %c0_i32_1 = arith.constant 0 : i32
    return %c0_i32, %c0_i32_0 : i32, i32
  }
  func.func @transform_9(%arg0: i32) -> (i32, i32) {
    %c0_i32 = arith.constant 0 : i32
    %c0_i32_0 = arith.constant 0 : i32
    %c0_i32_1 = arith.constant 0 : i32
    return %c0_i32, %c0_i32_0 : i32, i32
  }
  func.func @transform_10(%arg0: i32) -> (i32, i32) {
    %c0_i32 = arith.constant 0 : i32
    %c0_i32_0 = arith.constant 0 : i32
    %c0_i32_1 = arith.constant 0 : i32
    return %c0_i32, %c0_i32_0 : i32, i32
  }
  func.func @transform_11(%arg0: i32) -> (i32, i32, i32) {
    %c0_i32 = arith.constant 0 : i32
    %c0_i32_0 = arith.constant 0 : i32
    %c0_i32_1 = arith.constant 0 : i32
    return %arg0, %c0_i32, %c0_i32_0 : i32, i32, i32
  }
}

</mosaic_0001>

<bundles_post_ra>
// kernel: tpu_custom_call.1
= control target key start
LH: loop header
LB: loop body
LE: loop exit
PB: predicated region body
PF: predicated region fallthrough
CT: control target
= control target key end

     0   :  { %s6186_s0 = inlined_call_operand.hbm [shape: f32[2,16,256], index: 0, kind: input, shape index: {}]   ;;  %s6187_s1 = inlined_call_operand.hbm [shape: bf16[3,288,512], index: 1, kind: input, shape index: {}]   ;;  %s6188_s2 = inlined_call_operand.hbm [shape: bf16[3,288,256], index: 2, kind: input, shape index: {}]   ;;  %s6189_s3 = inlined_call_operand.vmem [shape: f32[1,256], index: 3, kind: input, shape index: {}]   ;;  %s6190_s4 = inlined_call_operand.vmem [shape: f32[1,256], index: 4, kind: input, shape index: {}]   ;;  %s6191_s5 = inlined_call_operand.vmem [shape: f32[1,256], index: 5, kind: input, shape index: {}]   ;;  %s6192_s6 = inlined_call_operand.vmem [shape: f32[1,256], index: 6, kind: input, shape index: {}]   ;;  %s6193_s7 = inlined_call_operand.vmem [shape: f32[1,256], index: 7, kind: input, shape index: {}]   ;;  %s6194_s8 = inlined_call_operand.vmem [shape: f32[1,256], index: 8, kind: input, shape index: {}]   ;;  %s6195_s9 = inlined_call_operand.vmem [shape: f32[1,256], index: 9, kind: input, shape index: {}]   ;;  %s6196_s10 = inlined_call_operand.hbm [shape: f32[256,256], index: 10, kind: input, shape index: {}]   ;;  %s6197_s11 = inlined_call_operand.hbm [shape: f32[2,16,256], index: 11, kind: output, shape index: {}]  }
   0x1   :  { %6208 = sst [smem:[#allocation18_spill]] %s6187_s1 }
   0x2   :  { %6209 = sst [smem:[#allocation19_spill]] %s6194_s8 }
   0x3   :  { %6210 = sst [smem:[#allocation20_spill]] %s6195_s9 }
   0x4   :  { %6211 = sst [smem:[#allocation21_spill]] %s6197_s11 }
   0x5   :  { %16 = vsyncpa [#allocation4], 0 }
   0x6   :  { %18 = vsyncpa [#allocation4 + $0x1], 0 }
   0x7   :  { %19 = vsyncpa [#allocation7], 0 }
   0x8   :  { %20 = vsyncpa [#allocation10], 0 }
   0x9   :  { %21 = vsyncpa [#allocation5], 0 }
   0xa   :  { %23 = vsyncpa [#allocation5 + $0x1], 0  ;;  %s5640_s17 = smov 0   ;;  %s5642_s18 = smov 0  }
   0xb   :  { %s5644_s19 = smov 0   ;;  %s5646_s20 = smov 0  }
   0xc LB: > { %6212 = sst [smem:[#allocation16_spill]] %s5553_s17  ;;  %s5661_s21 = sadd.s32 4294967295, %s5565_s20   ;;  %s5565_s20 = sphi %s5646_s20, %s6242_s20   ;;  %s5561_s19 = sphi %s5644_s19, %s6241_s19   ;;  %s5557_s18 = sphi %s5642_s18, %s6240_s18   ;;  %s5553_s17 = sphi %s5640_s17, %s6239_s17  }
   0xd   : > { %s4211_s22 = sadd.s32 4294967294, %s5565_s20   ;;  %p49_p0 = scmp.ne.s32.totalorder %s5557_s18, %s5553_s17 }
   0xe   : > { %p6198_p1 = scmp.eq.s32.totalorder %s5661_s21, 0  ;;  %p289_p3 = scmp.eq.s32.totalorder %s4211_s22, 1 }
   0xf   : > { %p4212_p5 = scmp.ge.s32.totalorder %s5565_s20, 1  ;;  %p296_p7 = scmp.lt.s32.totalorder %s5565_s20, 3 }
  0x10   : > { %p5670_p4 = por %p6198_p1, %p49_p0  ;;  %p5675_p6 = por %p289_p3, %p49_p0 }
  0x11   : > { %p5680_p8 = pnand %p4212_p5, %p296_p7  ;;  %s5567_s26 = smov [#allocation6]  }
  0x12   : > { %s6213_s23 = scalar_select %p5670_p4, 1, 0 }
  0x13   : > { %s6214_s24 = scalar_select %p5675_p6, 1, 0 }
  0x14   : > { %s6216_s25 = scalar_select %p5680_p8, 1, 0 }
  0x15   : > { %6215 = sst [smem:[#allocation17_spill]] %s6214_s24  ;;  %s308_s27 = sshll.u32 %s5567_s26, 4  ;;  %s5684_s27 = int_to_ptr.vmem [resolvable:$true] %s308_s27 }
  0x16   : > { %p4778_p9 = pneg %p5680_p8  ;;  %s5568_s29 = smov [#allocation8]  }
  0x17   : > { %s321_s30 = sshll.u32 %s5568_s29, 4  ;;  %s6218_s1 = sld [smem:[#allocation18_spill]]  ;;  %s5695_s30 = int_to_ptr.vmem [resolvable:$true] %s321_s30 }
  0x18   : > { %p5691_p11 = pnand %p4778_p9, %p6198_p1 }
  0x1a   : > { %p5705_p13 = pneg %p5691_p11 }
  0x1d   : > { %s5377_s14 = scalar_lea.hbm %s6218_s1, 27648 }
  0x1e   : > { %p5378_p12 = scmp.ne.s32.totalorder %s6218_s1, %s5377_s14  ;;  %p5384_p5 = scmp.lt.u32.totalorder %s5377_s14, %s6218_s1 }
  0x20   : > { %p5380_p0 = pnand %p5705_p13, %p5378_p12 }
  0x22   : > { %p5381_p3 = pneg %p5380_p0 }
  0x24   : > { %p5386_p7 = pnand %p5384_p5, %p5381_p3 }
  0x26   : > { %5389 = shalt.err (!%p5386_p7)
}
  0x27   : > { %s5390_s12 = scalar_lea.vmem %s5684_s27, 27648  ;;  %p5398_p2 = scmp.lt.s32.totalorder %s5684_s27, %s5684_s27 }
  0x28   : > { %p5391_p9 = scmp.ne.s32.totalorder %s5684_s27, %s5390_s12  ;;  %p5399_p6 = scmp.lt.s32.totalorder %s5390_s12, %s5390_s12 }
  0x2a   : > { %p5393_p10 = pnand %p5391_p9, %p5705_p13  ;;  %p5400_p12 = por %p5399_p6, %p5398_p2 }
  0x2c   : > { %p5394_p1 = pneg %p5393_p10 }
  0x2e   : > { %p5401_p0 = pnand %p5400_p12, %p5394_p1 }
  0x30   : > { %5404 = shalt.err (!%p5401_p0)
}
  0x31   : > { %s6202_s13 = smov 256   ;;  %s6204_s14 = smov 16  }
  0x32   : > { %4781 = dma.hbm_to_vmem [thread:$0]  (!%p5691_p11), %s6218_s1, 27648, %s5684_s27, [#allocation7], %s6202_s13, %s6202_s13, %s6204_s14  }
  0x33   : > { %s5405_s12 = scalar_lea.hbm %s6188_s2, 13824 }
  0x34   : > { %p5406_p1 = scmp.ne.s32.totalorder %s6188_s2, %s5405_s12  ;;  %p5412_p10 = scmp.lt.u32.totalorder %s5405_s12, %s6188_s2 }
  0x36   : > { %p5408_p2 = pnand %p5406_p1, %p5705_p13 }
  0x38   : > { %p5409_p6 = pneg %p5408_p2 }
  0x3a   : > { %p5414_p3 = pnand %p5412_p10, %p5409_p6 }
  0x3c   : > { %5417 = shalt.err (!%p5414_p3)
}
  0x3d   : > { %s5418_s27 = scalar_lea.vmem %s5695_s30, 13824  ;;  %p5426_p12 = scmp.lt.s32.totalorder %s5695_s30, %s5695_s30 }
  0x3e   : > { %p5419_p5 = scmp.ne.s32.totalorder %s5695_s30, %s5418_s27  ;;  %p5427_p0 = scmp.lt.s32.totalorder %s5418_s27, %s5418_s27 }
  0x40   : > { %p5421_p7 = pnand %p5419_p5, %p5705_p13  ;;  %p5428_p1 = por %p5427_p0, %p5426_p12 }
  0x42   : > { %p5422_p9 = pneg %p5421_p7 }
  0x44   : > { %p5429_p2 = pnand %p5428_p1, %p5422_p9 }
  0x46   : > { %5432 = shalt.err (!%p5429_p2)
}
  0x47   : > { %s5571_s17 = smov 128   ;;  %s5572_s9 = smov 8  }
  0x48   : > { %4784 = dma.hbm_to_vmem [thread:$0]  (!%p5691_p11), %s6188_s2, 13824, %s5695_s30, [#allocation7], %s5571_s17, %s5571_s17, %s5572_s9  }
  0x49   : > { %s5573_s15 = smov [#allocation9]   ;;  %s5753_s26 = sadd.s32 1, %s5565_s20  }
  0x4a   : > { %s355_s16 = sshll.u32 %s5573_s15, 4  ;;  %s5433_s27 = scalar_lea.hbm %s6196_s10, 8192  ;;  %s356_s16 = int_to_ptr.vmem [resolvable:$true] %s355_s16 }
  0x4b   : > { %p5434_p6 = scmp.ne.s32.totalorder %s6196_s10, %s5433_s27  ;;  %p5440_p5 = scmp.lt.u32.totalorder %s5433_s27, %s6196_s10 }
  0x4d   : > { %p5436_p10 = pnand %p5434_p6, %p5705_p13 }
  0x4f   : > { %p5437_p3 = pneg %p5436_p10 }
  0x51   : > { %p5442_p7 = pnand %p5440_p5, %p5437_p3 }
  0x53   : > { %5445 = shalt.err (!%p5442_p7)
}
  0x54   : > { %s5446_s30 = scalar_lea.vmem %s356_s16, 8192  ;;  %p5454_p1 = scmp.lt.s32.totalorder %s356_s16, %s356_s16 }
  0x55   : > { %p5447_p9 = scmp.ne.s32.totalorder %s356_s16, %s5446_s30  ;;  %p5455_p2 = scmp.lt.s32.totalorder %s5446_s30, %s5446_s30 }
  0x57   : > { %p5449_p12 = pnand %p5447_p9, %p5705_p13  ;;  %p5456_p4 = por %p5455_p2, %p5454_p1 }
  0x59   : > { %p5450_p0 = pneg %p5449_p12 }
  0x5b   : > { %p5457_p8 = pnand %p5456_p4, %p5450_p0 }
  0x5d   : > { %5460 = shalt.err (!%p5457_p8)
}
  0x5e   : > { %s6220_s13 = smov 16   ;;  %s6221_s14 = smov 256  }
  0x5f   : > { %4787 = dma.hbm_to_vmem [thread:$0]  (!%p5691_p11), %s6196_s10, 8192, %s356_s16, [#allocation10], %s6221_s14, %s6221_s14, %s6220_s13  }
  0x60   : > { %s33_s22 = ssub.s32 %s5565_s20, %s5753_s26  ;;  %s36_s28 = sadd.s32 1, %s5561_s19 }
  0x61   : > { %p34_p4 = scmp.eq.s32.totalorder %s33_s22, 0  ;;  %p43_p8 = scmp.ne.s32.totalorder %s5561_s19, %s5557_s18 }
  0x62   : > { %p44_p13 = scmp.eq.s32.totalorder %s5565_s20, 0  ;;  %p4799_p6 = scmp.lt.s32.totalorder %s5565_s20, 2 }
  0x63   : > { %s5784_s17 = scalar_select %p34_p4, %s5561_s19, %s36_s28  }
  0x64   : > { %p45_p10 = por %p44_p13, %p43_p8  ;;  %p6222_p3 = scmp.eq.s32.totalorder %s5661_s21, 1 }
  0x65   : > { %s369_s11 = sand.u32 1, %s5561_s19   ;;  %s4572_s24 = sshll.u32 %s5565_s20, 9 }
  0x66   : > { %p5788_p5 = por %p6222_p3, %p43_p8  ;;  %s4217_s15 = sshll.u32 %s369_s11, 5 }
  0x67   : > { %s5797_s16 = scalar_lea.hbm %s6186_s0, %s4572_s24  ;;  %s373_s27 = scalar_lea.vmem [#allocation3], %s4217_s15 }
  0x68   : > { %s380_s30 = sshll.u32 %s373_s27, 4  ;;  %p5799_p11 = pnand %p4799_p6, %p45_p10  ;;  %s5803_s30 = int_to_ptr.vmem [resolvable:$true] %s380_s30 }
  0x69   : > { %s5805_s8 = scalar_lea.sflag [#allocation4], %s369_s11  ;;  %s5461_s22 = scalar_lea.hbm %s5797_s16, 512 }
  0x6a   : > { %p5462_p7 = scmp.ne.s32.totalorder %s5797_s16, %s5461_s22  ;;  %p5463_p9 = pneg %p5799_p11 }
  0x6b   : > { %s5466_s15 = scalar_lea.hbm %s6186_s0, 1024  ;;  %p5467_p1 = scmp.lt.u32.totalorder %s5797_s16, %s6186_s0 }
  0x6c   : > { %p5464_p12 = pnand %p5463_p9, %p5462_p7  ;;  %p5468_p2 = scmp.lt.u32.totalorder %s5466_s15, %s5461_s22 }
  0x6d   : > { %p5470_p8 = scmp.lt.u32.totalorder %s5461_s22, %s5797_s16 }
  0x6e   : > { %p5465_p0 = pneg %p5464_p12  ;;  %p5469_p4 = por %p5468_p2, %p5467_p1 }
  0x70   : > { %p5471_p13 = por %p5470_p8, %p5469_p4 }
  0x72   : > { %p5472_p6 = pnand %p5471_p13, %p5465_p0 }
  0x74   : > { %5475 = shalt.err (!%p5472_p6)
}
  0x75   : > { %s5476_s11 = scalar_lea.vmem %s5803_s30, 512  ;;  %s5574_s27 = smov [#allocation3]  }
  0x76   : > { %p5477_p10 = scmp.ne.s32.totalorder %s5803_s30, %s5476_s11  ;;  %s5481_s28 = sshll.u32 %s5574_s27, 4  ;;  %s5482_s28 = int_to_ptr.vmem [resolvable:$false] %s5481_s28 }
  0x77   : > { %s5483_s24 = scalar_lea.vmem %s5482_s28, 1024  ;;  %p5484_p12 = scmp.lt.s32.totalorder %s5803_s30, %s5482_s28 }
  0x78   : > { %p5479_p3 = pnand %p5477_p10, %p5463_p9  ;;  %p5485_p1 = scmp.lt.s32.totalorder %s5483_s24, %s5476_s11 }
  0x7a   : > { %p5480_p7 = pneg %p5479_p3  ;;  %p5486_p2 = por %p5485_p1, %p5484_p12 }
  0x7c   : > { %p5487_p4 = pnand %p5486_p2, %p5480_p7 }
  0x7e   : > { %5490 = shalt.err (!%p5487_p4)
}
  0x7f   : > { %4791 = dma.hbm_to_vmem [thread:$0]  (!%p5799_p11), %s5797_s16, 512, %s5803_s30, %s5805_s8, %s6221_s14, %s6221_s14, %s6220_s13  }
  0x80   : > { %p6225_p9 = scmp.ne.s32.totalorder %s6216_s25, 0 }
  0x81   : > { %s5839_s22 = sand.u32 (!%p6225_p9), 1, %s5557_s18   ;;  %p6226_p0 = scmp.ne.s32.totalorder (!%p6225_p9), %s6213_s23, 0 }
  0x82   : > { %392 = sbr.rel (%p6225_p9) target bundleno = 1835 (0x72b), region = 64  ;;  %s4221_s15 = sshll.u32 (!%p6225_p9), %s5839_s22, 5 }
  0x83   : > { %s395_s29 = scalar_lea.sflag (!%p6225_p9), [#allocation4], %s5839_s22  ;;  %s5845_s1 = scalar_lea.vmem (!%p6225_p9), [#allocation3], %s4221_s15 }
  0x89   : > { %5536 = dma.done.wait (%p6226_p0), %s395_s29, 512  }
  0x8a   : > { %5538 = vsyncadd (%p6226_p0), %s395_s29, 4294966784  ;;  %p6227_p11 = scmp.eq.s32.totalorder %s5661_s21, 0 }
  0x8c   : > { %5540 = dma.done.wait (%p6227_p11), [#allocation7], 41472   ;;  %p6228_p8 = pmov %p6227_p11 }
  0x8e   : > { %5542 = vsyncadd (%p6228_p8), [#allocation7], 4294925824  ;;  %p6229_p13 = pmov %p6228_p8 }
  0x8f   : > { %p6230_p6 = pmov %p6228_p8 }
  0x90   : > { %5544 = dma.done.wait (%p6229_p13), [#allocation10], 8192  }
  0x91   : > { %5546 = vsyncadd (%p6230_p6), [#allocation10], 4294959104  ;;  %v454_v0 = vlaneseq  ;;  %vm463_vm0 = vcmask 130049   ;;  %v5575_v1 = vmov 0.0   ;;  %vm465_vm1 = vcmask 130048   ;;  %v450_v2 = vld [vmem:[%s5845_s1] sm:$0xff] }
  0x92   : > { %464 = vst.msk [vmem:[#allocation2] sm:$0xfe] %vm463_vm0, %v5575_v1  ;;  %vm469_vm2 = vcmask 261249   ;;  %vm471_vm4 = vcmask 261248   ;;  %vm467_vm5 = vcmask 122880   ;;  %vm473_vm6 = vcmask 254080  }
  0x93   : > { %vm456_vm3 = vcmp.lt.s32.totalorder %v454_v0, 288  ;;  %466 = vst.msk [vmem:[#allocation2 + $0x18] sm:$0xff] %vm465_vm1, %v5575_v1  ;;  %v452_v3 = vld [vmem:[%s5845_s1 + $0x10] sm:$0xff]  ;;  %vm479_vm7 = vcmask 1040384   ;;  %v451_v4 = vld [vmem:[%s5845_s1 + $0x8] sm:$0xff]  ;;  %v480_v5 = vrot.slane %v450_v2, 7 }
  0x94   : > { %470 = vst.msk [vmem:[#allocation2 + $0x10] sm:$0xfe] %vm469_vm2, %v5575_v1  ;;  %v482_v6 = vrot.slane %v452_v3, 7  ;;  %v481_v7 = vrot.slane %v451_v4, 7  ;;  %v453_v8 = vld [vmem:[%s5845_s1 + $0x18] sm:$0xff]  ;;  %v5576_v9 = vmov 0  }
  0x95   : > { %458 = vst.msk [vmem:[#allocation2] ss:$8 sm:$0x7] %vm456_vm3, %v5575_v1  ;;  %461 = vst.msk [vmem:[#allocation2 + $0x31] ss:$8 sm:$0x7] %vm456_vm3, %v5575_v1  ;;  %1166 = vmatprep.mubr.bf16.mxu1 %v5576_v9 }
  0x96   : > { %472 = vst.msk [vmem:[#allocation2 + $0x28] sm:$0xff] %vm471_vm4, %v5575_v1  ;;  %v484_v10 = vrot.slane %v453_v8, 7  ;;  %v4847_v11 = vld [vmem:[#allocation6 + $0x244] ss:$16 sps:$4 sm:$0xff]   ;;  %v4849_v12 = vld [vmem:[#allocation6 + $0x240] ss:$16 sps:$4 sm:$0xff]   ;;  %v483_v13 = vsel %vm479_vm7, %v480_v5, %v482_v6 }
  0x97   : > { %468 = vst.msk [vmem:[#allocation2 + $0x30] sm:$0x1] %vm467_vm5, %v5575_v1  ;;  %s5577_s23 = smov 16   ;;  %v4850_v14 = vld [vmem:[#allocation6 + $0x264] ss:$16 sps:$4 sm:$0xff]   ;;  %1091 = vmatprep.subr.bf16.mxu0 %v4847_v11  ;;  %vm510_vm8 = vcmask 1047681  }
  0x98   : > { %474 = vst.msk [vmem:[#allocation2 + $0x40] sm:$0x1] %vm473_vm6, %v5575_v1  ;;  %486 = vrot.lane.b32.xlu0 %v480_v5, %s5577_s23  ;;  %490 = vrot.lane.b32.xlu1 %v483_v13, %s5577_s23  ;;  %v485_v15 = vsel %vm479_vm7, %v481_v7, %v484_v10  ;;  %v4852_v16 = vld [vmem:[#allocation6 + $0x260] ss:$16 sps:$4 sm:$0xff]   ;;  %v4853_v17 = vld [vmem:[#allocation6 + $0x284] ss:$16 sps:$4 sm:$0xff]  }
  0x99   : > { %1092 = vmatpush1.bf16.msra.mxu0 %v4849_v12  ;;  %v4855_v18 = vld [vmem:[#allocation6 + $0x280] ss:$16 sps:$4 sm:$0xff]   ;;  %v4856_v19 = vld [vmem:[#allocation6 + $0x2a4] ss:$16 sps:$4 sm:$0xff]   ;;  %v4903_v32 = vld [vmem:[#allocation6 + $0x44c] ss:$16 sps:$4 sm:$0xff]  }
  0x9a   : > { %1093 = vmatprep.subr.bf16.mxu0 %v4850_v14  ;;  %v4858_v20 = vld [vmem:[#allocation6 + $0x2a0] ss:$16 sps:$4 sm:$0xff]   ;;  %v4859_v21 = vld [vmem:[#allocation6 + $0x2c4] ss:$16 sps:$4 sm:$0xff]   ;;  %v4906_v50 = vld [vmem:[#allocation6 + $0x24c] ss:$16 sps:$4 sm:$0xff]  }
  0x9b   : > { %v4861_v22 = vld [vmem:[#allocation6 + $0x2c0] ss:$16 sps:$4 sm:$0xff]   ;;  %v4862_v23 = vld [vmem:[#allocation6 + $0x2e4] ss:$16 sps:$4 sm:$0xff]   ;;  %vm514_vm9 = vcmask 1047680   ;;  %vm518_vm10 = vcmask 1040512  }
  0x9c   : > { %488 = vrot.lane.b32.xlu0 %v481_v7, %s5577_s23  ;;  %492 = vrot.lane.b32.xlu1 %v485_v15, %s5577_s23  ;;  %v4864_v24 = vld [vmem:[#allocation6 + $0x2e0] ss:$16 sps:$4 sm:$0xff]   ;;  %v4889_v25 = vld [vmem:[#allocation6 + $0x444] ss:$16 sps:$4 sm:$0xff]   ;;  %vm688_vm11 = vsmask.f32 7424 }
  0x9d   : > { %1094 = vmatpush1.bf16.msra.mxu0 %v4852_v16  ;;  %v4891_v26 = vld [vmem:[#allocation6 + $0x440] ss:$16 sps:$4 sm:$0xff]   ;;  %v4865_v27 = vld [vmem:[#allocation6 + $0x304] ss:$16 sps:$4 sm:$0xff]   ;;  %1134 = vmatprep.subr.bf16.mxu1 %v4889_v25  ;;  %vm1087_vm12 = vcmask 261120   ;;  %vm1889_vm13 = vcmask 1046528  }
  0x9e   : > { %1095 = vmatprep.subr.bf16.mxu0 %v4853_v17  ;;  %1135 = vmatpush1.bf16.msra.mxu1 %v4891_v26  ;;  %v4895_v28 = vld [vmem:[#allocation6 + $0x464] ss:$16 sps:$4 sm:$0xff]   ;;  %v4897_v29 = vld [vmem:[#allocation6 + $0x460] ss:$16 sps:$4 sm:$0xff]   ;;  %s6231_s25 = sld [smem:[#allocation19_spill]]  ;;  %s6232_s16 = sld [smem:[#allocation20_spill]] }
  0x9f   : > { %v4867_v30 = vld [vmem:[#allocation6 + $0x300] ss:$16 sps:$4 sm:$0xff]   ;;  %1136 = vmatprep.subr.bf16.mxu1 %v4895_v28  ;;  %v4868_v31 = vld [vmem:[#allocation6 + $0x324] ss:$16 sps:$4 sm:$0xff]   ;;  %s448_s30 = scalar_lea.vmem [#allocation11], %s4221_s15  ;;  %s6233_s27 = sld [smem:[#allocation21_spill]] }
  0xa0   : > { %494 = vrot.lane.b32.xlu0 %v482_v6, %s5577_s23  ;;  %496 = vrot.lane.b32.xlu1 %v484_v10, %s5577_s23  ;;  %v4870_v33 = vld [vmem:[#allocation6 + $0x320] ss:$16 sps:$4 sm:$0xff]   ;;  %v4871_v34 = vld [vmem:[#allocation6 + $0x344] ss:$16 sps:$4 sm:$0xff]   ;;  %s4109_s8 = sshll.u32 %s448_s30, 4  ;;  %s5578_s24 = smov [#allocation11]   ;;  %s6141_s8 = int_to_ptr.vmem [resolvable:$true] %s4109_s8 }
  0xa1   : > { %1096 = vmatpush1.bf16.msra.mxu0 %v4855_v18  ;;  %v4873_v35 = vld [vmem:[#allocation6 + $0x340] ss:$16 sps:$4 sm:$0xff]   ;;  %v4874_v36 = vld [vmem:[#allocation6 + $0x364] ss:$16 sps:$4 sm:$0xff]   ;;  %s5491_s15 = scalar_lea.vmem %s6141_s8, 512  ;;  %s5495_s29 = sshll.u32 %s5578_s24, 4  ;;  %s5496_s29 = int_to_ptr.vmem [resolvable:$false] %s5495_s29 }
  0xa2   : > { %1097 = vmatprep.subr.bf16.mxu0 %v4856_v19  ;;  %1137 = vmatpush1.bf16.msra.mxu1 %v4897_v29  ;;  %v4876_v37 = vld [vmem:[#allocation6 + $0x360] ss:$16 sps:$4 sm:$0xff]   ;;  %v4877_v38 = vld [vmem:[#allocation6 + $0x384] ss:$16 sps:$4 sm:$0xff]   ;;  %p5492_p10 = scmp.ne.s32.totalorder %s6141_s8, %s5491_s15  ;;  %p5498_p12 = scmp.lt.s32.totalorder %s6141_s8, %s5496_s29 }
  0xa3   : > { %1220 = vmatprep.subr.bf16.mxu1 %v4903_v32  ;;  %v4879_v39 = vld [vmem:[#allocation6 + $0x380] ss:$16 sps:$4 sm:$0xff]   ;;  %v4880_v40 = vld [vmem:[#allocation6 + $0x3a4] ss:$16 sps:$4 sm:$0xff]   ;;  %v4904_v32 = vld [vmem:[#allocation6 + $0x248] ss:$16 sps:$4 sm:$0xff]  }
  0xa4   : > { %v4882_v41 = vld [vmem:[#allocation6 + $0x3a0] ss:$16 sps:$4 sm:$0xff]   ;;  %v4883_v42 = vld [vmem:[#allocation6 + $0x3c4] ss:$16 sps:$4 sm:$0xff]   ;;  %p5493_p3 = pnand %p5492_p10, %p5788_p5 }
  0xa5   : > { %1098 = vmatpush1.bf16.msra.mxu0 %v4858_v20  ;;  %v4885_v43 = vld [vmem:[#allocation6 + $0x3c0] ss:$16 sps:$4 sm:$0xff]   ;;  %v4886_v44 = vld [vmem:[#allocation6 + $0x3e4] ss:$16 sps:$4 sm:$0xff]  }
  0xa6   : > { %1099 = vmatprep.subr.bf16.mxu0 %v4859_v21  ;;  %v4888_v45 = vld [vmem:[#allocation6 + $0x3e0] ss:$16 sps:$4 sm:$0xff]   ;;  %v4892_v46 = vld [vmem:[#allocation6 + $0x404] ss:$16 sps:$4 sm:$0xff]   ;;  %p5494_p7 = pneg %p5493_p3 }
  0xa7   : > { %v4894_v47 = vld [vmem:[#allocation6 + $0x400] ss:$16 sps:$4 sm:$0xff]   ;;  %v4898_v48 = vld [vmem:[#allocation6 + $0x424] ss:$16 sps:$4 sm:$0xff]  }
  0xa8   : > { %v4900_v49 = vld [vmem:[#allocation6 + $0x420] ss:$16 sps:$4 sm:$0xff]  }
  0xa9   : > { %1100 = vmatpush1.bf16.msra.mxu0 %v4861_v22 }
  0xaa   : > { %1101 = vmatprep.subr.bf16.mxu0 %v4862_v23  ;;  %v4901_v23 = vld [vmem:[#allocation6 + $0x448] ss:$16 sps:$4 sm:$0xff]  }
  0xad   : > { %1102 = vmatpush1.bf16.msra.mxu0 %v4864_v24 }
  0xae   : > { %1103 = vmatprep.subr.bf16.mxu0 %v4865_v27 }
  0xb1   : > { %1104 = vmatpush1.bf16.msra.mxu0 %v4867_v30  ;;  %v4909_v30 = vld [vmem:[#allocation6 + $0x46c] ss:$16 sps:$4 sm:$0xff]  }
  0xb2   : > { %1105 = vmatprep.subr.bf16.mxu0 %v4868_v31 }
  0xb5   : > { %1106 = vmatpush1.bf16.msra.mxu0 %v4870_v33 }
  0xb6   : > { %1107 = vmatprep.subr.bf16.mxu0 %v4871_v34  ;;  %v4912_v34 = vld [vmem:[#allocation6 + $0x26c] ss:$16 sps:$4 sm:$0xff]  }
  0xb9   : > { %1108 = vmatpush1.bf16.msra.mxu0 %v4873_v35 }
  0xba   : > { %1109 = vmatprep.subr.bf16.mxu0 %v4874_v36 }
  0xbd   : > { %1110 = vmatpush1.bf16.msra.mxu0 %v4876_v37  ;;  %v4907_v37 = vld [vmem:[#allocation6 + $0x468] ss:$16 sps:$4 sm:$0xff]  }
  0xbe   : > { %1111 = vmatprep.subr.bf16.mxu0 %v4877_v38  ;;  %v4910_v38 = vld [vmem:[#allocation6 + $0x268] ss:$16 sps:$4 sm:$0xff]  }
  0xc1   : > { %1112 = vmatpush1.bf16.msra.mxu0 %v4879_v39  ;;  %v4915_v39 = vld [vmem:[#allocation6 + $0x204] ss:$16 sps:$4 sm:$0xff]  }
  0xc2   : > { %1113 = vmatprep.subr.bf16.mxu0 %v4880_v40  ;;  %v4918_v40 = vld [vmem:[#allocation6 + $0x28c] ss:$16 sps:$4 sm:$0xff]  }
  0xc5   : > { %1114 = vmatpush1.bf16.msra.mxu0 %v4882_v41  ;;  %v4913_v41 = vld [vmem:[#allocation6 + $0x200] ss:$16 sps:$4 sm:$0xff]  }
  0xc6   : > { %1115 = vmatprep.subr.bf16.mxu0 %v4883_v42  ;;  %v4916_v42 = vld [vmem:[#allocation6 + $0x288] ss:$16 sps:$4 sm:$0xff]  }
  0xc9   : > { %1116 = vmatpush1.bf16.msra.mxu0 %v4885_v43  ;;  %v4921_v43 = vld [vmem:[#allocation6 + $0x224] ss:$16 sps:$4 sm:$0xff]  }
  0xca   : > { %1117 = vmatprep.subr.bf16.mxu0 %v4886_v44  ;;  %v4919_v44 = vld [vmem:[#allocation6 + $0x220] ss:$16 sps:$4 sm:$0xff]  }
  0xcd   : > { %1118 = vmatpush1.bf16.msra.mxu0 %v4888_v45  ;;  %v4924_v45 = vld [vmem:[#allocation6 + $0x2ac] ss:$16 sps:$4 sm:$0xff]  }
  0xce   : > { %1119 = vmatprep.subr.bf16.mxu0 %v4892_v46  ;;  %v4922_v46 = vld [vmem:[#allocation6 + $0x2a8] ss:$16 sps:$4 sm:$0xff]  }
  0xd1   : > { %1120 = vmatpush1.bf16.msra.mxu0 %v4894_v47  ;;  %v4927_v47 = vld [vmem:[#allocation6 + $0xc] ss:$16 sps:$4 sm:$0xff]  }
  0xd2   : > { %1121 = vmatprep.subr.bf16.mxu0 %v4898_v48 }
  0xd5   : > { %1122 = vmatpush1.bf16.msra.mxu0 %v4900_v49  ;;  %v4930_v49 = vld [vmem:[#allocation6 + $0x2cc] ss:$16 sps:$4 sm:$0xff]  }
  0xd6   : > { %1177 = vmatprep.subr.bf16.mxu0 %v4906_v50 }
 0x10a   : > { %v487_v51 = vpop.permute.xlu0 %486  ;;  %v491_v52 = vpop.permute.xlu1 %490 }
 0x10b   : > { %511 = vst.msk [vmem:[#allocation2] sm:$0xfe] %vm510_vm8, %v487_v51 }
 0x10c   : > { %515 = vst.msk [vmem:[#allocation2 + $0x18] sm:$0xff] %vm514_vm9, %v491_v52 }
 0x10e   : > { %v489_v53 = vpop.permute.xlu0 %488  ;;  %v493_v55 = vpop.permute.xlu1 %492 }
 0x10f   : > { %v498_v54 = vsel %vm465_vm1, %v487_v51, %v489_v53  ;;  %513 = vst.msk [vmem:[#allocation2 + $0x10] sm:$0xfe] %vm463_vm0, %v489_v53  ;;  %v5888_v63 = vsel %vm465_vm1, %v491_v52, %v493_v55  ;;  %v4925_v51 = vld [vmem:[#allocation6 + $0x8] ss:$16 sps:$4 sm:$0xff]  }
 0x110   : > { %512 = vst [vmem:[#allocation2 + $0x8] sm:$0xfe] %v498_v54  ;;  %517 = vst.msk [vmem:[#allocation2 + $0x28] sm:$0xff] %vm465_vm1, %v493_v55  ;;  %v4928_v52 = vld [vmem:[#allocation6 + $0x2c8] ss:$16 sps:$4 sm:$0xff]  }
 0x111   : > { %v4933_v54 = vld [vmem:[#allocation6 + $0x2c] ss:$16 sps:$4 sm:$0xff]  }
 0x112   : > { %v495_v56 = vpop.permute.xlu0 %494  ;;  %v497_v57 = vpop.permute.xlu1 %496  ;;  %v603_v59 = vld [vmem:[#allocation2] sm:$0xfe] }
 0x113   : > { %519 = vst.msk [vmem:[#allocation2 + $0x30] sm:$0x1] %vm518_vm10, %v495_v56  ;;  %v5882_v58 = vld [vmem:[#allocation2 + $0x18] sm:$0xff]  ;;  %v500_v60 = vsel %vm465_vm1, %v495_v56, %v497_v57  ;;  %v4936_v56 = vld [vmem:[#allocation6 + $0x2ec] ss:$16 sps:$4 sm:$0xff]  }
 0x114   : > { %521 = vst.msk [vmem:[#allocation2 + $0x40] sm:$0x1] %vm467_vm5, %v497_v57  ;;  %520 = vst [vmem:[#allocation2 + $0x38] sm:$0x1] %v500_v60  ;;  %v609_v62 = vpack.c.bf16 %v5882_v58, %v603_v59  ;;  %v4931_v57 = vld [vmem:[#allocation6 + $0x28] ss:$16 sps:$4 sm:$0xff]  }
 0x115   : > { %v4934_v59 = vld [vmem:[#allocation6 + $0x2e8] ss:$16 sps:$4 sm:$0xff]   ;;  %v4939_v60 = vld [vmem:[#allocation6 + $0x4c] ss:$16 sps:$4 sm:$0xff]  }
 0x116   : > { %v605_v61 = vld [vmem:[#allocation2 + $0x10] sm:$0xfe]  ;;  %v692_v8 = vshll.u32 %v609_v62, 16  ;;  %v690_v26 = vshrl.u32 %v609_v62, 16 }
 0x117   : > { %v5890_v1 = vld [vmem:[#allocation2 + $0x28] sm:$0xff]  ;;  %v524_v48 = vld [vmem:[#allocation2 + $0x10] sm:$0xff] }
 0x118   : > { %v604_v2 = vld [vmem:[#allocation2 + $0x8] sm:$0xfe]  ;;  %v611_v3 = vpack.c.bf16 %v5890_v1, %v605_v61  ;;  %v694_v20 = vrot.slane %v692_v8, 1  ;;  %v5905_v53 = vpack.c.bf16 %v5890_v1, %v524_v48  ;;  %v4942_v61 = vld [vmem:[#allocation6 + $0x30c] ss:$16 sps:$4 sm:$0xff]  }
 0x119   : > { %v610_v4 = vpack.c.bf16 %v5888_v63, %v604_v2  ;;  %v523_v50 = vld [vmem:[#allocation2 + $0x8] sm:$0xff]  ;;  %v4937_v62 = vld [vmem:[#allocation6 + $0x48] ss:$16 sps:$4 sm:$0xff]   ;;  %v5011_v48 = vld [vmem:[#allocation6 + $0x1cc] ss:$16 sps:$4 sm:$0xff]  }
 0x11a   : > { %v716_v5 = vshll.u32 %v611_v3, 16  ;;  %v606_v7 = vld [vmem:[#allocation2 + $0x30] sm:$0x1]  ;;  %v714_v18 = vshrl.u32 %v611_v3, 16  ;;  %v695_v33 = vor.u32 %v694_v20, %v690_v26  ;;  %v5908_v55 = vpack.c.bf16 %v5888_v63, %v523_v50  ;;  %v4945_v3 = vld [vmem:[#allocation6 + $0x6c] ss:$16 sps:$4 sm:$0xff]  }
 0x11b   : > { %v704_v6 = vshll.u32 %v610_v4, 16  ;;  %v608_v10 = vld [vmem:[#allocation2 + $0x40] sm:$0x1]  ;;  %v612_v11 = vpack.c.bf16 %v606_v7, %v606_v7  ;;  %v607_v14 = vld [vmem:[#allocation2 + $0x38] sm:$0x1]  ;;  %v702_v21 = vshrl.u32 %v610_v4, 16 }
 0x11c   : > { %v614_v12 = vpack.c.bf16 %v608_v10, %v608_v10  ;;  %v718_v13 = vrot.slane %v716_v5, 1  ;;  %v613_v15 = vpack.c.bf16 %v607_v14, %v607_v14  ;;  %v4940_v2 = vld [vmem:[#allocation6 + $0x308] ss:$16 sps:$4 sm:$0xff]   ;;  %v4948_v5 = vld [vmem:[#allocation6 + $0x32c] ss:$16 sps:$4 sm:$0xff]  }
 0x11d   : > { %v706_v16 = vrot.slane %v704_v6, 1  ;;  %v697_v17 = vshll.u32 %v612_v11, 16  ;;  %v4943_v4 = vld [vmem:[#allocation6 + $0x68] ss:$16 sps:$4 sm:$0xff]   ;;  %v4951_v7 = vld [vmem:[#allocation6 + $0x8c] ss:$16 sps:$4 sm:$0xff]  }
 0x11e   : > { %v721_v19 = vshll.u32 %v614_v12, 16  ;;  %v709_v22 = vshll.u32 %v613_v15, 16  ;;  %v719_v24 = vor.u32 %v718_v13, %v714_v18  ;;  %v4946_v6 = vld [vmem:[#allocation6 + $0x328] ss:$16 sps:$4 sm:$0xff]   ;;  %v4954_v10 = vld [vmem:[#allocation6 + $0x34c] ss:$16 sps:$4 sm:$0xff]  }
 0x11f   : > { %v699_v27 = vrot.slane %v697_v17, 1  ;;  %v707_v28 = vor.u32 %v706_v16, %v702_v21  ;;  %v4949_v8 = vld [vmem:[#allocation6 + $0x88] ss:$16 sps:$4 sm:$0xff]   ;;  %v4957_v11 = vld [vmem:[#allocation6 + $0xac] ss:$16 sps:$4 sm:$0xff]  }
 0x120   : > { %v723_v25 = vrot.slane %v721_v19, 1  ;;  %v711_v29 = vrot.slane %v709_v22, 1  ;;  %v4952_v12 = vld [vmem:[#allocation6 + $0x348] ss:$16 sps:$4 sm:$0xff]   ;;  %v4960_v14 = vld [vmem:[#allocation6 + $0x36c] ss:$16 sps:$4 sm:$0xff]  }
 0x121   : > { %v5898_v36 = vsel %vm688_vm11, %v695_v33, %v699_v27  ;;  %v4955_v13 = vld [vmem:[#allocation6 + $0xa8] ss:$16 sps:$4 sm:$0xff]   ;;  %v4963_v15 = vld [vmem:[#allocation6 + $0xcc] ss:$16 sps:$4 sm:$0xff]   ;;  %v5014_v50 = vld [vmem:[#allocation6 + $0x44] ss:$16 sps:$4 sm:$0xff]  }
 0x122   : > { %v724_v31 = vsel %vm688_vm11, %v719_v24, %v723_v25  ;;  %v712_v35 = vsel %vm688_vm11, %v707_v28, %v711_v29  ;;  %v4958_v16 = vld [vmem:[#allocation6 + $0x368] ss:$16 sps:$4 sm:$0xff]   ;;  %v4966_v18 = vld [vmem:[#allocation6 + $0x38c] ss:$16 sps:$4 sm:$0xff]  }
 0x123   : > { %4298 = vmatmul.mubr.msk.bf16.vlgmr.msra.gmra.mrb[0].mxu1 %vm1087_vm12, %v724_v31  ;;  %1123 = vmatprep.mubr.bf16.mxu0 %v712_v35  ;;  %v4961_v17 = vld [vmem:[#allocation6 + $0xc8] ss:$16 sps:$4 sm:$0xff]   ;;  %v4969_v19 = vld [vmem:[#allocation6 + $0xec] ss:$16 sps:$4 sm:$0xff]  }
 0x124   : > { %1221 = vmatpush1.bf16.msra.mxu1 %v4901_v23  ;;  %1124 = vmatmul.mubr.bf16.vlgmr.msra.gmra.mrb[0].mxu0 %v5898_v36  ;;  %v4964_v20 = vld [vmem:[#allocation6 + $0x388] ss:$16 sps:$4 sm:$0xff]   ;;  %v4972_v22 = vld [vmem:[#allocation6 + $0x3ac] ss:$16 sps:$4 sm:$0xff]  }
 0x125   : > { %1222 = vmatprep.subr.bf16.mxu1 %v4909_v30  ;;  %1178 = vmatpush1.bf16.msra.mxu0 %v4904_v32  ;;  %v4967_v21 = vld [vmem:[#allocation6 + $0xe8] ss:$16 sps:$4 sm:$0xff]   ;;  %v4975_v23 = vld [vmem:[#allocation6 + $0x10c] ss:$16 sps:$4 sm:$0xff]  }
 0x126   : > { %1209 = vmatprep.mubr.bf16.mxu0 %v712_v35  ;;  %1179 = vmatprep.subr.bf16.mxu0 %v4912_v34  ;;  %v4970_v24 = vld [vmem:[#allocation6 + $0x3a8] ss:$16 sps:$4 sm:$0xff]   ;;  %v4978_v25 = vld [vmem:[#allocation6 + $0x3cc] ss:$16 sps:$4 sm:$0xff]  }
 0x127   : > { %1252 = vmatprep.mubr.bf16.mxu1 %v5576_v9  ;;  %v4973_v26 = vld [vmem:[#allocation6 + $0x108] ss:$16 sps:$4 sm:$0xff]   ;;  %v4981_v27 = vld [vmem:[#allocation6 + $0x12c] ss:$16 sps:$4 sm:$0xff]  }
 0x128   : > { %1223 = vmatpush1.bf16.msra.mxu1 %v4907_v37  ;;  %v4976_v28 = vld [vmem:[#allocation6 + $0x3c8] ss:$16 sps:$4 sm:$0xff]   ;;  %v4984_v29 = vld [vmem:[#allocation6 + $0x3ec] ss:$16 sps:$4 sm:$0xff]  }
 0x129   : > { %1669 = vmatprep.subr.bf16.mxu1 %v4915_v39  ;;  %1180 = vmatpush1.bf16.msra.mxu0 %v4910_v38  ;;  %v4979_v30 = vld [vmem:[#allocation6 + $0x128] ss:$16 sps:$4 sm:$0xff]   ;;  %v4990_v33 = vld [vmem:[#allocation6 + $0x40c] ss:$16 sps:$4 sm:$0xff]  }
 0x12a   : > { %1181 = vmatprep.subr.bf16.mxu0 %v4918_v40  ;;  %v4982_v32 = vld [vmem:[#allocation6 + $0x3e8] ss:$16 sps:$4 sm:$0xff]   ;;  %v4993_v35 = vld [vmem:[#allocation6 + $0x16c] ss:$16 sps:$4 sm:$0xff]  }
 0x12b   : > { %4299 = vmatmul.mubr.msk.bf16.vlgmr.msra.gmra.mrb[4].mxu1 %vm1087_vm12, %v724_v31  ;;  %v4987_v31 = vld [vmem:[#allocation6 + $0x14c] ss:$16 sps:$4 sm:$0xff]   ;;  %v4985_v34 = vld [vmem:[#allocation6 + $0x148] ss:$16 sps:$4 sm:$0xff]  }
 0x12c   : > { %1670 = vmatpush1.bf16.msra.mxu1 %v4913_v41  ;;  %1701 = vmatprep.mubr.bf16.mxu1 %v5576_v9  ;;  %v4988_v37 = vld [vmem:[#allocation6 + $0x408] ss:$16 sps:$4 sm:$0xff]   ;;  %v4996_v38 = vld [vmem:[#allocation6 + $0x42c] ss:$16 sps:$4 sm:$0xff]  }
 0x12d   : > { %1671 = vmatprep.subr.bf16.mxu1 %v4921_v43  ;;  %1182 = vmatpush1.bf16.msra.mxu0 %v4916_v42  ;;  %v4991_v39 = vld [vmem:[#allocation6 + $0x168] ss:$16 sps:$4 sm:$0xff]   ;;  %v4999_v40 = vld [vmem:[#allocation6 + $0x18c] ss:$16 sps:$4 sm:$0xff]   ;;  %v5002_v42 = vld [vmem:[#allocation6 + $0x4] ss:$16 sps:$4 sm:$0xff]  }
 0x12e   : > { %1183 = vmatprep.subr.bf16.mxu0 %v4924_v45  ;;  %v4994_v41 = vld [vmem:[#allocation6 + $0x428] ss:$16 sps:$4 sm:$0xff]   ;;  %v5000_v45 = vld [vmem:[#allocation6] ss:$16 sps:$4 sm:$0xff]  }
 0x12f   : > { %v4997_v43 = vld [vmem:[#allocation6 + $0x188] ss:$16 sps:$4 sm:$0xff]  }
 0x130   : > { %1672 = vmatpush1.bf16.msra.mxu1 %v4919_v44  ;;  %v5005_v44 = vld [vmem:[#allocation6 + $0x1ac] ss:$16 sps:$4 sm:$0xff]  }
 0x131   : > { %1712 = vmatprep.subr.bf16.mxu1 %v4927_v47  ;;  %1184 = vmatpush1.bf16.msra.mxu0 %v4922_v46  ;;  %v5008_v46 = vld [vmem:[#allocation6 + $0x24] ss:$16 sps:$4 sm:$0xff]   ;;  %v5003_v47 = vld [vmem:[#allocation6 + $0x1a8] ss:$16 sps:$4 sm:$0xff]  }
 0x132   : > { %1185 = vmatprep.subr.bf16.mxu0 %v4930_v49  ;;  %v5006_v49 = vld [vmem:[#allocation6 + $0x20] ss:$16 sps:$4 sm:$0xff]  }
 0x133   : > { %4372 = vmatmul.mubr.msk.bf16.vlgmr.msra.gmra.mrb[8].mxu1 %vm1087_vm12, %v5905_v53 }
 0x134   : > { %1713 = vmatpush1.bf16.msra.mxu1 %v4925_v51  ;;  %1744 = vmatprep.mubr.bf16.mxu1 %v5908_v55  ;;  %v5009_v51 = vld [vmem:[#allocation6 + $0x1c8] ss:$16 sps:$4 sm:$0xff]  }
 0x135   : > { %1714 = vmatprep.subr.bf16.mxu1 %v4933_v54  ;;  %1186 = vmatpush1.bf16.msra.mxu0 %v4928_v52  ;;  %v5017_v52 = vld [vmem:[#allocation6 + $0x1ec] ss:$16 sps:$4 sm:$0xff]   ;;  %v5012_v54 = vld [vmem:[#allocation6 + $0x40] ss:$16 sps:$4 sm:$0xff]  }
 0x136   : > { %1187 = vmatprep.subr.bf16.mxu0 %v4936_v56  ;;  %v5020_v56 = vld [vmem:[#allocation6 + $0x64] ss:$16 sps:$4 sm:$0xff]  }
 0x138   : > { %1715 = vmatpush1.bf16.msra.mxu1 %v4931_v57  ;;  %v5015_v57 = vld [vmem:[#allocation6 + $0x1e8] ss:$16 sps:$4 sm:$0xff]  }
 0x139   : > { %1716 = vmatprep.subr.bf16.mxu1 %v4939_v60  ;;  %1188 = vmatpush1.bf16.msra.mxu0 %v4934_v59  ;;  %v5018_v59 = vld [vmem:[#allocation6 + $0x60] ss:$16 sps:$4 sm:$0xff]   ;;  %v522_v60 = vld [vmem:[#allocation2] sm:$0xff] }
 0x13a   : > { %1189 = vmatprep.subr.bf16.mxu0 %v4942_v61  ;;  %v5024_v61 = vld [vmem:[#allocation6 + $0x208] ss:$16 sps:$4 sm:$0xff]  }
 0x13c   : > { %1717 = vmatpush1.bf16.msra.mxu1 %v4937_v62  ;;  %v5916_v62 = vpack.c.bf16 %v5882_v58, %v522_v60  ;;  %v5096_v60 = vld [vmem:[#allocation6 + $0x5c8] ss:$16 sps:$4 sm:$0xff]  }
 0x13d   : > { %1718 = vmatprep.subr.bf16.mxu1 %v4945_v3  ;;  %1190 = vmatpush1.bf16.msra.mxu0 %v4940_v2  ;;  %v5032_v2 = vld [vmem:[#allocation6 + $0x22c] ss:$16 sps:$4 sm:$0xff]   ;;  %v5021_v3 = vld [vmem:[#allocation6 + $0x80] ss:$16 sps:$4 sm:$0xff]  }
 0x13e   : > { %1191 = vmatprep.subr.bf16.mxu0 %v4948_v5  ;;  %v5030_v5 = vld [vmem:[#allocation6 + $0x228] ss:$16 sps:$4 sm:$0xff]  }
 0x140   : > { %1719 = vmatpush1.bf16.msra.mxu1 %v4943_v4  ;;  %v5029_v4 = vld [vmem:[#allocation6 + $0xa4] ss:$16 sps:$4 sm:$0xff]  }
 0x141   : > { %1720 = vmatprep.subr.bf16.mxu1 %v4951_v7  ;;  %1192 = vmatpush1.bf16.msra.mxu0 %v4946_v6  ;;  %v1802_v6 = vld [vmem:[#allocation2 + $0x38] sm:$0x3]  ;;  %v5038_v7 = vld [vmem:[#allocation6 + $0x48c] ss:$16 sps:$4 sm:$0xff]  }
 0x142   : > { %1193 = vmatprep.subr.bf16.mxu0 %v4954_v10  ;;  %v1799_v10 = vld [vmem:[#allocation2 + $0x8] sm:$0xfc] }
 0x144   : > { %1721 = vmatpush1.bf16.msra.mxu1 %v4949_v8  ;;  %v5027_v8 = vld [vmem:[#allocation6 + $0xa0] ss:$16 sps:$4 sm:$0xff]  }
 0x145   : > { %1722 = vmatprep.subr.bf16.mxu1 %v4957_v11  ;;  %1194 = vmatpush1.bf16.msra.mxu0 %v4952_v12  ;;  %v5035_v11 = vld [vmem:[#allocation6 + $0xc4] ss:$16 sps:$4 sm:$0xff]   ;;  %v1808_v12 = vpack.c.bf16 %v1802_v6, %v1802_v6 }
 0x146   : > { %1195 = vmatprep.subr.bf16.mxu0 %v4960_v14  ;;  %v5033_v14 = vld [vmem:[#allocation6 + $0xc0] ss:$16 sps:$4 sm:$0xff]   ;;  %v5113_v6 = vld [vmem:[#allocation6 + $0x4e4] ss:$16 sps:$4 sm:$0xff]  }
 0x148   : > { %1723 = vmatpush1.bf16.msra.mxu1 %v4955_v13  ;;  %v1805_v13 = vpack.c.bf16 %v5888_v63, %v1799_v10  ;;  %v5042_v63 = vld [vmem:[#allocation6 + $0x4a8] ss:$16 sps:$4 sm:$0xff]   ;;  %v5119_v10 = vld [vmem:[#allocation6 + $0x504] ss:$16 sps:$4 sm:$0xff]  }
 0x149   : > { %1724 = vmatprep.subr.bf16.mxu1 %v4963_v15  ;;  %1196 = vmatpush1.bf16.msra.mxu0 %v4958_v16  ;;  %v1894_v15 = vrot.slane %v1808_v12, 1  ;;  %v5041_v16 = vld [vmem:[#allocation6 + $0xe4] ss:$16 sps:$4 sm:$0xff]   ;;  %v5122_v12 = vld [vmem:[#allocation6 + $0x64c] ss:$16 sps:$4 sm:$0xff]  }
 0x14a   : > { %1197 = vmatprep.subr.bf16.mxu0 %v4966_v18  ;;  %v1893_v18 = vrot.slane %v1805_v13, 1  ;;  %v5117_v13 = vld [vmem:[#allocation6 + $0x500] ss:$16 sps:$4 sm:$0xff]  }
 0x14c   : > { %1725 = vmatpush1.bf16.msra.mxu1 %v4961_v17  ;;  %v5036_v17 = vld [vmem:[#allocation6 + $0x488] ss:$16 sps:$4 sm:$0xff]  }
 0x14d   : > { %1726 = vmatprep.subr.bf16.mxu1 %v4969_v19  ;;  %1198 = vmatpush1.bf16.msra.mxu0 %v4964_v20  ;;  %v5044_v19 = vld [vmem:[#allocation6 + $0x4ac] ss:$16 sps:$4 sm:$0xff]   ;;  %v5039_v20 = vld [vmem:[#allocation6 + $0xe0] ss:$16 sps:$4 sm:$0xff]  }
 0x14e   : > { %1199 = vmatprep.subr.bf16.mxu0 %v4972_v22  ;;  %v5047_v22 = vld [vmem:[#allocation6 + $0x104] ss:$16 sps:$4 sm:$0xff]  }
 0x150   : > { %1727 = vmatpush1.bf16.msra.mxu1 %v4967_v21  ;;  %v5924_v21 = vsel %vm1889_vm13, %v1893_v18, %v1894_v15  ;;  %v1801_v15 = vld [vmem:[#allocation2 + $0x30] sm:$0x3]  ;;  %v1798_v18 = vld [vmem:[#allocation2] sm:$0xfc] }
 0x151   : > { %1728 = vmatprep.subr.bf16.mxu1 %v4975_v23  ;;  %1200 = vmatpush1.bf16.msra.mxu0 %v4970_v24  ;;  %v5050_v23 = vld [vmem:[#allocation6 + $0x4cc] ss:$16 sps:$4 sm:$0xff]   ;;  %v5045_v24 = vld [vmem:[#allocation6 + $0x100] ss:$16 sps:$4 sm:$0xff]  }
 0x152   : > { %1201 = vmatprep.subr.bf16.mxu0 %v4978_v25  ;;  %v5053_v25 = vld [vmem:[#allocation6 + $0x124] ss:$16 sps:$4 sm:$0xff]  }
 0x154   : > { %1729 = vmatpush1.bf16.msra.mxu1 %v4973_v26  ;;  %v5048_v26 = vld [vmem:[#allocation6 + $0x4c8] ss:$16 sps:$4 sm:$0xff]  }
 0x155   : > { %1730 = vmatprep.subr.bf16.mxu1 %v4981_v27  ;;  %1202 = vmatpush1.bf16.msra.mxu0 %v4976_v28  ;;  %v5056_v27 = vld [vmem:[#allocation6 + $0x4ec] ss:$16 sps:$4 sm:$0xff]   ;;  %v5059_v28 = vld [vmem:[#allocation6 + $0x144] ss:$16 sps:$4 sm:$0xff]  }
 0x156   : > { %1203 = vmatprep.subr.bf16.mxu0 %v4984_v29  ;;  %v5054_v29 = vld [vmem:[#allocation6 + $0x4e8] ss:$16 sps:$4 sm:$0xff]  }
 0x158   : > { %1731 = vmatpush1.bf16.msra.mxu1 %v4979_v30  ;;  %v5062_v30 = vld [vmem:[#allocation6 + $0x50c] ss:$16 sps:$4 sm:$0xff]  }
 0x159   : > { %1732 = vmatprep.subr.bf16.mxu1 %v4987_v31  ;;  %1204 = vmatpush1.bf16.msra.mxu0 %v4982_v32  ;;  %v5057_v31 = vld [vmem:[#allocation6 + $0x140] ss:$16 sps:$4 sm:$0xff]   ;;  %v5065_v32 = vld [vmem:[#allocation6 + $0x164] ss:$16 sps:$4 sm:$0xff]  }
 0x15a   : > { %1205 = vmatprep.subr.bf16.mxu0 %v4990_v33  ;;  %v5060_v33 = vld [vmem:[#allocation6 + $0x508] ss:$16 sps:$4 sm:$0xff]  }
 0x15c   : > { %1733 = vmatpush1.bf16.msra.mxu1 %v4985_v34  ;;  %v5068_v34 = vld [vmem:[#allocation6 + $0x52c] ss:$16 sps:$4 sm:$0xff]  }
 0x15d   : > { %1734 = vmatprep.subr.bf16.mxu1 %v4993_v35  ;;  %1206 = vmatpush1.bf16.msra.mxu0 %v4988_v37  ;;  %v5063_v35 = vld [vmem:[#allocation6 + $0x160] ss:$16 sps:$4 sm:$0xff]   ;;  %v5071_v37 = vld [vmem:[#allocation6 + $0x184] ss:$16 sps:$4 sm:$0xff]  }
 0x15e   : > { %1207 = vmatprep.subr.bf16.mxu0 %v4996_v38  ;;  %v5066_v38 = vld [vmem:[#allocation6 + $0x528] ss:$16 sps:$4 sm:$0xff]  }
 0x160   : > { %1735 = vmatpush1.bf16.msra.mxu1 %v4991_v39  ;;  %v5074_v39 = vld [vmem:[#allocation6 + $0x54c] ss:$16 sps:$4 sm:$0xff]  }
 0x161   : > { %1736 = vmatprep.subr.bf16.mxu1 %v4999_v40  ;;  %1208 = vmatpush1.bf16.msra.mxu0 %v4994_v41  ;;  %v5069_v40 = vld [vmem:[#allocation6 + $0x180] ss:$16 sps:$4 sm:$0xff]   ;;  %v5077_v41 = vld [vmem:[#allocation6 + $0x1a4] ss:$16 sps:$4 sm:$0xff]  }
 0x162   : > { %1626 = vmatprep.subr.bf16.mxu0 %v5002_v42  ;;  %v5072_v42 = vld [vmem:[#allocation6 + $0x548] ss:$16 sps:$4 sm:$0xff]  }
 0x164   : > { %1737 = vmatpush1.bf16.msra.mxu1 %v4997_v43  ;;  %1210 = vmatmul.mubr.bf16.vlgmr.msra.gmra.mrb[4].mxu0 %v5898_v36  ;;  %v5026_v36 = vld [vmem:[#allocation6 + $0x20c] ss:$16 sps:$4 sm:$0xff]  }
 0x165   : > { %1738 = vmatprep.subr.bf16.mxu1 %v5005_v44  ;;  %1627 = vmatpush1.bf16.msra.mxu0 %v5000_v45  ;;  %v5080_v43 = vld [vmem:[#allocation6 + $0x56c] ss:$16 sps:$4 sm:$0xff]   ;;  %v5075_v44 = vld [vmem:[#allocation6 + $0x1a0] ss:$16 sps:$4 sm:$0xff]   ;;  %v5083_v45 = vld [vmem:[#allocation6 + $0x1c4] ss:$16 sps:$4 sm:$0xff]  }
 0x166   : > { %1658 = vmatprep.mubr.bf16.mxu0 %v5908_v55  ;;  %1628 = vmatprep.subr.bf16.mxu0 %v5008_v46  ;;  %v5023_v55 = vld [vmem:[#allocation6 + $0x84] ss:$16 sps:$4 sm:$0xff]   ;;  %v5078_v46 = vld [vmem:[#allocation6 + $0x568] ss:$16 sps:$4 sm:$0xff]  }
 0x168   : > { %1739 = vmatpush1.bf16.msra.mxu1 %v5003_v47  ;;  %v5086_v47 = vld [vmem:[#allocation6 + $0x58c] ss:$16 sps:$4 sm:$0xff]  }
 0x169   : > { %1740 = vmatprep.subr.bf16.mxu1 %v5011_v48  ;;  %1629 = vmatpush1.bf16.msra.mxu0 %v5006_v49  ;;  %v5081_v48 = vld [vmem:[#allocation6 + $0x1c0] ss:$16 sps:$4 sm:$0xff]   ;;  %v5089_v49 = vld [vmem:[#allocation6 + $0x1e4] ss:$16 sps:$4 sm:$0xff]  }
 0x16a   : > { %1630 = vmatprep.subr.bf16.mxu0 %v5014_v50  ;;  %v5084_v50 = vld [vmem:[#allocation6 + $0x588] ss:$16 sps:$4 sm:$0xff]  }
 0x16c   : > { %1741 = vmatpush1.bf16.msra.mxu1 %v5009_v51  ;;  %v5092_v51 = vld [vmem:[#allocation6 + $0x5ac] ss:$16 sps:$4 sm:$0xff]  }
 0x16d   : > { %1742 = vmatprep.subr.bf16.mxu1 %v5017_v52  ;;  %1631 = vmatpush1.bf16.msra.mxu0 %v5012_v54  ;;  %v5087_v52 = vld [vmem:[#allocation6 + $0x1e0] ss:$16 sps:$4 sm:$0xff]   ;;  %v5095_v54 = vld [vmem:[#allocation6 + $0x484] ss:$16 sps:$4 sm:$0xff]  }
 0x16e   : > { %1632 = vmatprep.subr.bf16.mxu0 %v5020_v56  ;;  %v5090_v56 = vld [vmem:[#allocation6 + $0x5a8] ss:$16 sps:$4 sm:$0xff]  }
 0x170   : > { %1743 = vmatpush1.bf16.msra.mxu1 %v5015_v57  ;;  %v5098_v57 = vld [vmem:[#allocation6 + $0x5cc] ss:$16 sps:$4 sm:$0xff]  }
 0x171   : > { %1755 = vmatprep.subr.bf16.mxu1 %v5026_v36  ;;  %1633 = vmatpush1.bf16.msra.mxu0 %v5018_v59  ;;  %v5093_v36 = vld [vmem:[#allocation6 + $0x480] ss:$16 sps:$4 sm:$0xff]   ;;  %v5101_v59 = vld [vmem:[#allocation6 + $0x4a4] ss:$16 sps:$4 sm:$0xff]  }
 0x172   : > { %1634 = vmatprep.subr.bf16.mxu0 %v5023_v55  ;;  %v5104_v55 = vld [vmem:[#allocation6 + $0x5ec] ss:$16 sps:$4 sm:$0xff]  }
 0x173   : > { %1745 = vmatmul.mubr.bf16.vlgmr.msra.gmra.mrb[4].mxu1 %v5916_v62 }
 0x174   : > { %1756 = vmatpush1.bf16.msra.mxu1 %v5024_v61  ;;  %1787 = vmatprep.mubr.bf16.mxu1 %v5576_v9  ;;  %v5099_v61 = vld [vmem:[#allocation6 + $0x4a0] ss:$16 sps:$4 sm:$0xff]  }
 0x175   : > { %1757 = vmatprep.subr.bf16.mxu1 %v5032_v2  ;;  %1635 = vmatpush1.bf16.msra.mxu0 %v5021_v3  ;;  %v5107_v2 = vld [vmem:[#allocation6 + $0x4c4] ss:$16 sps:$4 sm:$0xff]   ;;  %v5102_v3 = vld [vmem:[#allocation6 + $0x5e8] ss:$16 sps:$4 sm:$0xff]  }
 0x176   : > { %1636 = vmatprep.subr.bf16.mxu0 %v5029_v4  ;;  %v5110_v4 = vld [vmem:[#allocation6 + $0x60c] ss:$16 sps:$4 sm:$0xff]  }
 0x178   : > { %1758 = vmatpush1.bf16.msra.mxu1 %v5030_v5  ;;  %v5105_v5 = vld [vmem:[#allocation6 + $0x4c0] ss:$16 sps:$4 sm:$0xff]  }
 0x179   : > { %2350 = vmatprep.subr.bf16.mxu1 %v5038_v7  ;;  %1637 = vmatpush1.bf16.msra.mxu0 %v5027_v8  ;;  %v5108_v7 = vld [vmem:[#allocation6 + $0x608] ss:$16 sps:$4 sm:$0xff]   ;;  %v5111_v8 = vld [vmem:[#allocation6 + $0x4e0] ss:$16 sps:$4 sm:$0xff]  }
 0x17a   : > { %1638 = vmatprep.subr.bf16.mxu0 %v5035_v11  ;;  %v5114_v11 = vld [vmem:[#allocation6 + $0x628] ss:$16 sps:$4 sm:$0xff]  }
 0x17d   : > { %1639 = vmatpush1.bf16.msra.mxu0 %v5033_v14  ;;  %v5125_v14 = vld [vmem:[#allocation6 + $0x524] ss:$16 sps:$4 sm:$0xff]  }
 0x17e   : > { %1640 = vmatprep.subr.bf16.mxu0 %v5041_v16  ;;  %v5120_v16 = vld [vmem:[#allocation6 + $0x648] ss:$16 sps:$4 sm:$0xff]  }
 0x17f   : > { %4373 = vmatmul.mubr.msk.bf16.vlgmr.msra.gmra.mrb[4].mxu1 %vm1087_vm12, %v5905_v53  ;;  %v5051_v53 = vld [vmem:[#allocation6 + $0x120] ss:$16 sps:$4 sm:$0xff]  }
 0x180   : > { %2351 = vmatpush1.bf16.msra.mxu1 %v5036_v17  ;;  %2382 = vmatprep.mubr.bf16.mxu1 %v5924_v21  ;;  %v5128_v17 = vld [vmem:[#allocation6 + $0x66c] ss:$16 sps:$4 sm:$0xff]  }
 0x181   : > { %2352 = vmatprep.subr.bf16.mxu1 %v5044_v19  ;;  %1641 = vmatpush1.bf16.msra.mxu0 %v5039_v20  ;;  %v5123_v19 = vld [vmem:[#allocation6 + $0x520] ss:$16 sps:$4 sm:$0xff]   ;;  %v1807_v20 = vpack.c.bf16 %v1801_v15, %v1801_v15  ;;  %v2513_v15 = vld [vmem:[#allocation9 + $0x8] sm:$0xff] }
 0x182   : > { %1642 = vmatprep.subr.bf16.mxu0 %v5047_v22  ;;  %v5126_v22 = vld [vmem:[#allocation6 + $0x668] ss:$16 sps:$4 sm:$0xff]  }
 0x184   : > { %2353 = vmatpush1.bf16.msra.mxu1 %v5042_v63  ;;  %v1804_v63 = vpack.c.bf16 %v5882_v58, %v1798_v18  ;;  %v1803_v58 = vld [vmem:[#allocation2 + $0x40] sm:$0x3]  ;;  %v2512_v18 = vld [vmem:[#allocation9] sm:$0xff] }
 0x185   : > { %2354 = vmatprep.subr.bf16.mxu1 %v5050_v23  ;;  %1643 = vmatpush1.bf16.msra.mxu0 %v5045_v24  ;;  %v5137_v23 = vld [vmem:[#allocation6 + $0x68c] ss:$16 sps:$4 sm:$0xff]   ;;  %v5129_v24 = vld [vmem:[#allocation6 + $0x540] ss:$16 sps:$4 sm:$0xff]  }
 0x186   : > { %1644 = vmatprep.subr.bf16.mxu0 %v5053_v25  ;;  %v1891_v25 = vrot.slane %v1807_v20, 1 }
 0x188   : > { %2355 = vmatpush1.bf16.msra.mxu1 %v5048_v26  ;;  %v5134_v26 = vld [vmem:[#allocation6 + $0x564] ss:$16 sps:$4 sm:$0xff]  }
 0x189   : > { %2356 = vmatprep.subr.bf16.mxu1 %v5056_v27  ;;  %1645 = vmatpush1.bf16.msra.mxu0 %v5051_v53  ;;  %v1890_v27 = vrot.slane %v1804_v63, 1  ;;  %v5135_v53 = vld [vmem:[#allocation6 + $0x688] ss:$16 sps:$4 sm:$0xff]   ;;  %v2516_v63 = vld [vmem:[#allocation9 + $0x20] sm:$0xff] }
 0x18a   : > { %1646 = vmatprep.subr.bf16.mxu0 %v5059_v28  ;;  %v5143_v28 = vld [vmem:[#allocation6 + $0x6ac] ss:$16 sps:$4 sm:$0xff]  }
 0x18c   : > { %2357 = vmatpush1.bf16.msra.mxu1 %v5054_v29  ;;  %v1892_v29 = vsel %vm1889_vm13, %v1890_v27, %v1891_v25  ;;  %v2521_v25 = vld [vmem:[#allocation9 + $0x48] sm:$0xff] }
 0x18d   : > { %2358 = vmatprep.subr.bf16.mxu1 %v5062_v30  ;;  %1647 = vmatpush1.bf16.msra.mxu0 %v5057_v31  ;;  %v5132_v30 = vld [vmem:[#allocation6 + $0x560] ss:$16 sps:$4 sm:$0xff]   ;;  %v5140_v31 = vld [vmem:[#allocation6 + $0x584] ss:$16 sps:$4 sm:$0xff]  }
 0x18e   : > { %1648 = vmatprep.subr.bf16.mxu0 %v5065_v32  ;;  %v5141_v32 = vld [vmem:[#allocation6 + $0x6a8] ss:$16 sps:$4 sm:$0xff]  }
 0x190   : > { %2359 = vmatpush1.bf16.msra.mxu1 %v5060_v33  ;;  %v1800_v33 = vld [vmem:[#allocation2 + $0x10] sm:$0xfc] }
 0x191   : > { %2360 = vmatprep.subr.bf16.mxu1 %v5068_v34  ;;  %1649 = vmatpush1.bf16.msra.mxu0 %v5063_v35  ;;  %v5138_v34 = vld [vmem:[#allocation6 + $0x580] ss:$16 sps:$4 sm:$0xff]   ;;  %v1809_v35 = vpack.c.bf16 %v1803_v58, %v1803_v58 }
 0x192   : > { %1650 = vmatprep.subr.bf16.mxu0 %v5071_v37  ;;  %v5146_v37 = vld [vmem:[#allocation6 + $0x5a4] ss:$16 sps:$4 sm:$0xff]  }
 0x194   : > { %2361 = vmatpush1.bf16.msra.mxu1 %v5066_v38  ;;  %v1806_v38 = vpack.c.bf16 %v5890_v1, %v1800_v33  ;;  %v5153_v1 = vld [vmem:[#allocation6 + $0x600] ss:$16 sps:$4 sm:$0xff]  }
 0x195   : > { %2362 = vmatprep.subr.bf16.mxu1 %v5074_v39  ;;  %1651 = vmatpush1.bf16.msra.mxu0 %v5069_v40  ;;  %v5144_v39 = vld [vmem:[#allocation6 + $0x5a0] ss:$16 sps:$4 sm:$0xff]   ;;  %v1897_v40 = vrot.slane %v1809_v35, 1  ;;  %v2529_v35 = vld [vmem:[#allocation9 + $0x88] sm:$0xff] }
 0x196   : > { %1652 = vmatprep.subr.bf16.mxu0 %v5077_v41  ;;  %v5149_v41 = vld [vmem:[#allocation6 + $0x5c4] ss:$16 sps:$4 sm:$0xff]  }
 0x197   : > { %v2524_v33 = vld [vmem:[#allocation9 + $0x60] sm:$0xff] }
 0x198   : > { %2363 = vmatpush1.bf16.msra.mxu1 %v5072_v42  ;;  %v1896_v42 = vrot.slane %v1806_v38, 1 }
 0x199   : > { %2364 = vmatprep.subr.bf16.mxu1 %v5080_v43  ;;  %1653 = vmatpush1.bf16.msra.mxu0 %v5075_v44  ;;  %v5147_v44 = vld [vmem:[#allocation6 + $0x5c0] ss:$16 sps:$4 sm:$0xff]  }
 0x19a   : > { %1654 = vmatprep.subr.bf16.mxu0 %v5083_v45  ;;  %v1898_v43 = vsel %vm1889_vm13, %v1896_v42, %v1897_v40  ;;  %v5152_v45 = vld [vmem:[#allocation6 + $0x5e4] ss:$16 sps:$4 sm:$0xff]   ;;  %v2533_v42 = vld [vmem:[#allocation9 + $0xa8] sm:$0xff] }
 0x19b   : > { %v2528_v40 = vld [vmem:[#allocation9 + $0x80] sm:$0xff] }
 0x19c   : > { %2365 = vmatpush1.bf16.msra.mxu1 %v5078_v46  ;;  %v5150_v46 = vld [vmem:[#allocation6 + $0x5e0] ss:$16 sps:$4 sm:$0xff]  }
 0x19d   : > { %2366 = vmatprep.subr.bf16.mxu1 %v5086_v47  ;;  %1655 = vmatpush1.bf16.msra.mxu0 %v5081_v48  ;;  %v5155_v47 = vld [vmem:[#allocation6 + $0x604] ss:$16 sps:$4 sm:$0xff]  }
 0x19e   : > { %1656 = vmatprep.subr.bf16.mxu0 %v5089_v49  ;;  %v5158_v48 = vld [vmem:[#allocation6 + $0x624] ss:$16 sps:$4 sm:$0xff]   ;;  %v5156_v49 = vld [vmem:[#allocation6 + $0x620] ss:$16 sps:$4 sm:$0xff]  }
 0x1a0   : > { %2367 = vmatpush1.bf16.msra.mxu1 %v5084_v50  ;;  %v5161_v50 = vld [vmem:[#allocation6 + $0x644] ss:$16 sps:$4 sm:$0xff]  }
 0x1a1   : > { %2368 = vmatprep.subr.bf16.mxu1 %v5092_v51  ;;  %1657 = vmatpush1.bf16.msra.mxu0 %v5087_v52  ;;  %v5159_v51 = vld [vmem:[#allocation6 + $0x640] ss:$16 sps:$4 sm:$0xff]   ;;  %v5164_v52 = vld [vmem:[#allocation6 + $0x664] ss:$16 sps:$4 sm:$0xff]  }
 0x1a2   : > { %2264 = vmatprep.subr.bf16.mxu0 %v5095_v54  ;;  %v5162_v54 = vld [vmem:[#allocation6 + $0x660] ss:$16 sps:$4 sm:$0xff]  }
 0x1a4   : > { %2369 = vmatpush1.bf16.msra.mxu1 %v5090_v56  ;;  %1659 = vmatmul.mubr.bf16.vlgmr.msra.gmra.mrb[8].mxu0 %v5916_v62  ;;  %v5116_v62 = vld [vmem:[#allocation6 + $0x62c] ss:$16 sps:$4 sm:$0xff]   ;;  %v5167_v56 = vld [vmem:[#allocation6 + $0x684] ss:$16 sps:$4 sm:$0xff]  }
 0x1a5   : > { %2370 = vmatprep.subr.bf16.mxu1 %v5098_v57  ;;  %2265 = vmatpush1.bf16.msra.mxu0 %v5093_v36  ;;  %v5165_v57 = vld [vmem:[#allocation6 + $0x680] ss:$16 sps:$4 sm:$0xff]   ;;  %v5170_v36 = vld [vmem:[#allocation6 + $0x6a4] ss:$16 sps:$4 sm:$0xff]  }
 0x1a6   : > { %2296 = vmatprep.mubr.bf16.mxu0 %v5924_v21  ;;  %2266 = vmatprep.subr.bf16.mxu0 %v5101_v59  ;;  %v5131_v21 = vld [vmem:[#allocation6 + $0x544] ss:$16 sps:$4 sm:$0xff]   ;;  %v5168_v59 = vld [vmem:[#allocation6 + $0x6a0] ss:$16 sps:$4 sm:$0xff]  }
 0x1a8   : > { %2371 = vmatpush1.bf16.msra.mxu1 %v5096_v60 }
 0x1a9   : > { %2372 = vmatprep.subr.bf16.mxu1 %v5104_v55  ;;  %2267 = vmatpush1.bf16.msra.mxu0 %v5099_v61 }
 0x1aa   : > { %2268 = vmatprep.subr.bf16.mxu0 %v5107_v2 }
 0x1ac   : > { %2373 = vmatpush1.bf16.msra.mxu1 %v5102_v3 }
 0x1ad   : > { %2374 = vmatprep.subr.bf16.mxu1 %v5110_v4  ;;  %2269 = vmatpush1.bf16.msra.mxu0 %v5105_v5 }
 0x1ae   : > { %2270 = vmatprep.subr.bf16.mxu0 %v5113_v6 }
 0x1b0   : > { %2375 = vmatpush1.bf16.msra.mxu1 %v5108_v7 }
 0x1b1   : > { %2376 = vmatprep.subr.bf16.mxu1 %v5116_v62  ;;  %2271 = vmatpush1.bf16.msra.mxu0 %v5111_v8 }
 0x1b2   : > { %2272 = vmatprep.subr.bf16.mxu0 %v5119_v10 }
 0x1b4   : > { %2377 = vmatpush1.bf16.msra.mxu1 %v5114_v11 }
 0x1b5   : > { %2378 = vmatprep.subr.bf16.mxu1 %v5122_v12  ;;  %2273 = vmatpush1.bf16.msra.mxu0 %v5117_v13 }
 0x1b6   : > { %2274 = vmatprep.subr.bf16.mxu0 %v5125_v14 }
 0x1b8   : > { %2379 = vmatpush1.bf16.msra.mxu1 %v5120_v16  ;;  %v2515_v16 = vld [vmem:[#allocation9 + $0x18] sm:$0xff] }
 0x1b9   : > { %2380 = vmatprep.subr.bf16.mxu1 %v5128_v17  ;;  %2275 = vmatpush1.bf16.msra.mxu0 %v5123_v19  ;;  %v4574_v17 = vpack.c.bf16 %v2515_v16, %v2513_v15  ;;  %v2514_v19 = vld [vmem:[#allocation9 + $0x10] sm:$0xff]  ;;  %v2544_v16 = vld [vmem:[#allocation9 + $0x100] sm:$0xff] }
 0x1ba   : > { %2276 = vmatprep.subr.bf16.mxu0 %v5131_v21  ;;  %v4576_v20 = vpack.c.bf16 %v2514_v19, %v2512_v18  ;;  %v2517_v21 = vld [vmem:[#allocation9 + $0x28] sm:$0xff]  ;;  %v2551_v19 = vld [vmem:[#allocation9 + $0x138] sm:$0xff] }
 0x1bb   : > { %v2549_v18 = vld [vmem:[#allocation9 + $0x128] sm:$0xff] }
 0x1bc   : > { %2381 = vmatpush1.bf16.msra.mxu1 %v5126_v22  ;;  %v2519_v22 = vld [vmem:[#allocation9 + $0x38] sm:$0xff] }
 0x1bd   : > { %2393 = vmatprep.subr.bf16.mxu1 %v5137_v23  ;;  %2277 = vmatpush1.bf16.msra.mxu0 %v5129_v24  ;;  %v4578_v23 = vpack.c.bf16 %v2519_v22, %v2517_v21  ;;  %v2518_v24 = vld [vmem:[#allocation9 + $0x30] sm:$0xff]  ;;  %v4610_v21 = vpack.c.bf16 %v2551_v19, %v2549_v18  ;;  %v2548_v22 = vld [vmem:[#allocation9 + $0x120] sm:$0xff] }
 0x1be   : > { %2278 = vmatprep.subr.bf16.mxu0 %v5134_v26  ;;  %v2523_v26 = vld [vmem:[#allocation9 + $0x58] sm:$0xff]  ;;  %v4580_v27 = vpack.c.bf16 %v2518_v24, %v2516_v63  ;;  %v2550_v63 = vld [vmem:[#allocation9 + $0x130] sm:$0xff]  ;;  %v2553_v24 = vld [vmem:[#allocation9 + $0x148] sm:$0xff] }
 0x1bf   : > { %2383 = vmatmul.mubr.bf16.vlgmr.msra.gmra.mrb[4].mxu1 %v1892_v29 }
 0x1c0   : > { %2394 = vmatpush1.bf16.msra.mxu1 %v5135_v53  ;;  %2425 = vmatprep.mubr.bf16.mxu1 %v5576_v9  ;;  %v4582_v53 = vpack.c.bf16 %v2523_v26, %v2521_v25  ;;  %v2555_v25 = vld [vmem:[#allocation9 + $0x158] sm:$0xff] }
 0x1c1   : > { %2395 = vmatprep.subr.bf16.mxu1 %v5143_v28  ;;  %2279 = vmatpush1.bf16.msra.mxu0 %v5132_v30  ;;  %v2520_v28 = vld [vmem:[#allocation9 + $0x40] sm:$0xff]  ;;  %v2525_v30 = vld [vmem:[#allocation9 + $0x68] sm:$0xff]  ;;  %v4614_v26 = vpack.c.bf16 %v2555_v25, %v2553_v24 }
 0x1c2   : > { %2280 = vmatprep.subr.bf16.mxu0 %v5140_v31  ;;  %v2527_v31 = vld [vmem:[#allocation9 + $0x78] sm:$0xff] }
 0x1c4   : > { %2396 = vmatpush1.bf16.msra.mxu1 %v5141_v32  ;;  %v4586_v32 = vpack.c.bf16 %v2527_v31, %v2525_v30  ;;  %v2559_v30 = vld [vmem:[#allocation9 + $0x178] sm:$0xff] }
 0x1c5   : > { %2281 = vmatpush1.bf16.msra.mxu0 %v5138_v34  ;;  %v2526_v34 = vld [vmem:[#allocation9 + $0x70] sm:$0xff] }
 0x1c6   : > { %2282 = vmatprep.subr.bf16.mxu0 %v5146_v37  ;;  %v2531_v37 = vld [vmem:[#allocation9 + $0x98] sm:$0xff]  ;;  %v4588_v38 = vpack.c.bf16 %v2526_v34, %v2524_v33  ;;  %v2561_v33 = vld [vmem:[#allocation9 + $0x188] sm:$0xff] }
 0x1c9   : > { %2283 = vmatpush1.bf16.msra.mxu0 %v5144_v39  ;;  %v4590_v39 = vpack.c.bf16 %v2531_v37, %v2529_v35  ;;  %v2563_v35 = vld [vmem:[#allocation9 + $0x198] sm:$0xff]  ;;  %v2560_v37 = vld [vmem:[#allocation9 + $0x180] sm:$0xff] }
 0x1ca   : > { %2284 = vmatprep.subr.bf16.mxu0 %v5149_v41  ;;  %v2530_v41 = vld [vmem:[#allocation9 + $0x90] sm:$0xff] }
 0x1cb   : > { %4447 = vmatmul.mubr.msk.bf16.vlgmr.msra.gmra.mrb[4].mxu1 %vm1087_vm12, %v1898_v43 }
 0x1cd   : > { %2285 = vmatpush1.bf16.msra.mxu0 %v5147_v44  ;;  %v4592_v44 = vpack.c.bf16 %v2530_v41, %v2528_v40  ;;  %v2565_v40 = vld [vmem:[#allocation9 + $0x1a8] sm:$0xff]  ;;  %v2567_v41 = vld [vmem:[#allocation9 + $0x1b8] sm:$0xff] }
 0x1ce   : > { %2286 = vmatprep.subr.bf16.mxu0 %v5152_v45 }
 0x1d1   : > { %2287 = vmatpush1.bf16.msra.mxu0 %v5150_v46  ;;  %v2532_v46 = vld [vmem:[#allocation9 + $0xa0] sm:$0xff] }
 0x1d2   : > { %2288 = vmatprep.subr.bf16.mxu0 %v5155_v47  ;;  %v2534_v47 = vld [vmem:[#allocation9 + $0xb0] sm:$0xff] }
 0x1d5   : > { %2289 = vmatpush1.bf16.msra.mxu0 %v5153_v1  ;;  %v2537_v1 = vld [vmem:[#allocation9 + $0xc8] sm:$0xff] }
 0x1d6   : > { %2290 = vmatprep.subr.bf16.mxu0 %v5158_v48  ;;  %v2539_v48 = vld [vmem:[#allocation9 + $0xd8] sm:$0xff] }
 0x1d9   : > { %2291 = vmatpush1.bf16.msra.mxu0 %v5156_v49  ;;  %v4596_v49 = vpack.c.bf16 %v2534_v47, %v2532_v46  ;;  %v2569_v46 = vld [vmem:[#allocation9 + $0x1c8] sm:$0xff]  ;;  %v2571_v47 = vld [vmem:[#allocation9 + $0x1d8] sm:$0xff] }
 0x1da   : > { %2292 = vmatprep.subr.bf16.mxu0 %v5161_v50  ;;  %v4598_v50 = vpack.c.bf16 %v2539_v48, %v2537_v1  ;;  %v4630_v48 = vpack.c.bf16 %v2571_v47, %v2569_v46 }
 0x1dd   : > { %2293 = vmatpush1.bf16.msra.mxu0 %v5159_v51  ;;  %v2536_v51 = vld [vmem:[#allocation9 + $0xc0] sm:$0xff] }
 0x1de   : > { %2294 = vmatprep.subr.bf16.mxu0 %v5164_v52  ;;  %v2538_v52 = vld [vmem:[#allocation9 + $0xd0] sm:$0xff] }
 0x1e1   : > { %2295 = vmatpush1.bf16.msra.mxu0 %v5162_v54 }
 0x1e2   : > { %2307 = vmatprep.subr.bf16.mxu0 %v5167_v56  ;;  %v2541_v56 = vld [vmem:[#allocation9 + $0xe8] sm:$0xff] }
 0x1e4   : > { %2297 = vmatmul.mubr.bf16.vlgmr.msra.gmra.mrb[12].mxu0 %v1892_v29  ;;  %v2522_v29 = vld [vmem:[#allocation9 + $0x50] sm:$0xff] }
 0x1e5   : > { %2308 = vmatpush1.bf16.msra.mxu0 %v5165_v57  ;;  %2339 = vmatprep.mubr.bf16.mxu0 %v5576_v9  ;;  %v4584_v58 = vpack.c.bf16 %v2522_v29, %v2520_v28  ;;  %v2543_v57 = vld [vmem:[#allocation9 + $0xf8] sm:$0xff]  ;;  %v2557_v29 = vld [vmem:[#allocation9 + $0x168] sm:$0xff] }
 0x1e6   : > { %2309 = vmatprep.subr.bf16.mxu0 %v5170_v36  ;;  %v4618_v31 = vpack.c.bf16 %v2559_v30, %v2557_v29 }
 0x1e9   : > { %2310 = vmatpush1.bf16.msra.mxu0 %v5168_v59 }
 0x1ea   : > { %4575 = vmatprep.subr.bf16.mxu0 %v4574_v17  ;;  %v2546_v17 = vld [vmem:[#allocation9 + $0x110] sm:$0xff] }
 0x1f0   : > { %4446 = vmatmul.mubr.msk.bf16.vlgmr.msra.gmra.mrb[12].mxu0 %vm1087_vm12, %v1898_v43  ;;  %v2535_v43 = vld [vmem:[#allocation9 + $0xb8] sm:$0xff] }
 0x1f1   : > { %4577 = vmatpush1.bf16.msra.mxu0 %v4576_v20  ;;  %v4594_v45 = vpack.c.bf16 %v2535_v43, %v2533_v42  ;;  %v4608_v20 = vpack.c.bf16 %v2546_v17, %v2544_v16  ;;  %v4626_v43 = vpack.c.bf16 %v2567_v41, %v2565_v40 }
 0x1f2   : > { %4579 = vmatprep.subr.bf16.mxu0 %v4578_v23  ;;  %v4612_v23 = vpack.c.bf16 %v2550_v63, %v2548_v22 }
 0x1f5   : > { %4581 = vmatpush1.bf16.msra.mxu0 %v4580_v27  ;;  %v2552_v27 = vld [vmem:[#allocation9 + $0x140] sm:$0xff] }
 0x1f6   : > { %v1168_v60 = vpop.f32.mrb[0].mxu1  ;;  %4583 = vmatprep.subr.bf16.mxu0 %v4582_v53  ;;  %v2554_v53 = vld [vmem:[#allocation9 + $0x150] sm:$0xff] }
 0x1f7   : > { %v1170_v55 = vpop.f32.mrb[1].mxu1  ;;  %v1125_v61 = vpop.f32.mrb[0].mxu0  ;;  %v4616_v28 = vpack.c.bf16 %v2554_v53, %v2552_v27 }
 0x1f8   : > { %v1172_v2 = vpop.f32.mrb[2].mxu1  ;;  %v5937_v3 = vadd.f32 %v1168_v60, %v1125_v61  ;;  %v1127_v4 = vpop.f32.mrb[1].mxu0  ;;  %v4600_v60 = vpack.c.bf16 %v2538_v52, %v2536_v51  ;;  %v4602_v61 = vpack.c.bf16 %v2543_v57, %v2541_v56  ;;  %v2573_v51 = vld [vmem:[#allocation9 + $0x1e8] sm:$0xff]  ;;  %v2575_v52 = vld [vmem:[#allocation9 + $0x1f8] sm:$0xff] }
 0x1f9   : > { %v1174_v5 = vpop.f32.mrb[3].mxu1  ;;  %v5939_v6 = vadd.f32 %v1170_v55, %v1127_v4  ;;  %v1129_v7 = vpop.f32.mrb[2].mxu0  ;;  %4585 = vmatpush1.bf16.msra.mxu0 %v4584_v58  ;;  %v2542_v4 = vld [vmem:[#allocation9 + $0xf0] sm:$0xff]  ;;  %v2556_v58 = vld [vmem:[#allocation9 + $0x160] sm:$0xff]  ;;  %v4634_v57 = vpack.c.bf16 %v2575_v52, %v2573_v51 }
 0x1fa   : > { %v5941_v62 = vadd.f32 %v1172_v2, %v1129_v7  ;;  %v1131_v8 = vpop.f32.mrb[3].mxu0  ;;  %4587 = vmatprep.subr.bf16.mxu0 %v4586_v32  ;;  %v2540_v2 = vld [vmem:[#allocation9 + $0xe0] sm:$0xff]  ;;  %v2547_v7 = vld [vmem:[#allocation9 + $0x118] sm:$0xff]  ;;  %v2558_v32 = vld [vmem:[#allocation9 + $0x170] sm:$0xff] }
 0x1fb   : > { %v5943_v10 = vadd.f32 %v1174_v5, %v1131_v8  ;;  %v2545_v5 = vld [vmem:[#allocation9 + $0x108] sm:$0xff]  ;;  %v4604_v8 = vpack.c.bf16 %v2542_v4, %v2540_v2  ;;  %v4620_v34 = vpack.c.bf16 %v2558_v32, %v2556_v58 }
 0x1fc   : > { %v4606_v15 = vpack.c.bf16 %v2547_v7, %v2545_v5 }
 0x1fd   : > { %4589 = vmatpush1.bf16.msra.mxu0 %v4588_v38  ;;  %v2562_v38 = vld [vmem:[#allocation9 + $0x190] sm:$0xff] }
 0x1fe   : > { %4591 = vmatprep.subr.bf16.mxu0 %v4590_v39  ;;  %v4622_v39 = vpack.c.bf16 %v2563_v35, %v2561_v33  ;;  %v4624_v42 = vpack.c.bf16 %v2562_v38, %v2560_v37 }
 0x201   : > { %4593 = vmatpush1.bf16.msra.mxu0 %v4592_v44  ;;  %v2564_v44 = vld [vmem:[#allocation9 + $0x1a0] sm:$0xff] }
 0x202   : > { %4595 = vmatprep.subr.bf16.mxu0 %v4594_v45  ;;  %v2566_v45 = vld [vmem:[#allocation9 + $0x1b0] sm:$0xff] }
 0x203   : > { %v4628_v1 = vpack.c.bf16 %v2566_v45, %v2564_v44 }
 0x205   : > { %4597 = vmatpush1.bf16.msra.mxu0 %v4596_v49  ;;  %v2568_v49 = vld [vmem:[#allocation9 + $0x1c0] sm:$0xff] }
 0x206   : > { %v5945_v11 = vpop.f32.mrb[8].mxu1  ;;  %4599 = vmatprep.subr.bf16.mxu0 %v4598_v50  ;;  %v2570_v50 = vld [vmem:[#allocation9 + $0x1d0] sm:$0xff] }
 0x207   : > { %v5947_v12 = vpop.f32.mrb[9].mxu1  ;;  %v4632_v56 = vpack.c.bf16 %v2570_v50, %v2568_v49 }
 0x208   : > { %v5949_v13 = vpop.f32.mrb[10].mxu1 }
 0x209   : > { %v5951_v14 = vpop.f32.mrb[11].mxu1  ;;  %4601 = vmatpush1.bf16.msra.mxu0 %v4600_v60  ;;  %v2572_v60 = vld [vmem:[#allocation9 + $0x1e0] sm:$0xff] }
 0x20a   : > { %4603 = vmatprep.subr.bf16.mxu0 %v4602_v61  ;;  %v2574_v61 = vld [vmem:[#allocation9 + $0x1f0] sm:$0xff] }
 0x20b   : > { %v4636_v2 = vpack.c.bf16 %v2574_v61, %v2572_v60 }
 0x20d   : > { %4605 = vmatpush1.bf16.msra.mxu0 %v4604_v8 }
 0x20e   : > { %4607 = vmatprep.subr.bf16.mxu0 %v4606_v15 }
 0x211   : > { %4609 = vmatpush1.bf16.msra.mxu0 %v4608_v20 }
 0x212   : > { %4611 = vmatprep.subr.bf16.mxu0 %v4610_v21 }
 0x215   : > { %4613 = vmatpush1.bf16.msra.mxu0 %v4612_v23 }
 0x216   : > { %4615 = vmatprep.subr.bf16.mxu0 %v4614_v26 }
 0x219   : > { %4617 = vmatpush1.bf16.msra.mxu0 %v4616_v28 }
 0x21a   : > { %4619 = vmatprep.subr.bf16.mxu0 %v4618_v31 }
 0x21d   : > { %4621 = vmatpush1.bf16.msra.mxu0 %v4620_v34 }
 0x21e   : > { %4623 = vmatprep.subr.bf16.mxu0 %v4622_v39 }
 0x221   : > { %4625 = vmatpush1.bf16.msra.mxu0 %v4624_v42 }
 0x222   : > { %4627 = vmatprep.subr.bf16.mxu0 %v4626_v43 }
 0x225   : > { %4629 = vmatpush1.bf16.msra.mxu0 %v4628_v1 }
 0x226   : > { %4631 = vmatprep.subr.bf16.mxu0 %v4630_v48 }
 0x229   : > { %4633 = vmatpush1.bf16.msra.mxu0 %v4632_v56 }
 0x22a   : > { %4635 = vmatprep.subr.bf16.mxu0 %v4634_v57 }
 0x22d   : > { %4637 = vmatpush1.bf16.msra.mxu0 %v4636_v2 }
 0x237   : > { %v5953_v54 = vpop.f32.mrb[4].mxu0 }
 0x238   : > { %v5955_v36 = vpop.f32.mrb[5].mxu0 }
 0x239   : > { %v5957_v59 = vpop.f32.mrb[6].mxu0 }
 0x23a   : > { %v5959_v55 = vpop.f32.mrb[7].mxu0 }
 0x277   : > { %v1660_v4 = vpop.f32.mrb[8].mxu0 }
 0x278   : > { %v1661_v5 = vadd.f32 %v1660_v4, %v5937_v3  ;;  %v1662_v7 = vpop.f32.mrb[9].mxu0 }
 0x279   : > { %v1663_v8 = vadd.f32 %v1662_v7, %v5939_v6  ;;  %v1664_v15 = vpop.f32.mrb[10].mxu0 }
 0x27a   : > { %v1665_v16 = vadd.f32 %v1664_v15, %v5941_v62  ;;  %v1666_v17 = vpop.f32.mrb[11].mxu0  ;;  %v1704_v18 = vadd.f32 %v5945_v11, %v1661_v5 }
 0x27b   : > { %v1667_v19 = vadd.f32 %v1666_v17, %v5943_v10  ;;  %v1706_v20 = vadd.f32 %v5947_v12, %v1663_v8  ;;  %v2447_v12 = vshrl.u32 %v454_v0, 7 }
 0x27c   : > { %v1708_v21 = vadd.f32 %v5949_v13, %v1665_v16  ;;  %v2444_v13 = vld [vmem:[%s6189_s3] sm:$0x3] }
 0x27d   : > { %v1710_v22 = vadd.f32 %v5951_v14, %v1667_v19  ;;  %v5985_v14 = vsub.s32 0, %v2447_v12 }
 0x29e   : > { %v2427_v63 = vpop.f32.mrb[4].mxu1 }
 0x29f   : > { %v5970_v3 = vadd.f32 %v2427_v63, %v5953_v54  ;;  %v2429_v23 = vpop.f32.mrb[5].mxu1  ;;  %v5987_v54 = vsub.s32 1, %v2447_v12  ;;  %v5174_v63 = vld [vmem:[#allocation8 + $0x130] ss:$8 sps:$4 sm:$0xff]  }
 0x2a0   : > { %v5973_v6 = vadd.f32 %v2429_v23, %v5955_v36  ;;  %v2431_v62 = vpop.f32.mrb[6].mxu1  ;;  %v2449_v36 = vrot.slane %v2444_v13, %v5985_v14  ;;  %v5179_v23 = vld [vmem:[#allocation8 + $0x144] ss:$8 sps:$4 sm:$0xff]   ;;  %v5180_v12 = vld [vmem:[#allocation8 + $0x150] ss:$8 sps:$4 sm:$0xff]  }
 0x2a1   : > { %v5976_v24 = vadd.f32 %v2431_v62, %v5957_v59  ;;  %v2433_v11 = vpop.f32.mrb[7].mxu1  ;;  %v2453_v59 = vrot.slane %v2444_v13, %v5987_v54  ;;  %v5177_v62 = vld [vmem:[#allocation8 + $0x140] ss:$8 sps:$4 sm:$0xff]   ;;  %v5185_v13 = vld [vmem:[#allocation8 + $0x164] ss:$8 sps:$4 sm:$0xff]  }
 0x2a2   : > { %v5979_v10 = vadd.f32 %v2433_v11, %v5959_v55  ;;  %v5182_v11 = vld [vmem:[#allocation8 + $0x154] ss:$8 sps:$4 sm:$0xff]  }
 0x2c3   : > { %v2341_v25 = vpop.f32.mrb[12].mxu0 }
 0x2c4   : > { %v4705_v26 = vadd.f32 %v2341_v25, %v1704_v18  ;;  %v2343_v27 = vpop.f32.mrb[13].mxu0  ;;  %v5188_v25 = vld [vmem:[#allocation8 + $0x174] ss:$8 sps:$4 sm:$0xff]  }
 0x2c5   : > { %v4709_v53 = vadd.f32 %v2343_v27, %v1706_v20  ;;  %v2345_v55 = vpop.f32.mrb[14].mxu0  ;;  %v5171_v20 = vld [vmem:[#allocation8 + $0x120] ss:$8 sps:$4 sm:$0xff]  }
 0x2c6   : > { %v5991_v28 = vadd.f32 %v4705_v26, %v2449_v36  ;;  %v4713_v0 = vadd.f32 %v2345_v55, %v1708_v21  ;;  %v2347_v29 = vpop.f32.mrb[15].mxu0  ;;  %v5173_v21 = vld [vmem:[#allocation8 + $0x124] ss:$8 sps:$4 sm:$0xff]   ;;  %v5189_v27 = vld [vmem:[#allocation8 + $0x180] ss:$8 sps:$4 sm:$0xff]  }
 0x2c7   : > { %v5993_v30 = vadd.f32 %v4709_v53, %v2453_v59  ;;  %v4717_v31 = vadd.f32 %v2347_v29, %v1710_v22  ;;  %v5176_v22 = vld [vmem:[#allocation8 + $0x134] ss:$8 sps:$4 sm:$0xff]   ;;  %3108 = vmatprep.subr.bf16.mxu1 %v5173_v21  ;;  %v5191_v26 = vld [vmem:[#allocation8 + $0x184] ss:$8 sps:$4 sm:$0xff]   ;;  %v5192_v55 = vld [vmem:[#allocation8 + $0x190] ss:$8 sps:$4 sm:$0xff]  }
 0x2c8   : > { %v5995_v58 = vadd.f32 %v4713_v0, %v2449_v36  ;;  %v2492_v33 = vmul.f32 %v5991_v28, %v5991_v28  ;;  %3109 = vmatpush1.bf16.msra.mxu1 %v5171_v20  ;;  %v5183_v36 = vld [vmem:[#allocation8 + $0x160] ss:$8 sps:$4 sm:$0xff]   ;;  %v5194_v53 = vld [vmem:[#allocation8 + $0x194] ss:$8 sps:$4 sm:$0xff]   ;;  %v5197_v0 = vld [vmem:[#allocation8 + $0x1a4] ss:$8 sps:$4 sm:$0xff]  }
 0x2c9   : > { %v5997_v32 = vadd.f32 %v4717_v31, %v2453_v59  ;;  %v2493_v37 = vmul.f32 %v5993_v30, %v5993_v30  ;;  %3110 = vmatprep.subr.bf16.mxu1 %v5176_v22  ;;  %v5186_v59 = vld [vmem:[#allocation8 + $0x170] ss:$8 sps:$4 sm:$0xff]   ;;  %v5195_v29 = vld [vmem:[#allocation8 + $0x1a0] ss:$8 sps:$4 sm:$0xff]   ;;  %v5200_v31 = vld [vmem:[#allocation8 + $0x1b4] ss:$8 sps:$4 sm:$0xff]  }
 0x2ca   : > { %v2478_v34 = vadd.f32 %v5995_v58, %v5991_v28  ;;  %v2494_v35 = vmul.f32 %v5995_v58, %v5995_v58 }
 0x2cb   : > { %v2485_v38 = vadd.f32 %v5997_v32, %v5993_v30  ;;  %v2495_v39 = vmul.f32 %v5997_v32, %v5997_v32 }
 0x2cc   : > { %v2479_v40 = vrot.slane %v2478_v34, 4  ;;  %v2496_v41 = vadd.f32 %v2494_v35, %v2492_v33  ;;  %3111 = vmatpush1.bf16.msra.mxu1 %v5174_v63  ;;  %v5198_v33 = vld [vmem:[#allocation8 + $0x1b0] ss:$8 sps:$4 sm:$0xff]  }
 0x2cd   : > { %v2486_v42 = vrot.slane %v2485_v38, 4  ;;  %v2503_v43 = vadd.f32 %v2495_v39, %v2493_v37  ;;  %3112 = vmatprep.subr.bf16.mxu1 %v5179_v23 }
 0x2ce   : > { %v2480_v44 = vadd.f32 %v2479_v40, %v2478_v34  ;;  %v2497_v45 = vrot.slane %v2496_v41, 4 }
 0x2cf   : > { %v2487_v46 = vadd.f32 %v2486_v42, %v2485_v38  ;;  %v2504_v47 = vrot.slane %v2503_v43, 4 }
 0x2d0   : > { %v2481_v1 = vrot.slane %v2480_v44, 2  ;;  %v2498_v48 = vadd.f32 %v2497_v45, %v2496_v41  ;;  %3113 = vmatpush1.bf16.msra.mxu1 %v5177_v62 }
 0x2d1   : > { %v2488_v49 = vrot.slane %v2487_v46, 2  ;;  %v2505_v50 = vadd.f32 %v2504_v47, %v2503_v43  ;;  %3114 = vmatprep.subr.bf16.mxu1 %v5182_v11 }
 0x2d2   : > { %v2482_v51 = vadd.f32 %v2481_v1, %v2480_v44  ;;  %v2499_v52 = vrot.slane %v2498_v48, 2  ;;  %v2476_v1 = vld [vmem:[%s6192_s6] sm:$0x3] }
 0x2d3   : > { %v2489_v56 = vadd.f32 %v2488_v49, %v2487_v46  ;;  %v2506_v57 = vrot.slane %v2505_v50, 2 }
 0x2d4   : > { %v2500_v60 = vadd.f32 %v2499_v52, %v2498_v48  ;;  %v2483_v4 = vrot.slane %v2482_v51, 1  ;;  %3115 = vmatpush1.bf16.msra.mxu1 %v5180_v12 }
 0x2d5   : > { %v2490_v61 = vrot.slane %v2489_v56, 1  ;;  %v2507_v2 = vadd.f32 %v2506_v57, %v2505_v50  ;;  %3116 = vmatprep.subr.bf16.mxu1 %v5185_v13  ;;  %v2477_v50 = vld [vmem:[%s6193_s7] sm:$0x3] }
 0x2d6   : > { %v2501_v5 = vrot.slane %v2500_v60, 1  ;;  %v2484_v17 = vadd.f32 %v2483_v4, %v2482_v51 }
 0x2d7   : > { %v2508_v7 = vrot.slane %v2507_v2, 1  ;;  %v2491_v15 = vadd.f32 %v2490_v61, %v2489_v56 }
 0x2d8   : > { %v2502_v8 = vadd.f32 %v2501_v5, %v2500_v60  ;;  %3117 = vmatpush1.bf16.msra.mxu1 %v5183_v36  ;;  %v2692_v60 = vrot.slane %v2476_v1, %v5985_v14  ;;  %v2696_v5 = vrot.slane %v2476_v1, %v5987_v54 }
 0x2d9   : > { %v2509_v16 = vadd.f32 %v2508_v7, %v2507_v2  ;;  %3118 = vmatprep.subr.bf16.mxu1 %v5188_v25 }
 0x2da   : > { %v2510_v19 = vsel %vm479_vm7, %v2484_v17, %v2502_v8 }
 0x2db   : > { %v2511_v18 = vsel %vm479_vm7, %v2491_v15, %v2509_v16  ;;  %v2707_v15 = vrot.slane %v2477_v50, %v5985_v14 }
 0x2dc   : > { %2640 = vmatprep.mubr.f32.mxu0 %v2511_v18  ;;  %3119 = vmatpush1.bf16.msra.mxu1 %v5186_v59 }
 0x2dd   : > { %2641 = vmatmul.mubr.f32.vlgmr.msra.gmra.mrb[16].mxu0 %v2510_v19  ;;  %3120 = vmatprep.subr.bf16.mxu1 %v5191_v26 }
 0x2e0   : > { %3121 = vmatpush1.bf16.msra.mxu1 %v5189_v27 }
 0x2e1   : > { %3122 = vmatprep.subr.bf16.mxu1 %v5194_v53 }
 0x2e4   : > { %3123 = vmatpush1.bf16.msra.mxu1 %v5192_v55  ;;  %v2460_v55 = vld [vmem:[%s6190_s4] sm:$0x3] }
 0x2e5   : > { %3124 = vmatprep.subr.bf16.mxu1 %v5197_v0  ;;  %v5201_v0 = vld [vmem:[#allocation8 + $0x1c0] ss:$8 sps:$4 sm:$0xff]  }
 0x2e8   : > { %3125 = vmatpush1.bf16.msra.mxu1 %v5195_v29  ;;  %v5203_v29 = vld [vmem:[#allocation8 + $0x1c4] ss:$8 sps:$4 sm:$0xff]  }
 0x2e9   : > { %3126 = vmatprep.subr.bf16.mxu1 %v5200_v31  ;;  %v2465_v31 = vrot.slane %v2460_v55, %v5985_v14 }
 0x2ec   : > { %3127 = vmatpush1.bf16.msra.mxu1 %v5198_v33  ;;  %v2469_v33 = vrot.slane %v2460_v55, %v5987_v54 }
 0x2ed   : > { %3128 = vmatprep.subr.bf16.mxu1 %v5203_v29 }
 0x2ee   : > { %v2475_v1 = vadd.f32 %v5979_v10, %v2469_v33  ;;  %v5215_v10 = vld [vmem:[#allocation8 + $0x204] ss:$8 sps:$4 sm:$0xff]  }
 0x2f0   : > { %3129 = vmatpush1.bf16.msra.mxu1 %v5201_v0 }
 0x3b0   : > { %v2642_v34 = vpop.f32.mrb[16].mxu0 }
 0x3b1   : > { %v2648_v35 = vmul.f32 0.001953125, %v2642_v34  ;;  %v2644_v37 = vpop.f32.mrb[17].mxu0 }
 0x3b2   : > { %v2649_v38 = vmul.f32 0.001953125, %v2644_v37  ;;  %v5206_v37 = vld [vmem:[#allocation8 + $0x1d4] ss:$8 sps:$4 sm:$0xff]  }
 0x3b3   : > { %v2650_v39 = vmul.f32 %v2648_v35, %v2648_v35  ;;  %v2667_v47 = vrot.slane %v2648_v35, %v5985_v14  ;;  %3130 = vmatprep.subr.bf16.mxu1 %v5206_v37 }
 0x3b4   : > { %v2651_v40 = vmul.f32 %v2649_v38, %v2649_v38  ;;  %v2671_v48 = vrot.slane %v2649_v38, %v5985_v14 }
 0x3b5   : > { %v2654_v41 = vrot.slane %v2650_v39, 7  ;;  %v2672_v52 = vsub.f32 %v5991_v28, %v2667_v47  ;;  %v2674_v56 = vsub.f32 %v5995_v58, %v2667_v47  ;;  %v2711_v58 = vrot.slane %v2477_v50, %v5987_v54  ;;  %v5207_v50 = vld [vmem:[#allocation8 + $0x1e0] ss:$8 sps:$4 sm:$0xff]  }
 0x3b6   : > { %v2655_v42 = vrot.slane %v2651_v40, 7  ;;  %v2673_v61 = vsub.f32 %v5993_v30, %v2671_v48  ;;  %v2675_v2 = vsub.f32 %v5997_v32, %v2671_v48  ;;  %v2472_v39 = vadd.f32 %v5970_v3, %v2465_v31 }
 0x3b7   : > { %v2658_v43 = vsub.f32 %v2648_v35, %v2654_v41  ;;  %v5204_v35 = vld [vmem:[#allocation8 + $0x1d0] ss:$8 sps:$4 sm:$0xff]  }
 0x3b8   : > { %v2659_v44 = vsub.f32 %v2649_v38, %v2655_v42  ;;  %v2473_v42 = vadd.f32 %v5973_v6, %v2469_v33  ;;  %3131 = vmatpush1.bf16.msra.mxu1 %v5204_v35 }
 0x3b9   : > { %v2660_v45 = vadd.f32 1e-05, %v2658_v43 }
 0x3ba   : > { %v2661_v46 = vadd.f32 1e-05, %v2659_v44 }
 0x3bb   : > { %5333 = vrsqrt.f32 %v2660_v45  ;;  %v2474_v45 = vadd.f32 %v5976_v24, %v2465_v31  ;;  %v5210_v24 = vld [vmem:[#allocation8 + $0x1f0] ss:$8 sps:$4 sm:$0xff]  }
 0x3bc   : > { %5335 = vrsqrt.f32 %v2661_v46 }
 0x3c5   : > { %v5334_v49 = vpop.eup %5333 }
 0x3c6   : > { %v5336_v51 = vpop.eup %5335  ;;  %v2679_v57 = vrot.slane %v5334_v49, %v5987_v54 }
 0x3c7   : > { %v2683_v4 = vrot.slane %v5336_v51, %v5987_v54  ;;  %v5209_v51 = vld [vmem:[#allocation8 + $0x1e4] ss:$8 sps:$4 sm:$0xff]  }
 0x3c8   : > { %v2684_v7 = vmul.f32 %v2679_v57, %v2672_v52  ;;  %v2686_v8 = vmul.f32 %v2679_v57, %v2674_v56  ;;  %v5212_v56 = vld [vmem:[#allocation8 + $0x1f4] ss:$8 sps:$4 sm:$0xff]   ;;  %3132 = vmatprep.subr.bf16.mxu1 %v5209_v51 }
 0x3c9   : > { %v2685_v16 = vmul.f32 %v2683_v4, %v2673_v61  ;;  %v2687_v28 = vmul.f32 %v2683_v4, %v2675_v2  ;;  %3133 = vmatpush1.bf16.msra.mxu1 %v5207_v50 }
 0x3ca   : > { %v2701_v17 = vmul.f32 %v2692_v60, %v2686_v8  ;;  %v2699_v18 = vmul.f32 %v2692_v60, %v2684_v7  ;;  %3134 = vmatprep.subr.bf16.mxu1 %v5212_v56  ;;  %v5218_v7 = vld [vmem:[#allocation8 + $0x214] ss:$8 sps:$4 sm:$0xff]   ;;  %v5216_v8 = vld [vmem:[#allocation8 + $0x210] ss:$8 sps:$4 sm:$0xff]  }
 0x3cb   : > { %v2702_v19 = vmul.f32 %v2696_v5, %v2687_v28  ;;  %v2700_v20 = vmul.f32 %v2696_v5, %v2685_v16  ;;  %v5213_v5 = vld [vmem:[#allocation8 + $0x200] ss:$8 sps:$4 sm:$0xff]  }
 0x3cc   : > { %v2714_v21 = vadd.f32 %v2707_v15, %v2699_v18  ;;  %v2716_v30 = vadd.f32 %v2707_v15, %v2701_v17  ;;  %v5221_v15 = vld [vmem:[#allocation8 + $0x224] ss:$8 sps:$4 sm:$0xff]  }
 0x3cd   : > { %v2715_v22 = vadd.f32 %v2711_v58, %v2700_v20  ;;  %v2717_v32 = vadd.f32 %v2711_v58, %v2702_v19  ;;  %3135 = vmatpush1.bf16.msra.mxu1 %v5210_v24  ;;  %v5228_v24 = vld [vmem:[#allocation8 + $0x10] ss:$8 sps:$4 sm:$0xff]  }
 0x3ce   : > { %v4448_v63 = vmul.f32 -1.442695, %v2714_v21  ;;  %v4450_v23 = vmul.f32 -1.442695, %v2716_v30  ;;  %3136 = vmatprep.subr.bf16.mxu1 %v5215_v10  ;;  %v5231_v10 = vld [vmem:[#allocation8 + $0x20] ss:$8 sps:$4 sm:$0xff]  }
 0x3cf   : > { %v4449_v62 = vmul.f32 -1.442695, %v2715_v22  ;;  %v4451_v11 = vmul.f32 -1.442695, %v2717_v32 }
 0x3d0   : > { %5337 = vpow2.f32 %v4448_v63 }
 0x3d1   : > { %5339 = vpow2.f32 %v4449_v62  ;;  %3137 = vmatpush1.bf16.msra.mxu1 %v5213_v5  ;;  %v5239_v5 = vld [vmem:[#allocation8 + $0x44] ss:$8 sps:$4 sm:$0xff]  }
 0x3d2   : > { %5341 = vpow2.f32 %v4450_v23  ;;  %3138 = vmatprep.subr.bf16.mxu1 %v5218_v7  ;;  %v5237_v7 = vld [vmem:[#allocation8 + $0x40] ss:$8 sps:$4 sm:$0xff]  }
 0x3d3   : > { %5343 = vpow2.f32 %v4451_v11 }
 0x3d5   : > { %3139 = vmatpush1.bf16.msra.mxu1 %v5216_v8  ;;  %v5242_v8 = vld [vmem:[#allocation8 + $0x54] ss:$8 sps:$4 sm:$0xff]  }
 0x3d6   : > { %3151 = vmatprep.subr.bf16.mxu1 %v5221_v15  ;;  %v5240_v15 = vld [vmem:[#allocation8 + $0x50] ss:$8 sps:$4 sm:$0xff]  }
 0x3da   : > { %v5338_v12 = vpop.eup %5337 }
 0x3db   : > { %v5340_v13 = vpop.eup %5339  ;;  %v2730_v36 = vadd.f32 1.0, %v5338_v12 }
 0x3dc   : > { %v5342_v25 = vpop.eup %5341  ;;  %v2731_v59 = vadd.f32 1.0, %v5340_v13 }
 0x3dd   : > { %v5344_v26 = vpop.eup %5343  ;;  %5345 = vrcp.f32 %v2730_v36  ;;  %v2732_v27 = vadd.f32 1.0, %v5342_v25 }
 0x3de   : > { %5347 = vrcp.f32 %v2731_v59  ;;  %v2733_v53 = vadd.f32 1.0, %v5344_v26 }
 0x3df   : > { %5349 = vrcp.f32 %v2732_v27 }
 0x3e0   : > { %5351 = vrcp.f32 %v2733_v53 }
 0x3e7   : > { %v5346_v34 = vpop.eup %5345 }
 0x3e8   : > { %v5348_v38 = vpop.eup %5347  ;;  %v2742_v40 = vmul.f32 %v5346_v34, %v2714_v21 }
 0x3e9   : > { %v5350_v41 = vpop.eup %5349  ;;  %v2743_v43 = vmul.f32 %v5348_v38, %v2715_v22 }
 0x3ea   : > { %v5352_v44 = vpop.eup %5351  ;;  %v2746_v46 = vadd.f32 %v2742_v40, %v2472_v39  ;;  %v2744_v47 = vmul.f32 %v5350_v41, %v2716_v30  ;;  %v5219_v40 = vld [vmem:[#allocation8 + $0x220] ss:$8 sps:$4 sm:$0xff]  }
 0x3eb   : > { %v2747_v48 = vadd.f32 %v2743_v43, %v2473_v42  ;;  %v2745_v49 = vmul.f32 %v5352_v44, %v2717_v32  ;;  %v5224_v43 = vld [vmem:[#allocation8 + $0x234] ss:$8 sps:$4 sm:$0xff]  }
 0x3ec   : > { %v2754_v52 = vrot.slane %v2746_v46, 7  ;;  %v2748_v3 = vadd.f32 %v2744_v47, %v2474_v45  ;;  %v5222_v46 = vld [vmem:[#allocation8 + $0x230] ss:$8 sps:$4 sm:$0xff]  }
 0x3ed   : > { %v2755_v57 = vrot.slane %v2747_v48, 7  ;;  %v2749_v60 = vadd.f32 %v2745_v49, %v2475_v1  ;;  %v5227_v1 = vld [vmem:[#allocation8 + $0x4] ss:$8 sps:$4 sm:$0xff]  }
 0x3ee   : > { %2760 = vrot.lane.b32.xlu0 %v2754_v52, %s5577_s23  ;;  %v2756_v6 = vrot.slane %v2748_v3, 7  ;;  %v5225_v3 = vld [vmem:[#allocation8] ss:$8 sps:$4 sm:$0xff]  }
 0x3ef   : > { %2762 = vrot.lane.b32.xlu1 %v2755_v57, %s5577_s23  ;;  %v2758_v61 = vrot.slane %v2749_v60, 7 }
 0x3f0   : > { %v2757_v2 = vsel %vm479_vm7, %v2754_v52, %v2756_v6 }
 0x3f1   : > { %v2759_v4 = vsel %vm479_vm7, %v2755_v57, %v2758_v61  ;;  %v5230_v57 = vld [vmem:[#allocation8 + $0x14] ss:$8 sps:$4 sm:$0xff]  }
 0x3f2   : > { %2764 = vrot.lane.b32.xlu0 %v2757_v2, %s5577_s23  ;;  %v5236_v2 = vld [vmem:[#allocation8 + $0x34] ss:$8 sps:$4 sm:$0xff]  }
 0x3f3   : > { %2766 = vrot.lane.b32.xlu1 %v2759_v4, %s5577_s23  ;;  %v5234_v4 = vld [vmem:[#allocation8 + $0x30] ss:$8 sps:$4 sm:$0xff]  }
 0x3f6   : > { %2768 = vrot.lane.b32.xlu0 %v2756_v6, %s5577_s23 }
 0x3f7   : > { %2770 = vrot.lane.b32.xlu1 %v2758_v61, %s5577_s23  ;;  %v5233_v61 = vld [vmem:[#allocation8 + $0x24] ss:$8 sps:$4 sm:$0xff]  }
 0x460   : > { %v2761_v16 = vpop.permute.xlu0 %2760 }
 0x461   : > { %2784 = vst.msk [vmem:[#allocation2] sm:$0xfe] %vm510_vm8, %v2761_v16  ;;  %v2763_v28 = vpop.permute.xlu1 %2762 }
 0x462   : > { %v2772_v58 = vsel %vm465_vm1, %v2761_v16, %v2763_v28  ;;  %2786 = vst.msk [vmem:[#allocation2 + $0x10] sm:$0xfe] %vm463_vm0, %v2763_v28  ;;  %v5245_v16 = vld [vmem:[#allocation8 + $0x64] ss:$8 sps:$4 sm:$0xff]   ;;  %v5243_v28 = vld [vmem:[#allocation8 + $0x60] ss:$8 sps:$4 sm:$0xff]  }
 0x463   : > { %2785 = vst [vmem:[#allocation2 + $0x8] sm:$0xfe] %v2772_v58  ;;  %v5248_v58 = vld [vmem:[#allocation8 + $0x74] ss:$8 sps:$4 sm:$0xff]  }
 0x464   : > { %v2765_v17 = vpop.permute.xlu0 %2764 }
 0x465   : > { %2787 = vst.msk [vmem:[#allocation2 + $0x18] sm:$0xff] %vm514_vm9, %v2765_v17  ;;  %v2767_v18 = vpop.permute.xlu1 %2766 }
 0x466   : > { %v6053_v19 = vsel %vm465_vm1, %v2765_v17, %v2767_v18  ;;  %2789 = vst.msk [vmem:[#allocation2 + $0x28] sm:$0xff] %vm465_vm1, %v2767_v18  ;;  %v5246_v17 = vld [vmem:[#allocation8 + $0x70] ss:$8 sps:$4 sm:$0xff]   ;;  %v5251_v18 = vld [vmem:[#allocation8 + $0x84] ss:$8 sps:$4 sm:$0xff]  }
 0x468   : > { %v2769_v20 = vpop.permute.xlu0 %2768  ;;  %v2838_v23 = vld [vmem:[#allocation2] sm:$0xfe] }
 0x469   : > { %2790 = vst.msk [vmem:[#allocation2 + $0x30] sm:$0x1] %vm518_vm10, %v2769_v20  ;;  %v2771_v21 = vpop.permute.xlu1 %2770  ;;  %v2840_v37 = vld [vmem:[#allocation2 + $0x10] sm:$0xfe] }
 0x46a   : > { %v2774_v30 = vsel %vm465_vm1, %v2769_v20, %v2771_v21  ;;  %2792 = vst.msk [vmem:[#allocation2 + $0x40] sm:$0x1] %vm467_vm5, %v2771_v21  ;;  %v2839_v22 = vld [vmem:[#allocation2 + $0x8] sm:$0xfe]  ;;  %v3855_v20 = vld [vmem:[#allocation9 + $0x8] sm:$0xff]  ;;  %v3857_v21 = vld [vmem:[#allocation9 + $0x18] sm:$0xff] }
 0x46b   : > { %2791 = vst [vmem:[#allocation2 + $0x38] sm:$0x1] %v2774_v30  ;;  %v2845_v32 = vpack.c.bf16 %v6053_v19, %v2839_v22  ;;  %v2794_v52 = vld [vmem:[#allocation2 + $0x8] sm:$0xff]  ;;  %v4638_v22 = vpack.c.bf16 %v3857_v21, %v3855_v20  ;;  %v3887_v21 = vld [vmem:[#allocation9 + $0x108] sm:$0xff] }
 0x46c   : > { %v6060_v63 = vld [vmem:[#allocation2 + $0x18] sm:$0xff]  ;;  %v2800_v6 = vpack.c.bf16 %v6053_v19, %v2794_v52  ;;  %v3854_v30 = vld [vmem:[#allocation9] sm:$0xff] }
 0x46d   : > { %v2844_v62 = vpack.c.bf16 %v6060_v63, %v2838_v23  ;;  %v2902_v11 = vshll.u32 %v2845_v32, 16  ;;  %v2900_v55 = vshrl.u32 %v2845_v32, 16  ;;  %v6063_v29 = vld [vmem:[#allocation2 + $0x28] sm:$0xff]  ;;  %v3856_v32 = vld [vmem:[#allocation9 + $0x10] sm:$0xff]  ;;  %v3859_v23 = vld [vmem:[#allocation9 + $0x28] sm:$0xff]  ;;  %4639 = vmatprep.subr.bf16.mxu0 %v4638_v22 }
 0x46e   : > { %v2846_v41 = vpack.c.bf16 %v6063_v29, %v2840_v37  ;;  %v5252_v37 = vld [vmem:[#allocation8 + $0x90] ss:$8 sps:$4 sm:$0xff]   ;;  %v5269_v20 = vld [vmem:[#allocation8 + $0xe4] ss:$8 sps:$4 sm:$0xff]  }
 0x46f   : > { %v2890_v13 = vshll.u32 %v2844_v62, 16  ;;  %v2904_v26 = vrot.slane %v2902_v11, 1  ;;  %v2888_v31 = vshrl.u32 %v2844_v62, 16  ;;  %v3861_v62 = vld [vmem:[#allocation9 + $0x38] sm:$0xff]  ;;  %v4640_v11 = vpack.c.bf16 %v3856_v32, %v3854_v30  ;;  %v5267_v32 = vld [vmem:[#allocation8 + $0xe0] ss:$8 sps:$4 sm:$0xff]  }
 0x470   : > { %v2841_v12 = vld [vmem:[#allocation2 + $0x30] sm:$0x1]  ;;  %v2914_v47 = vshll.u32 %v2846_v41, 16  ;;  %v2912_v50 = vshrl.u32 %v2846_v41, 16  ;;  %v5257_v41 = vld [vmem:[#allocation8 + $0xa4] ss:$8 sps:$4 sm:$0xff]  }
 0x471   : > { %v2847_v36 = vpack.c.bf16 %v2841_v12, %v2841_v12  ;;  %v2892_v53 = vrot.slane %v2890_v13, 1  ;;  %v2905_v34 = vor.u32 %v2904_v26, %v2900_v55  ;;  %v2843_v38 = vld [vmem:[#allocation2 + $0x40] sm:$0x1]  ;;  %v4642_v12 = vpack.c.bf16 %v3861_v62, %v3859_v23  ;;  %v3858_v13 = vld [vmem:[#allocation9 + $0x20] sm:$0xff]  ;;  %4641 = vmatpush1.bf16.msra.mxu0 %v4640_v11  ;;  %v3888_v11 = vld [vmem:[#allocation9 + $0x110] sm:$0xff] }
 0x472   : > { %v2842_v25 = vld [vmem:[#allocation2 + $0x38] sm:$0x1]  ;;  %v2849_v45 = vpack.c.bf16 %v2843_v38, %v2843_v38  ;;  %v2916_v49 = vrot.slane %v2914_v47, 1  ;;  %v3862_v55 = vld [vmem:[#allocation9 + $0x40] sm:$0xff]  ;;  %v3889_v30 = vld [vmem:[#allocation9 + $0x118] sm:$0xff] }
 0x473   : > { %v2848_v59 = vpack.c.bf16 %v2842_v25, %v2842_v25  ;;  %v2895_v27 = vshll.u32 %v2847_v36, 16  ;;  %v2893_v39 = vor.u32 %v2892_v53, %v2888_v31  ;;  %v3860_v36 = vld [vmem:[#allocation9 + $0x30] sm:$0xff]  ;;  %v3863_v25 = vld [vmem:[#allocation9 + $0x48] sm:$0xff]  ;;  %4643 = vmatprep.subr.bf16.mxu0 %v4642_v12  ;;  %v3870_v47 = vld [vmem:[#allocation9 + $0x80] sm:$0xff]  ;;  %v4670_v23 = vpack.c.bf16 %v3889_v30, %v3887_v21 }
 0x474   : > { %v2919_v48 = vshll.u32 %v2849_v45, 16  ;;  %v2917_v56 = vor.u32 %v2916_v49, %v2912_v50  ;;  %v4644_v26 = vpack.c.bf16 %v3860_v36, %v3858_v13  ;;  %v5254_v31 = vld [vmem:[#allocation8 + $0x94] ss:$8 sps:$4 sm:$0xff]   ;;  %v5255_v45 = vld [vmem:[#allocation8 + $0xa0] ss:$8 sps:$4 sm:$0xff]  }
 0x475   : > { %v2907_v0 = vshll.u32 %v2848_v59, 16  ;;  %v2897_v33 = vrot.slane %v2895_v27, 1  ;;  %v3865_v59 = vld [vmem:[#allocation9 + $0x58] sm:$0xff]  ;;  %v5249_v27 = vld [vmem:[#allocation8 + $0x80] ss:$8 sps:$4 sm:$0xff]  }
 0x476   : > { %v2921_v51 = vrot.slane %v2919_v48, 1  ;;  %v4646_v53 = vpack.c.bf16 %v3865_v59, %v3863_v25  ;;  %4645 = vmatpush1.bf16.msra.mxu0 %v4644_v26  ;;  %v5260_v48 = vld [vmem:[#allocation8 + $0xb4] ss:$8 sps:$4 sm:$0xff]   ;;  %v3875_v49 = vld [vmem:[#allocation9 + $0xa8] sm:$0xff]  ;;  %v5258_v52 = vld [vmem:[#allocation8 + $0xb0] ss:$8 sps:$4 sm:$0xff]  }
 0x477   : > { %v2909_v35 = vrot.slane %v2907_v0, 1  ;;  %v2898_v44 = vsel %vm688_vm11, %v2893_v39, %v2897_v33  ;;  %v3864_v0 = vld [vmem:[#allocation9 + $0x50] sm:$0xff]  ;;  %v3867_v33 = vld [vmem:[#allocation9 + $0x68] sm:$0xff]  ;;  %v3866_v39 = vld [vmem:[#allocation9 + $0x60] sm:$0xff] }
 0x478   : > { %v2922_v60 = vsel %vm688_vm11, %v2917_v56, %v2921_v51  ;;  %4647 = vmatprep.subr.bf16.mxu0 %v4646_v53  ;;  %v3877_v50 = vld [vmem:[#allocation9 + $0xb8] sm:$0xff]  ;;  %v3874_v56 = vld [vmem:[#allocation9 + $0xa0] sm:$0xff]  ;;  %v3891_v13 = vld [vmem:[#allocation9 + $0x128] sm:$0xff] }
 0x479   : > { %v2910_v42 = vsel %vm688_vm11, %v2905_v34, %v2909_v35  ;;  %v3869_v34 = vld [vmem:[#allocation9 + $0x78] sm:$0xff]  ;;  %v4648_v35 = vpack.c.bf16 %v3864_v0, %v3862_v55  ;;  %v3886_v62 = vld [vmem:[#allocation9 + $0x100] sm:$0xff]  ;;  %v3892_v53 = vld [vmem:[#allocation9 + $0x130] sm:$0xff] }
 0x47a   : > { %3140 = vmatprep.mubr.bf16.mxu1 %v2910_v42  ;;  %v4650_v38 = vpack.c.bf16 %v3869_v34, %v3867_v33  ;;  %v3871_v42 = vld [vmem:[#allocation9 + $0x88] sm:$0xff]  ;;  %v5272_v12 = vld [vmem:[#allocation8 + $0xf4] ss:$8 sps:$4 sm:$0xff]   ;;  %v4672_v25 = vpack.c.bf16 %v3888_v11, %v3886_v62  ;;  %v5270_v59 = vld [vmem:[#allocation8 + $0xf0] ss:$8 sps:$4 sm:$0xff]  }
 0x47b   : > { %3141 = vmatmul.mubr.bf16.vlgmr.msra.gmra.mrb[12].mxu1 %v2898_v44  ;;  %4649 = vmatpush1.bf16.msra.mxu0 %v4648_v35  ;;  %v3893_v36 = vld [vmem:[#allocation9 + $0x138] sm:$0xff]  ;;  %v5275_v55 = vld [vmem:[#allocation8 + $0x104] ss:$8 sps:$4 sm:$0xff]   ;;  %v5273_v33 = vld [vmem:[#allocation8 + $0x100] ss:$8 sps:$4 sm:$0xff]  }
 0x47c   : > { %3152 = vmatpush1.bf16.msra.mxu1 %v5219_v40  ;;  %3183 = vmatprep.mubr.bf16.mxu1 %v5576_v9  ;;  %v3868_v40 = vld [vmem:[#allocation9 + $0x70] sm:$0xff]  ;;  %v4674_v26 = vpack.c.bf16 %v3893_v36, %v3891_v13  ;;  %v5323_v21 = vld [vmem:[#allocation8 + $0x324] ss:$8 sps:$4 sm:$0xff]   ;;  %v3466_v30 = vld [vmem:[#allocation2 + $0x30] sm:$0x3] }
 0x47d   : > { %3153 = vmatprep.subr.bf16.mxu1 %v5224_v43  ;;  %v3873_v43 = vld [vmem:[#allocation9 + $0x98] sm:$0xff]  ;;  %v4652_v44 = vpack.c.bf16 %v3868_v40, %v3866_v39  ;;  %4651 = vmatprep.subr.bf16.mxu0 %v4650_v38  ;;  %v3467_v38 = vld [vmem:[#allocation2 + $0x38] sm:$0x3]  ;;  %v5281_v39 = vld [vmem:[#allocation8 + $0x244] ss:$8 sps:$4 sm:$0xff]  }
 0x47e   : > { %v5278_v35 = vld [vmem:[#allocation8 + $0x114] ss:$8 sps:$4 sm:$0xff]   ;;  %v3464_v40 = vld [vmem:[#allocation2 + $0x8] sm:$0xfc]  ;;  %v5324_v11 = vld [vmem:[#allocation8 + $0x330] ss:$8 sps:$4 sm:$0xff]  }
 0x47f   : > { %4653 = vmatpush1.bf16.msra.mxu0 %v4652_v44  ;;  %v5279_v44 = vld [vmem:[#allocation8 + $0x240] ss:$8 sps:$4 sm:$0xff]   ;;  %v3463_v62 = vld [vmem:[#allocation2] sm:$0xfc]  ;;  %v5329_v13 = vld [vmem:[#allocation8 + $0x344] ss:$8 sps:$4 sm:$0xff]  }
 0x480   : > { %3154 = vmatpush1.bf16.msra.mxu1 %v5222_v46  ;;  %v4654_v46 = vpack.c.bf16 %v3873_v43, %v3871_v42  ;;  %v3470_v42 = vpack.c.bf16 %v6053_v19, %v3464_v40  ;;  %v5290_v19 = vld [vmem:[#allocation8 + $0x274] ss:$8 sps:$4 sm:$0xff]   ;;  %v3894_v40 = vld [vmem:[#allocation9 + $0x140] sm:$0xff] }
 0x481   : > { %3377 = vmatprep.subr.bf16.mxu1 %v5227_v1  ;;  %v3872_v1 = vld [vmem:[#allocation9 + $0x90] sm:$0xff] }
 0x482   : > { %v4656_v51 = vpack.c.bf16 %v3872_v1, %v3870_v47  ;;  %4655 = vmatprep.subr.bf16.mxu0 %v4654_v46  ;;  %v3521_v47 = vrot.slane %v3470_v42, 1  ;;  %v5284_v1 = vld [vmem:[#allocation8 + $0x254] ss:$8 sps:$4 sm:$0xff]  }
 0x484   : > { %4657 = vmatpush1.bf16.msra.mxu0 %v4656_v51  ;;  %v5285_v51 = vld [vmem:[#allocation8 + $0x260] ss:$8 sps:$4 sm:$0xff]  }
 0x487   : > { %4488 = vmatmul.mubr.msk.bf16.vlgmr.msra.gmra.mrb[12].mxu1 %vm1087_vm12, %v2922_v60  ;;  %v5263_v60 = vld [vmem:[#allocation8 + $0xc4] ss:$8 sps:$4 sm:$0xff]  }
 0x488   : > { %3378 = vmatpush1.bf16.msra.mxu1 %v5225_v3  ;;  %3409 = vmatprep.mubr.bf16.mxu1 %v2800_v6  ;;  %v4658_v3 = vpack.c.bf16 %v3877_v50, %v3875_v49  ;;  %v3879_v6 = vld [vmem:[#allocation9 + $0xc8] sm:$0xff]  ;;  %v5282_v49 = vld [vmem:[#allocation8 + $0x250] ss:$8 sps:$4 sm:$0xff]  }
 0x489   : > { %3379 = vmatprep.subr.bf16.mxu1 %v5230_v57  ;;  %v3876_v57 = vld [vmem:[#allocation9 + $0xb0] sm:$0xff]  ;;  %v5287_v50 = vld [vmem:[#allocation8 + $0x264] ss:$8 sps:$4 sm:$0xff]  }
 0x48a   : > { %4659 = vmatprep.subr.bf16.mxu0 %v4658_v3  ;;  %v5293_v3 = vld [vmem:[#allocation8 + $0x284] ss:$8 sps:$4 sm:$0xff]  }
 0x48c   : > { %3380 = vmatpush1.bf16.msra.mxu1 %v5228_v24  ;;  %v3881_v24 = vld [vmem:[#allocation9 + $0xd8] sm:$0xff] }
 0x48d   : > { %3381 = vmatprep.subr.bf16.mxu1 %v5233_v61  ;;  %v4660_v61 = vpack.c.bf16 %v3876_v57, %v3874_v56  ;;  %v5291_v56 = vld [vmem:[#allocation8 + $0x280] ss:$8 sps:$4 sm:$0xff]   ;;  %v5296_v57 = vld [vmem:[#allocation8 + $0x294] ss:$8 sps:$4 sm:$0xff]  }
 0x48f   : > { %4661 = vmatpush1.bf16.msra.mxu0 %v4660_v61  ;;  %v5302_v61 = vld [vmem:[#allocation8 + $0x2b4] ss:$8 sps:$4 sm:$0xff]  }
 0x490   : > { %3382 = vmatpush1.bf16.msra.mxu1 %v5231_v10  ;;  %v5261_v10 = vld [vmem:[#allocation8 + $0xc0] ss:$8 sps:$4 sm:$0xff]  }
 0x491   : > { %3383 = vmatprep.subr.bf16.mxu1 %v5236_v2  ;;  %v4662_v2 = vpack.c.bf16 %v3881_v24, %v3879_v6  ;;  %v5299_v6 = vld [vmem:[#allocation8 + $0x2a4] ss:$8 sps:$4 sm:$0xff]   ;;  %v5297_v24 = vld [vmem:[#allocation8 + $0x2a0] ss:$8 sps:$4 sm:$0xff]  }
 0x493   : > { %4663 = vmatprep.subr.bf16.mxu0 %v4662_v2  ;;  %v5305_v2 = vld [vmem:[#allocation8 + $0x2c4] ss:$8 sps:$4 sm:$0xff]  }
 0x494   : > { %3384 = vmatpush1.bf16.msra.mxu1 %v5234_v4  ;;  %v3878_v4 = vld [vmem:[#allocation9 + $0xc0] sm:$0xff] }
 0x495   : > { %3385 = vmatprep.subr.bf16.mxu1 %v5239_v5  ;;  %v3880_v5 = vld [vmem:[#allocation9 + $0xd0] sm:$0xff] }
 0x498   : > { %3386 = vmatpush1.bf16.msra.mxu1 %v5237_v7  ;;  %v5266_v7 = vld [vmem:[#allocation8 + $0xd4] ss:$8 sps:$4 sm:$0xff]  }
 0x499   : > { %3387 = vmatprep.subr.bf16.mxu1 %v5242_v8  ;;  %v3883_v8 = vld [vmem:[#allocation9 + $0xe8] sm:$0xff] }
 0x49c   : > { %3388 = vmatpush1.bf16.msra.mxu1 %v5240_v15  ;;  %v3885_v15 = vld [vmem:[#allocation9 + $0xf8] sm:$0xff] }
 0x49d   : > { %3389 = vmatprep.subr.bf16.mxu1 %v5245_v16  ;;  %v4664_v16 = vpack.c.bf16 %v3880_v5, %v3878_v4  ;;  %v5303_v4 = vld [vmem:[#allocation8 + $0x2c0] ss:$8 sps:$4 sm:$0xff]   ;;  %v5308_v5 = vld [vmem:[#allocation8 + $0x2d4] ss:$8 sps:$4 sm:$0xff]  }
 0x49f   : > { %4665 = vmatpush1.bf16.msra.mxu0 %v4664_v16  ;;  %v5314_v16 = vld [vmem:[#allocation8 + $0x2f4] ss:$8 sps:$4 sm:$0xff]  }
 0x4a0   : > { %3390 = vmatpush1.bf16.msra.mxu1 %v5243_v28  ;;  %v5264_v28 = vld [vmem:[#allocation8 + $0xd0] ss:$8 sps:$4 sm:$0xff]  }
 0x4a1   : > { %3391 = vmatprep.subr.bf16.mxu1 %v5248_v58  ;;  %v4666_v58 = vpack.c.bf16 %v3885_v15, %v3883_v8  ;;  %v5311_v8 = vld [vmem:[#allocation8 + $0x2e4] ss:$8 sps:$4 sm:$0xff]   ;;  %v5309_v15 = vld [vmem:[#allocation8 + $0x2e0] ss:$8 sps:$4 sm:$0xff]  }
 0x4a3   : > { %4667 = vmatprep.subr.bf16.mxu0 %v4666_v58  ;;  %v5317_v58 = vld [vmem:[#allocation8 + $0x304] ss:$8 sps:$4 sm:$0xff]  }
 0x4a4   : > { %3392 = vmatpush1.bf16.msra.mxu1 %v5246_v17  ;;  %v3882_v17 = vld [vmem:[#allocation9 + $0xe0] sm:$0xff] }
 0x4a5   : > { %3393 = vmatprep.subr.bf16.mxu1 %v5251_v18  ;;  %v3884_v18 = vld [vmem:[#allocation9 + $0xf0] sm:$0xff] }
 0x4a6   : > { %v4668_v22 = vpack.c.bf16 %v3884_v18, %v3882_v17  ;;  %v5315_v17 = vld [vmem:[#allocation8 + $0x300] ss:$8 sps:$4 sm:$0xff]   ;;  %v5320_v18 = vld [vmem:[#allocation8 + $0x314] ss:$8 sps:$4 sm:$0xff]  }
 0x4a8   : > { %3394 = vmatpush1.bf16.msra.mxu1 %v5249_v27  ;;  %4669 = vmatpush1.bf16.msra.mxu0 %v4668_v22  ;;  %v3890_v27 = vld [vmem:[#allocation9 + $0x120] sm:$0xff] }
 0x4a9   : > { %3395 = vmatprep.subr.bf16.mxu1 %v5254_v31  ;;  %4671 = vmatprep.subr.bf16.mxu0 %v4670_v23  ;;  %v4676_v0 = vpack.c.bf16 %v3892_v53, %v3890_v27  ;;  %v2793_v31 = vld [vmem:[#allocation2] sm:$0xff]  ;;  %v5321_v22 = vld [vmem:[#allocation8 + $0x320] ss:$8 sps:$4 sm:$0xff]   ;;  %v3472_v23 = vpack.c.bf16 %v3466_v30, %v3466_v30 }
 0x4aa   : > { %v2799_v34 = vpack.c.bf16 %v6060_v63, %v2793_v31  ;;  %v3468_v53 = vld [vmem:[#allocation2 + $0x40] sm:$0x3]  ;;  %v3465_v31 = vld [vmem:[#allocation2 + $0x10] sm:$0xfc] }
 0x4ab   : > { %v3519_v36 = vrot.slane %v3472_v23, 1 }
 0x4ac   : > { %3396 = vmatpush1.bf16.msra.mxu1 %v5252_v37  ;;  %4673 = vmatpush1.bf16.msra.mxu0 %v4672_v25  ;;  %v5276_v37 = vld [vmem:[#allocation8 + $0x110] ss:$8 sps:$4 sm:$0xff]  }
 0x4ad   : > { %3397 = vmatprep.subr.bf16.mxu1 %v5257_v41  ;;  %4675 = vmatprep.subr.bf16.mxu0 %v4674_v26  ;;  %v3473_v41 = vpack.c.bf16 %v3467_v38, %v3467_v38  ;;  %v5332_v26 = vld [vmem:[#allocation8 + $0x354] ss:$8 sps:$4 sm:$0xff]  }
 0x4ae   : > { %v3897_v38 = vld [vmem:[#allocation9 + $0x158] sm:$0xff] }
 0x4af   : > { %v3522_v43 = vrot.slane %v3473_v41, 1  ;;  %v3896_v41 = vld [vmem:[#allocation9 + $0x150] sm:$0xff] }
 0x4b0   : > { %3398 = vmatpush1.bf16.msra.mxu1 %v5255_v45  ;;  %4677 = vmatpush1.bf16.msra.mxu0 %v4676_v0  ;;  %v2795_v45 = vld [vmem:[#allocation2 + $0x10] sm:$0xff]  ;;  %v3474_v0 = vpack.c.bf16 %v3468_v53, %v3468_v53  ;;  %v4680_v42 = vpack.c.bf16 %v3896_v41, %v3894_v40 }
 0x4b1   : > { %3399 = vmatprep.subr.bf16.mxu1 %v5260_v48  ;;  %v2801_v46 = vpack.c.bf16 %v6063_v29, %v2795_v45  ;;  %v3523_v48 = vsel %vm1889_vm13, %v3521_v47, %v3522_v43  ;;  %v3901_v43 = vld [vmem:[#allocation9 + $0x178] sm:$0xff]  ;;  %v3898_v45 = vld [vmem:[#allocation9 + $0x160] sm:$0xff]  ;;  %v3903_v47 = vld [vmem:[#allocation9 + $0x188] sm:$0xff] }
 0x4b4   : > { %3400 = vmatpush1.bf16.msra.mxu1 %v5258_v52  ;;  %v5288_v52 = vld [vmem:[#allocation8 + $0x270] ss:$8 sps:$4 sm:$0xff]  }
 0x4b5   : > { %3401 = vmatprep.subr.bf16.mxu1 %v5263_v60  ;;  %v5294_v60 = vld [vmem:[#allocation8 + $0x290] ss:$8 sps:$4 sm:$0xff]  }
 0x4b8   : > { %3402 = vmatpush1.bf16.msra.mxu1 %v5261_v10  ;;  %v5300_v10 = vld [vmem:[#allocation8 + $0x2b0] ss:$8 sps:$4 sm:$0xff]  }
 0x4b9   : > { %3403 = vmatprep.subr.bf16.mxu1 %v5266_v7  ;;  %v5306_v7 = vld [vmem:[#allocation8 + $0x2d0] ss:$8 sps:$4 sm:$0xff]  }
 0x4bc   : > { %3404 = vmatpush1.bf16.msra.mxu1 %v5264_v28  ;;  %v5312_v28 = vld [vmem:[#allocation8 + $0x2f0] ss:$8 sps:$4 sm:$0xff]  }
 0x4bd   : > { %3405 = vmatprep.subr.bf16.mxu1 %v5269_v20  ;;  %v5318_v20 = vld [vmem:[#allocation8 + $0x310] ss:$8 sps:$4 sm:$0xff]  }
 0x4c0   : > { %3406 = vmatpush1.bf16.msra.mxu1 %v5267_v32  ;;  %v5326_v32 = vld [vmem:[#allocation8 + $0x334] ss:$8 sps:$4 sm:$0xff]  }
 0x4c1   : > { %3407 = vmatprep.subr.bf16.mxu1 %v5272_v12  ;;  %v3469_v12 = vpack.c.bf16 %v6060_v63, %v3463_v62  ;;  %v3471_v63 = vpack.c.bf16 %v6063_v29, %v3465_v31 }
 0x4c3   : > { %v3518_v25 = vrot.slane %v3469_v12, 1 }
 0x4c4   : > { %3408 = vmatpush1.bf16.msra.mxu1 %v5270_v59  ;;  %v5327_v59 = vld [vmem:[#allocation8 + $0x340] ss:$8 sps:$4 sm:$0xff]  }
 0x4c5   : > { %3420 = vmatprep.subr.bf16.mxu1 %v5275_v55  ;;  %v3520_v27 = vsel %vm1889_vm13, %v3518_v25, %v3519_v36  ;;  %v5330_v55 = vld [vmem:[#allocation8 + $0x350] ss:$8 sps:$4 sm:$0xff]  }
 0x4c7   : > { %3410 = vmatmul.mubr.bf16.vlgmr.msra.gmra.mrb[12].mxu1 %v2799_v34  ;;  %v3524_v34 = vrot.slane %v3471_v63, 1 }
 0x4c8   : > { %3421 = vmatpush1.bf16.msra.mxu1 %v5273_v33  ;;  %3452 = vmatprep.mubr.bf16.mxu1 %v5576_v9  ;;  %v3525_v33 = vrot.slane %v3474_v0, 1 }
 0x4c9   : > { %3422 = vmatprep.subr.bf16.mxu1 %v5278_v35 }
 0x4ca   : > { %v3526_v35 = vsel %vm1889_vm13, %v3524_v34, %v3525_v33 }
 0x4cc   : > { %3423 = vmatpush1.bf16.msra.mxu1 %v5276_v37  ;;  %v3895_v37 = vld [vmem:[#allocation9 + $0x148] sm:$0xff] }
 0x4cd   : > { %3712 = vmatprep.subr.bf16.mxu1 %v5281_v39  ;;  %v4678_v39 = vpack.c.bf16 %v3897_v38, %v3895_v37 }
 0x4cf   : > { %4679 = vmatprep.subr.bf16.mxu0 %v4678_v39 }
 0x4d0   : > { %4681 = vmatpush1.bf16.msra.mxu0 %v4680_v42 }
 0x4d3   : > { %4525 = vmatmul.mubr.msk.bf16.vlgmr.msra.gmra.mrb[12].mxu1 %vm1087_vm12, %v2801_v46  ;;  %v3900_v46 = vld [vmem:[#allocation9 + $0x170] sm:$0xff] }
 0x4d4   : > { %3713 = vmatpush1.bf16.msra.mxu1 %v5279_v44  ;;  %3744 = vmatprep.mubr.bf16.mxu1 %v3523_v48  ;;  %v4684_v29 = vpack.c.bf16 %v3900_v46, %v3898_v45 }
 0x4d5   : > { %3714 = vmatprep.subr.bf16.mxu1 %v5284_v1  ;;  %v3905_v1 = vld [vmem:[#allocation9 + $0x198] sm:$0xff] }
 0x4d6   : > { %v4686_v48 = vpack.c.bf16 %v3905_v1, %v3903_v47 }
 0x4d8   : > { %3715 = vmatpush1.bf16.msra.mxu1 %v5282_v49  ;;  %v3902_v49 = vld [vmem:[#allocation9 + $0x180] sm:$0xff] }
 0x4d9   : > { %3716 = vmatprep.subr.bf16.mxu1 %v5287_v50  ;;  %v3904_v50 = vld [vmem:[#allocation9 + $0x190] sm:$0xff] }
 0x4dc   : > { %3717 = vmatpush1.bf16.msra.mxu1 %v5285_v51  ;;  %v3907_v51 = vld [vmem:[#allocation9 + $0x1a8] sm:$0xff] }
 0x4dd   : > { %3718 = vmatprep.subr.bf16.mxu1 %v5290_v19  ;;  %v4688_v19 = vpack.c.bf16 %v3904_v50, %v3902_v49 }
 0x4e0   : > { %3719 = vmatpush1.bf16.msra.mxu1 %v5288_v52  ;;  %v3909_v52 = vld [vmem:[#allocation9 + $0x1b8] sm:$0xff] }
 0x4e1   : > { %3720 = vmatprep.subr.bf16.mxu1 %v5293_v3  ;;  %v3906_v3 = vld [vmem:[#allocation9 + $0x1a0] sm:$0xff] }
 0x4e4   : > { %3721 = vmatpush1.bf16.msra.mxu1 %v5291_v56  ;;  %v3908_v56 = vld [vmem:[#allocation9 + $0x1b0] sm:$0xff] }
 0x4e5   : > { %3722 = vmatprep.subr.bf16.mxu1 %v5296_v57  ;;  %v4690_v57 = vpack.c.bf16 %v3909_v52, %v3907_v51 }
 0x4e8   : > { %3723 = vmatpush1.bf16.msra.mxu1 %v5294_v60  ;;  %v3911_v60 = vld [vmem:[#allocation9 + $0x1c8] sm:$0xff] }
 0x4e9   : > { %3724 = vmatprep.subr.bf16.mxu1 %v5299_v6  ;;  %v3913_v6 = vld [vmem:[#allocation9 + $0x1d8] sm:$0xff] }
 0x4ec   : > { %3725 = vmatpush1.bf16.msra.mxu1 %v5297_v24  ;;  %v4692_v24 = vpack.c.bf16 %v3908_v56, %v3906_v3 }
 0x4ed   : > { %3726 = vmatprep.subr.bf16.mxu1 %v5302_v61  ;;  %v4694_v61 = vpack.c.bf16 %v3913_v6, %v3911_v60 }
 0x4f0   : > { %3727 = vmatpush1.bf16.msra.mxu1 %v5300_v10  ;;  %v3910_v10 = vld [vmem:[#allocation9 + $0x1c0] sm:$0xff] }
 0x4f1   : > { %3728 = vmatprep.subr.bf16.mxu1 %v5305_v2  ;;  %v3912_v2 = vld [vmem:[#allocation9 + $0x1d0] sm:$0xff] }
 0x4f4   : > { %3729 = vmatpush1.bf16.msra.mxu1 %v5303_v4  ;;  %v3915_v4 = vld [vmem:[#allocation9 + $0x1e8] sm:$0xff] }
 0x4f5   : > { %3730 = vmatprep.subr.bf16.mxu1 %v5308_v5  ;;  %v3917_v5 = vld [vmem:[#allocation9 + $0x1f8] sm:$0xff] }
 0x4f8   : > { %3731 = vmatpush1.bf16.msra.mxu1 %v5306_v7  ;;  %v4696_v7 = vpack.c.bf16 %v3912_v2, %v3910_v10 }
 0x4f9   : > { %3732 = vmatprep.subr.bf16.mxu1 %v5311_v8  ;;  %v4698_v8 = vpack.c.bf16 %v3917_v5, %v3915_v4 }
 0x4fc   : > { %3733 = vmatpush1.bf16.msra.mxu1 %v5309_v15  ;;  %v3914_v15 = vld [vmem:[#allocation9 + $0x1e0] sm:$0xff] }
 0x4fd   : > { %3734 = vmatprep.subr.bf16.mxu1 %v5314_v16  ;;  %v3916_v16 = vld [vmem:[#allocation9 + $0x1f0] sm:$0xff] }
 0x500   : > { %3735 = vmatpush1.bf16.msra.mxu1 %v5312_v28  ;;  %v4700_v28 = vpack.c.bf16 %v3916_v16, %v3914_v15 }
 0x501   : > { %3736 = vmatprep.subr.bf16.mxu1 %v5317_v58  ;;  %v3802_v58 = vld [vmem:[%s6191_s5] sm:$0x3] }
 0x504   : > { %3737 = vmatpush1.bf16.msra.mxu1 %v5315_v17  ;;  %v3807_v17 = vrot.slane %v3802_v58, %v5985_v14 }
 0x505   : > { %3738 = vmatprep.subr.bf16.mxu1 %v5320_v18  ;;  %v3811_v18 = vrot.slane %v3802_v58, %v5987_v54 }
 0x508   : > { %3739 = vmatpush1.bf16.msra.mxu1 %v5318_v20 }
 0x509   : > { %3740 = vmatprep.subr.bf16.mxu1 %v5323_v21 }
 0x50c   : > { %3741 = vmatpush1.bf16.msra.mxu1 %v5321_v22 }
 0x50d   : > { %3742 = vmatprep.subr.bf16.mxu1 %v5326_v32 }
 0x510   : > { %3743 = vmatpush1.bf16.msra.mxu1 %v5324_v11 }
 0x511   : > { %3755 = vmatprep.subr.bf16.mxu1 %v5329_v13 }
 0x513   : > { %3745 = vmatmul.mubr.bf16.vlgmr.msra.gmra.mrb[12].mxu1 %v3520_v27 }
 0x514   : > { %3756 = vmatpush1.bf16.msra.mxu1 %v5327_v59  ;;  %3787 = vmatprep.mubr.bf16.mxu1 %v5576_v9  ;;  %v3899_v9 = vld [vmem:[#allocation9 + $0x168] sm:$0xff] }
 0x515   : > { %3757 = vmatprep.subr.bf16.mxu1 %v5332_v26  ;;  %v4682_v44 = vpack.c.bf16 %v3901_v43, %v3899_v9 }
 0x517   : > { %4683 = vmatprep.subr.bf16.mxu0 %v4682_v44 }
 0x518   : > { %3758 = vmatpush1.bf16.msra.mxu1 %v5330_v55  ;;  %4685 = vmatpush1.bf16.msra.mxu0 %v4684_v29 }
 0x519   : > { %4687 = vmatprep.subr.bf16.mxu0 %v4686_v48 }
 0x51c   : > { %4689 = vmatpush1.bf16.msra.mxu0 %v4688_v19 }
 0x51d   : > { %4691 = vmatprep.subr.bf16.mxu0 %v4690_v57 }
 0x51f   : > { %4562 = vmatmul.mubr.msk.bf16.vlgmr.msra.gmra.mrb[12].mxu1 %vm1087_vm12, %v3526_v35 }
 0x520   : > { %4693 = vmatpush1.bf16.msra.mxu0 %v4692_v24 }
 0x521   : > { %4695 = vmatprep.subr.bf16.mxu0 %v4694_v61 }
 0x524   : > { %4697 = vmatpush1.bf16.msra.mxu0 %v4696_v7 }
 0x525   : > { %4699 = vmatprep.subr.bf16.mxu0 %v4698_v8  ;;  %v3818_v8 = vld [vmem:[%s6231_s25] sm:$0x3]  ;;  %s5497_s25 = scalar_lea.vmem %s5496_s29, 1024 }
 0x526   : > { %p5499_p1 = scmp.lt.s32.totalorder %s5497_s25, %s5491_s15 }
 0x528   : > { %4701 = vmatpush1.bf16.msra.mxu0 %v4700_v28  ;;  %v3819_v28 = vld [vmem:[%s6232_s16] sm:$0x3]  ;;  %p5500_p2 = por %p5499_p1, %p5498_p12 }
 0x52a   : > { %p5501_p4 = pnand %p5500_p2, %p5494_p7 }
 0x5f2   : > { %v3789_v20 = vpop.f32.mrb[12].mxu1 }
 0x5f3   : > { %v6089_v21 = vadd.f32 %v3807_v17, %v3789_v20  ;;  %v3791_v30 = vpop.f32.mrb[13].mxu1 }
 0x5f4   : > { %v6091_v22 = vadd.f32 %v3811_v18, %v3791_v30  ;;  %v3793_v32 = vpop.f32.mrb[14].mxu1  ;;  %v4033_v30 = vrot.slane %v3818_v8, %v5985_v14 }
 0x5f5   : > { %v6093_v23 = vadd.f32 %v3807_v17, %v3793_v32  ;;  %v3795_v62 = vpop.f32.mrb[15].mxu1  ;;  %v3834_v12 = vmul.f32 %v6089_v21, %v6089_v21 }
 0x5f6   : > { %v6095_v11 = vadd.f32 %v3811_v18, %v3795_v62  ;;  %v3835_v25 = vmul.f32 %v6091_v22, %v6091_v22 }
 0x5f7   : > { %v3820_v13 = vadd.f32 %v6093_v23, %v6089_v21  ;;  %v3836_v36 = vmul.f32 %v6093_v23, %v6093_v23 }
 0x5f8   : > { %v3827_v59 = vadd.f32 %v6095_v11, %v6091_v22  ;;  %v3837_v26 = vmul.f32 %v6095_v11, %v6095_v11 }
 0x5f9   : > { %v3821_v27 = vrot.slane %v3820_v13, 4  ;;  %v3838_v53 = vadd.f32 %v3836_v36, %v3834_v12 }
 0x5fa   : > { %v3828_v55 = vrot.slane %v3827_v59, 4  ;;  %v3845_v0 = vadd.f32 %v3837_v26, %v3835_v25  ;;  %v4052_v26 = vrot.slane %v3819_v28, %v5987_v54 }
 0x5fb   : > { %v3822_v31 = vadd.f32 %v3821_v27, %v3820_v13  ;;  %v3839_v63 = vrot.slane %v3838_v53, 4  ;;  %v4037_v13 = vrot.slane %v3818_v8, %v5987_v54 }
 0x5fc   : > { %v3829_v33 = vadd.f32 %v3828_v55, %v3827_v59  ;;  %v3846_v34 = vrot.slane %v3845_v0, 4 }
 0x5fd   : > { %v3823_v35 = vrot.slane %v3822_v31, 2  ;;  %v3840_v37 = vadd.f32 %v3839_v63, %v3838_v53 }
 0x5fe   : > { %v3830_v38 = vrot.slane %v3829_v33, 2  ;;  %v3847_v39 = vadd.f32 %v3846_v34, %v3845_v0 }
 0x5ff   : > { %v3824_v40 = vadd.f32 %v3823_v35, %v3822_v31  ;;  %v3841_v41 = vrot.slane %v3840_v37, 2  ;;  %v5374_v35 = vld [vmem:[%s5845_s1 + $0x10] sm:$0xff] }
 0x600   : > { %v3831_v42 = vadd.f32 %v3830_v38, %v3829_v33  ;;  %v3848_v9 = vrot.slane %v3847_v39, 2  ;;  %v5373_v33 = vld [vmem:[%s5845_s1] sm:$0xff]  ;;  %v5375_v38 = vld [vmem:[%s5845_s1 + $0x8] sm:$0xff] }
 0x601   : > { %v3842_v43 = vadd.f32 %v3841_v41, %v3840_v37  ;;  %v3825_v46 = vrot.slane %v3824_v40, 1 }
 0x602   : > { %v3832_v44 = vrot.slane %v3831_v42, 1  ;;  %v3849_v45 = vadd.f32 %v3848_v9, %v3847_v39  ;;  %v5376_v39 = vld [vmem:[%s5845_s1 + $0x18] sm:$0xff]  ;;  %s4573_s1 = sshll.u32 %s5661_s21, 9  ;;  %s4096_s21 = scalar_lea.sflag [#allocation5], %s5839_s22 }
 0x603   : > { %v3843_v29 = vrot.slane %v3842_v43, 1  ;;  %v3826_v50 = vadd.f32 %v3825_v46, %v3824_v40  ;;  %s6139_s28 = scalar_lea.hbm %s6233_s27, %s4573_s1 }
 0x604   : > { %v3850_v47 = vrot.slane %v3849_v45, 1  ;;  %v3833_v48 = vadd.f32 %v3832_v44, %v3831_v42 }
 0x605   : > { %v3844_v1 = vadd.f32 %v3843_v29, %v3842_v43 }
 0x606   : > { %v3851_v49 = vadd.f32 %v3850_v47, %v3849_v45 }
 0x607   : > { %v3852_v19 = vsel %vm479_vm7, %v3826_v50, %v3844_v1 }
 0x608   : > { %v3853_v51 = vsel %vm479_vm7, %v3833_v48, %v3851_v49 }
 0x609   : > { %3982 = vmatprep.mubr.f32.mxu0 %v3853_v51 }
 0x60a   : > { %3983 = vmatmul.mubr.f32.vlgmr.msra.gmra.mrb[18].mxu0 %v3852_v19 }
 0x6dd   : > { %v3984_v52 = vpop.f32.mrb[18].mxu0 }
 0x6de   : > { %v3989_v3 = vmul.f32 0.001953125, %v3984_v52  ;;  %v3986_v56 = vpop.f32.mrb[19].mxu0 }
 0x6df   : > { %v3990_v57 = vmul.f32 0.001953125, %v3986_v56 }
 0x6e0   : > { %v3991_v60 = vmul.f32 %v3989_v3, %v3989_v3  ;;  %v4008_v7 = vrot.slane %v3989_v3, %v5985_v14 }
 0x6e1   : > { %v3992_v6 = vmul.f32 %v3990_v57, %v3990_v57  ;;  %v4012_v15 = vrot.slane %v3990_v57, %v5985_v14 }
 0x6e2   : > { %v3995_v24 = vrot.slane %v3991_v60, 7  ;;  %v4013_v17 = vsub.f32 %v6089_v21, %v4008_v7  ;;  %v4015_v18 = vsub.f32 %v6093_v23, %v4008_v7  ;;  %v4048_v21 = vrot.slane %v3819_v28, %v5985_v14 }
 0x6e3   : > { %v3996_v61 = vrot.slane %v3992_v6, 7  ;;  %v4014_v32 = vsub.f32 %v6091_v22, %v4012_v15  ;;  %v4016_v62 = vsub.f32 %v6095_v11, %v4012_v15 }
 0x6e4   : > { %v3999_v10 = vsub.f32 %v3989_v3, %v3995_v24 }
 0x6e5   : > { %v4000_v2 = vsub.f32 %v3990_v57, %v3996_v61 }
 0x6e6   : > { %v4001_v4 = vadd.f32 1e-05, %v3999_v10 }
 0x6e7   : > { %v4002_v5 = vadd.f32 1e-05, %v4000_v2 }
 0x6e8   : > { %5353 = vrsqrt.f32 %v4001_v4 }
 0x6e9   : > { %5355 = vrsqrt.f32 %v4002_v5 }
 0x6f2   : > { %v5354_v16 = vpop.eup %5353 }
 0x6f3   : > { %v5356_v58 = vpop.eup %5355  ;;  %v4020_v20 = vrot.slane %v5354_v16, %v5987_v54 }
 0x6f4   : > { %v4024_v12 = vrot.slane %v5356_v58, %v5987_v54 }
 0x6f5   : > { %v4025_v36 = vmul.f32 %v4020_v20, %v4013_v17  ;;  %v4027_v25 = vmul.f32 %v4020_v20, %v4015_v18 }
 0x6f6   : > { %v4026_v23 = vmul.f32 %v4024_v12, %v4014_v32  ;;  %v4028_v59 = vmul.f32 %v4024_v12, %v4016_v62 }
 0x6f7   : > { %v4040_v27 = vmul.f32 %v4033_v30, %v4025_v36  ;;  %v4042_v22 = vmul.f32 %v4033_v30, %v4027_v25 }
 0x6f8   : > { %v4041_v53 = vmul.f32 %v4037_v13, %v4026_v23  ;;  %v4043_v11 = vmul.f32 %v4037_v13, %v4028_v59 }
 0x6f9   : > { %v4055_v55 = vadd.f32 %v4048_v21, %v4040_v27  ;;  %v4057_v0 = vadd.f32 %v4048_v21, %v4042_v22 }
 0x6fa   : > { %v4056_v31 = vadd.f32 %v4052_v26, %v4041_v53  ;;  %v4058_v63 = vadd.f32 %v4052_v26, %v4043_v11 }
 0x6fb   : > { %v4059_v34 = vadd.f32 %v5373_v33, %v4055_v55  ;;  %v4061_v37 = vadd.f32 %v5374_v35, %v4057_v0 }
 0x6fc   : > { %v4060_v14 = vadd.f32 %v5375_v38, %v4056_v31  ;;  %v4062_v40 = vadd.f32 %v5376_v39, %v4058_v63 }
 0x6fd   : > { %v4563_v41 = vmul.f32 -1.442695, %v4059_v34  ;;  %v4565_v42 = vmul.f32 -1.442695, %v4061_v37 }
 0x6fe   : > { %v4564_v9 = vmul.f32 -1.442695, %v4060_v14  ;;  %v4566_v54 = vmul.f32 -1.442695, %v4062_v40 }
 0x6ff   : > { %5357 = vpow2.f32 %v4563_v41 }
 0x700   : > { %5359 = vpow2.f32 %v4565_v42 }
 0x701   : > { %5361 = vpow2.f32 %v4564_v9 }
 0x702   : > { %5363 = vpow2.f32 %v4566_v54 }
 0x709   : > { %v5358_v43 = vpop.eup %5357 }
 0x70a   : > { %v5360_v44 = vpop.eup %5359  ;;  %v4075_v45 = vadd.f32 1.0, %v5358_v43 }
 0x70b   : > { %v5362_v46 = vpop.eup %5361  ;;  %v4077_v29 = vadd.f32 1.0, %v5360_v44 }
 0x70c   : > { %v5364_v47 = vpop.eup %5363  ;;  %5365 = vrcp.f32 %v4075_v45  ;;  %v4076_v1 = vadd.f32 1.0, %v5362_v46 }
 0x70d   : > { %5367 = vrcp.f32 %v4077_v29  ;;  %v4078_v48 = vadd.f32 1.0, %v5364_v47 }
 0x70e   : > { %5369 = vrcp.f32 %v4076_v1 }
 0x70f   : > { %5371 = vrcp.f32 %v4078_v48 }
 0x716   : > { %v5366_v49 = vpop.eup %5365 }
 0x717   : > { %v5368_v50 = vpop.eup %5367  ;;  %v4087_v51 = vmul.f32 %v5366_v49, %v4059_v34 }
 0x718   : > { %v5370_v19 = vpop.eup %5369  ;;  %v4089_v52 = vmul.f32 %v5368_v50, %v4061_v37 }
 0x719   : > { %v5372_v3 = vpop.eup %5371  ;;  %4091 = vst [vmem:[%s448_s30] sm:$0xff] %v4087_v51  ;;  %v4088_v56 = vmul.f32 %v5370_v19, %v4060_v14 }
 0x71a   : > { %4093 = vst [vmem:[%s448_s30 + $0x10] sm:$0xff] %v4089_v52  ;;  %v4090_v57 = vmul.f32 %v5372_v3, %v4062_v40 }
 0x71b   : > { %4092 = vst [vmem:[%s448_s30 + $0x8] sm:$0xff] %v4088_v56 }
 0x71c   : > { %4094 = vst [vmem:[%s448_s30 + $0x18] sm:$0xff] %v4090_v57 }
 0x71d   : > { %5504 = shalt.err (!%p5501_p4)
}
 0x71e   : > { %s5505_s13 = scalar_lea.hbm %s6139_s28, 512  ;;  %s5509_s1 = scalar_lea.hbm %s6233_s27, 1024 }
 0x71f   : > { %p5506_p9 = scmp.ne.s32.totalorder %s6139_s28, %s5505_s13  ;;  %p5510_p8 = scmp.lt.u32.totalorder %s6139_s28, %s6233_s27 }
 0x720   : > { %p5511_p13 = scmp.lt.u32.totalorder %s5509_s1, %s5505_s13  ;;  %p5513_p10 = scmp.lt.u32.totalorder %s5505_s13, %s6139_s28 }
 0x721   : > { %p5507_p0 = pnand %p5506_p9, %p5788_p5 }
 0x722   : > { %p5512_p6 = por %p5511_p13, %p5510_p8 }
 0x723   : > { %p5508_p11 = pneg %p5507_p0 }
 0x724   : > { %p5514_p3 = por %p5513_p10, %p5512_p6 }
 0x726   : > { %p5515_p7 = pnand %p5514_p3, %p5508_p11 }
 0x728   : > { %5518 = shalt.err (!%p5515_p7)
}
 0x729   : > { %s5579_s11 = smov 256  }
 0x72a   : > { %4776 = dma.vmem_to_hbm [thread:$0]  (%p5788_p5), %s6141_s8, 512, %s6139_s28, %s4096_s21, %s5579_s11, %s5579_s11, %s5577_s23  }
 0x72b PF: > { %s6234_s15 = sld [smem:[#allocation16_spill]]  ;;  %s6235_s24 = sld [smem:[#allocation17_spill]] }
 0x72c   : > { %p6237_p1 = scmp.ge.s32.totalorder %s5565_s20, 2 }
 0x731   : > { %s4124_s29 = sand.u32 1, %s6234_s15   ;;  %p6236_p12 = scmp.ne.s32.totalorder %s6235_s24, 0 }
 0x732   : > { %s4125_s25 = scalar_lea.sflag [#allocation5], %s4124_s29 }
 0x733   : > { %p4793_p2 = pnand %p6237_p1, %p6236_p12 }
 0x735   : > { %5548 = dma.done.wait (!%p4793_p2), %s4125_s25, 512  }
 0x736   : > { %5550 = vsyncadd (!%p4793_p2), %s4125_s25, 4294966784  ;;  %s6238_s9 = smov %s5784_s17  ;;  %p26_p4 = scmp.ge.s32.totalorder %s5753_s26, 4  }
 0x737   : > { %s6239_s17 = smov %s5557_s18  ;;  %s6240_s18 = smov %s5561_s19 }
 0x738   : > { %s6241_s19 = smov %s6238_s9  ;;  %s6242_s20 = smov %s5753_s26 }
 0x739   :  { %28 = sbr.rel (!%p26_p4) target bundleno = 12 (0xc), region = 126 }
 0x740   :  { %4130 = vsyncpa [#allocation4], 1 }
 0x741   :  { %4132 = vsyncpa [#allocation4 + $0x1], 1 }
 0x742   :  { %4133 = vsyncpa [#allocation7], 1 }
 0x743   :  { %4134 = vsyncpa [#allocation10], 1 }
 0x744   :  { %4135 = vsyncpa [#allocation5], 1 }
 0x745   :  { %4137 = vsyncpa [#allocation5 + $0x1], 1 }

</bundles_post_ra>
